<compile_context>
chip_gen: v7x
topology: tpu7x:2x2x1
jax: 0.10.0
libtpu: 0.0.40
codegen_flags: <defaults>
</compile_context>

<pallas_src>
import math

import jax
import jax.numpy as jnp
from jax.experimental import pallas as pl
from jax.experimental.pallas import tpu as pltpu

# ---- hyperparameters implied by the PyTorch module ----
D_FEAT = 6
D_MODEL = 8
NHEAD = 4
HEAD_DIM = D_MODEL // NHEAD          # = 2
NUM_LAYERS = 2
DIM_FF = 2048                        # nn.TransformerEncoderLayer default
LN_EPS = 1e-5
PROJ_W = 5 * D_MODEL                 # fused projection width: [q*s, k, v, q_swap*s, k_swap] = 40
SMALL_W = PROJ_W                     # width of the packed small-parameter array
OUT_PAD = 128                        # lane-dense output slab width
BLOCK_B_CAP = 128                    # max batch tile (sweepable)
VMEM_LIMIT = 48 * 1024 * 1024        # fits v7x's 64 MiB VMEM; fine on v5e/v6e

assert HEAD_DIM == 2, "duplicated-score trick assumes head_dim == 2"


# ---------------------------------------------------------------------------
# packed small-parameter layout: every entry starts on an 8-row (sublane-tile)
# boundary so in-kernel slices are zero-cost views.
# ---------------------------------------------------------------------------
def _layout(seq_len):
    idx = {}
    r = 0

    def alloc(n):
        nonlocal r
        start = r
        r += ((n + 7) // 8) * 8
        return start

    idx["wf"] = alloc(D_FEAT)         # (6, 8)   feature Linear, transposed
    idx["bf"] = alloc(1)              # (1, 8)
    idx["dec_w"] = alloc(1)           # (1, 9)   decoder Linear(9 -> 1) weight row
    idx["dec_b"] = alloc(1)           # (1, 1)
    idx["pe"] = alloc(seq_len)        # (T, 8)   positional encoding
    layers = []
    for _ in range(NUM_LAYERS):
        d = {}
        d["inw"] = alloc(D_MODEL)     # (8, 40)  extended in_proj^T (q pre-scaled, swapped q/k)
        d["inb"] = alloc(1)           # (1, 40)
        d["ow"] = alloc(D_MODEL)      # (8, 8)   out_proj^T
        d["ob"] = alloc(1)
        d["b2"] = alloc(1)            # linear2 bias
        d["ln1w"] = alloc(1)
        d["ln1b"] = alloc(1)
        d["ln2w"] = alloc(1)
        d["ln2b"] = alloc(1)
        layers.append(d)
    idx["layers"] = layers
    idx["rows"] = r
    return idx


def _layer_norm(v, w, b):
    # v: (BT, D); w, b: (1, D) — matches torch.nn.LayerNorm (biased variance)
    mu = jnp.mean(v, axis=-1, keepdims=True)
    d = v - mu
    var = jnp.mean(d * d, axis=-1, keepdims=True)
    return d * jax.lax.rsqrt(var + LN_EPS) * w + b


# ---------------------------------------------------------------------------
# kernel
# ---------------------------------------------------------------------------
def actor_kernel(feature_ref, xt_ref, pack_ref, w1_ref, b1_ref, w2_ref, out_ref):
    BB, T, _ = feature_ref.shape
    BT = BB * T
    lay = _layout(T)

    def p_rows(r, n, w):
        return pack_ref[r:r + n, 0:w]

    # ---- feature projection: (BT, 6) @ (6, 8) ----
    feat = feature_ref[...].reshape(BT, D_FEAT)
    x = jnp.dot(feat, p_rows(lay["wf"], D_FEAT, D_MODEL),
                preferred_element_type=jnp.float32) + p_rows(lay["bf"], 1, D_MODEL)

    # ---- positional encoding (same for every batch element) ----
    pe = p_rows(lay["pe"], T, D_MODEL)
    x = x + jnp.broadcast_to(pe[None, :, :], (BB, T, D_MODEL)).reshape(BT, D_MODEL)

    # ---- 2 x TransformerEncoderLayer (post-norm) ----
    for l in range(NUM_LAYERS):
        d = lay["layers"][l]

        # fused projection: (BT, 8) @ (8, 40) -> [q, k, v, q_swap, k_swap]
        # (softmax 1/sqrt(head_dim) pre-folded into the q and q_swap columns host-side)
        qkv = jnp.dot(x, p_rows(d["inw"], D_MODEL, PROJ_W),
                      preferred_element_type=jnp.float32) + p_rows(d["inb"], 1, PROJ_W)
        q = qkv[:, 0 * D_MODEL:1 * D_MODEL].reshape(BB, T, D_MODEL)
        k = qkv[:, 1 * D_MODEL:2 * D_MODEL].reshape(BB, T, D_MODEL)
        v = qkv[:, 2 * D_MODEL:3 * D_MODEL].reshape(BB, T, D_MODEL)
        qs = qkv[:, 3 * D_MODEL:4 * D_MODEL].reshape(BB, T, D_MODEL)
        ks = qkv[:, 4 * D_MODEL:5 * D_MODEL].reshape(BB, T, D_MODEL)

        # attention scores for all 4 heads at once, duplicated on both lanes of each
        # head pair (head_dim = 2).  scores[b,i,j,d] = q[i,d]k[j,d] + q[i,pair(d)]k[j,pair(d)]
        # — pure VPU broadcast multiplies; the pair-partner term comes from the host-swapped
        # q/k columns, so there is no MXU pair-sum matmul and no cross-lane roll.
        scores = (q[:, :, None, :] * k[:, None, :, :]
                  + qs[:, :, None, :] * ks[:, None, :, :])             # (BB, T, T, 8)
        mx = jnp.max(scores, axis=2, keepdims=True)
        pr = jnp.exp(scores - mx)
        sm = jnp.sum(pr, axis=2, keepdims=True)
        pr = pr / sm                                                   # exact softmax
        ctx = jnp.sum(pr * v[:, None, :, :], axis=2)                   # (BB, T, 8)
        attn = ctx.reshape(BT, D_MODEL)

        # out-projection + residual + LayerNorm
        attn = jnp.dot(attn, p_rows(d["ow"], D_MODEL, D_MODEL),
                       preferred_element_type=jnp.float32) + p_rows(d["ob"], 1, D_MODEL)
        x = _layer_norm(x + attn,
                        p_rows(d["ln1w"], 1, D_MODEL), p_rows(d["ln1b"], 1, D_MODEL))

        # feed-forward: two full-width matmuls, bf16 MXU inputs, f32 accumulation.
        # w2 is stored lane-dense as (8, 2048); contract over its dim 1 (== torch h1 @ w2.T).
        w1l = w1_ref[l]                       # (8, 2048)  bf16
        w2l = w2_ref[l]                       # (8, 2048)  bf16, lane-dense
        b1l = b1_ref[l]                       # (1, 2048)  f32
        xb = x.astype(jnp.bfloat16)
        h1 = jnp.dot(xb, w1l, preferred_element_type=jnp.float32) + b1l
        h1 = jnp.maximum(h1, 0.0).astype(jnp.bfloat16)
        h2 = jax.lax.dot_general(
            h1, w2l, dimension_numbers=(((1,), (1,)), ((), ())),
            preferred_element_type=jnp.float32) + p_rows(d["b2"], 1, D_MODEL)
        x = _layer_norm(x + h2,
                        p_rows(d["ln2w"], 1, D_MODEL), p_rows(d["ln2b"], 1, D_MODEL))

    # ---- last time step + xt -> decoder Linear(9 -> 1) -> sigmoid ----
    last = x.reshape(BB, T, D_MODEL)[:, T - 1, :]                      # (BB, 8)
    dec_w = p_rows(lay["dec_w"], 1, D_MODEL + 1)                       # (1, 9)
    dec_b = p_rows(lay["dec_b"], 1, 1)                                 # (1, 1)
    xt = xt_ref[...]                                                   # (BB, 1)
    pre = (jnp.sum(last * dec_w[:, 0:D_MODEL], axis=-1, keepdims=True)
           + xt * dec_w[:, D_MODEL:D_MODEL + 1] + dec_b)
    # lane-dense output slab (unmasked vector stores); wrapper keeps column 0
    out_ref[...] = jnp.broadcast_to(jax.nn.sigmoid(pre), (BB, OUT_PAD))


# ---------------------------------------------------------------------------
# host-side helpers
# ---------------------------------------------------------------------------
def positional_encoding(seq_len):
    position = jnp.arange(seq_len, dtype=jnp.float32)[:, None]
    div_term = jnp.exp(jnp.arange(0, D_MODEL, 2, dtype=jnp.float32)
                       * (-math.log(10000.0) / D_MODEL))
    pe = jnp.zeros((seq_len, D_MODEL), jnp.float32)
    pe = pe.at[:, 0::2].set(jnp.sin(position * div_term))
    pe = pe.at[:, 1::2].set(jnp.cos(position * div_term))
    return pe


def init_params(key):
    """Deterministic synthetic parameters with PyTorch shapes."""
    ks = iter(jax.random.split(key, 64))

    def w(shape, scale=0.1):
        return (scale * jax.random.normal(next(ks), shape)).astype(jnp.float32)

    layers = []
    for _ in range(NUM_LAYERS):
        layers.append(dict(
            in_w=w((3 * D_MODEL, D_MODEL)), in_b=w((3 * D_MODEL,)),
            out_w=w((D_MODEL, D_MODEL)), out_b=w((D_MODEL,)),
            w1=w((DIM_FF, D_MODEL)), b1=w((DIM_FF,)),
            w2=w((D_MODEL, DIM_FF)), b2=w((D_MODEL,)),
            ln1w=jnp.ones((D_MODEL,), jnp.float32), ln1b=jnp.zeros((D_MODEL,), jnp.float32),
            ln2w=jnp.ones((D_MODEL,), jnp.float32), ln2b=jnp.zeros((D_MODEL,), jnp.float32),
        ))
    return dict(
        wf=w((D_MODEL, D_FEAT)), bf=w((D_MODEL,)),
        layers=layers,
        dec_w=w((1, D_MODEL + 1)), dec_b=w((1,)),
    )


def pack_params(params, seq_len):
    """Pre-transpose weights to (in, out), fold the softmax scale into q, build the
    within-head-swapped q/k columns, and pack all small tensors into one aligned
    (rows, 40) f32 array; big FF weights go to lane-dense bf16 stacks."""
    lay = _layout(seq_len)
    small = jnp.zeros((lay["rows"], SMALL_W), jnp.float32)

    def put(buf, r, arr):
        arr = jnp.asarray(arr, jnp.float32)
        if arr.ndim == 1:
            arr = arr[None, :]
        return buf.at[r:r + arr.shape[0], :arr.shape[1]].set(arr)

    small = put(small, lay["wf"], params["wf"].T)          # (6, 8)
    small = put(small, lay["bf"], params["bf"])
    small = put(small, lay["dec_w"], params["dec_w"])      # (1, 9)
    small = put(small, lay["dec_b"], params["dec_b"])
    small = put(small, lay["pe"], positional_encoding(seq_len))

    scale = 1.0 / math.sqrt(HEAD_DIM)
    # within-head lane swap (head_dim == 2): [1, 0, 3, 2, 5, 4, 7, 6]
    swap = [h * HEAD_DIM + (HEAD_DIM - 1 - e)
            for h in range(NHEAD) for e in range(HEAD_DIM)]

    w1s, b1s, w2s = [], [], []
    for l in range(NUM_LAYERS):
        lp = params["layers"][l]
        d = lay["layers"][l]
        in_w_t = jnp.asarray(lp["in_w"], jnp.float32).T    # (8, 24): [q | k | v] columns
        q_w = in_w_t[:, 0:D_MODEL] * scale
        k_w = in_w_t[:, D_MODEL:2 * D_MODEL]
        v_w = in_w_t[:, 2 * D_MODEL:3 * D_MODEL]
        inb = jnp.asarray(lp["in_b"], jnp.float32)
        q_b = inb[0:D_MODEL] * scale
        k_b = inb[D_MODEL:2 * D_MODEL]
        v_b = inb[2 * D_MODEL:3 * D_MODEL]
        swap_idx = jnp.asarray(swap, jnp.int32)
        inw_ext = jnp.concatenate(
            [q_w, k_w, v_w, q_w[:, swap_idx], k_w[:, swap_idx]], axis=1)   # (8, 40)
        inb_ext = jnp.concatenate(
            [q_b, k_b, v_b, q_b[swap_idx], k_b[swap_idx]], axis=0)         # (40,)
        small = put(small, d["inw"], inw_ext)
        small = put(small, d["inb"], inb_ext)
        small = put(small, d["ow"], lp["out_w"].T)
        small = put(small, d["ob"], lp["out_b"])
        small = put(small, d["b2"], lp["b2"])
        small = put(small, d["ln1w"], lp["ln1w"])
        small = put(small, d["ln1b"], lp["ln1b"])
        small = put(small, d["ln2w"], lp["ln2w"])
        small = put(small, d["ln2b"], lp["ln2b"])
        w1s.append(jnp.asarray(lp["w1"], jnp.float32).T.astype(jnp.bfloat16))  # (8, 2048)
        b1s.append(jnp.asarray(lp["b1"], jnp.float32)[None, :])                # (1, 2048)
        w2s.append(jnp.asarray(lp["w2"], jnp.float32).astype(jnp.bfloat16))    # (8, 2048) lane-dense

    return small, jnp.stack(w1s), jnp.stack(b1s), jnp.stack(w2s)


def _pick_block_b(batch, cap=BLOCK_B_CAP):
    """Batch tile: full batch when small/odd; otherwise a multiple of 8 capped at
    min(cap, batch // 2) so there are always >= 2 grid steps (v7x has two TensorCores;
    the extra step is harmless on single-TC v5e/v6e)."""
    if batch <= 8 or batch % 8 != 0:
        return batch
    half = batch // 2
    limit = min(cap, max(8, half - half % 8))
    bb = limit
    while batch % bb != 0:
        bb -= 8
    return bb


def actor_forward(state, params):
    B, S = state.shape
    T = (S - 1) // D_FEAT
    assert D_FEAT * T + 1 == S

    # glue (pure JAX): slicing / reshape / permute like the PyTorch wrapper
    feature = state[:, :S - 1].reshape(B, D_FEAT, T).transpose(0, 2, 1)   # (B, T, 6)
    xt = state[:, S - 1:]                                                 # (B, 1)
    small, w1s, b1s, w2s = pack_params(params, T)

    block_b = _pick_block_b(B)
    grid = (B // block_b,)
    resident2 = lambda i: (0, 0)
    resident3 = lambda i: (0, 0, 0)

    out = pl.pallas_call(
        actor_kernel,
        out_shape=jax.ShapeDtypeStruct((B, OUT_PAD), jnp.float32),
        grid=grid,
        in_specs=[
            pl.BlockSpec((block_b, T, D_FEAT), lambda i: (i, 0, 0)),   # batch-tiled
            pl.BlockSpec((block_b, 1), lambda i: (i, 0)),              # xt, batch-tiled
            pl.BlockSpec(small.shape, resident2),                      # packed small params
            pl.BlockSpec(w1s.shape, resident3),                        # FF w1 stack (bf16)
            pl.BlockSpec(b1s.shape, resident3),                        # FF b1 stack (f32)
            pl.BlockSpec(w2s.shape, resident3),                        # FF w2 stack (bf16, lane-dense)
        ],
        out_specs=pl.BlockSpec((block_b, OUT_PAD), lambda i: (i, 0)),
        compiler_params=pltpu.CompilerParams(
            dimension_semantics=("parallel",),
            vmem_limit_bytes=VMEM_LIMIT),
    )(feature, xt, small, w1s, b1s, w2s)
    return out[:, :1]


if __name__ == "__main__":
    B = 2
    T = 8
    STATE_DIM = D_FEAT * T + 1       # 49

    key = jax.random.PRNGKey(0)
    k_state, k_params = jax.random.split(key)
    state = jax.random.normal(k_state, (B, STATE_DIM), dtype=jnp.float32)
    params = init_params(k_params)

    out = actor_forward(state, params)
    out = jax.block_until_ready(out)
    assert out.shape == (B, 1) and out.dtype == jnp.float32
    assert bool(jnp.all(jnp.isfinite(out)))
    assert bool(jnp.all((out > 0.0) & (out < 1.0)))   # sigmoid range
    print("KERNEL_OK")
</pallas_src>

<mosaic_0001>
module attributes {stable_mosaic.version = 11 : i64} {
  func.func @actor_kernel(%arg0: i32, %arg1: memref<2x8x6xf32, #tpu.memory_space<vmem>>, %arg2: memref<2x1xf32, #tpu.memory_space<vmem>>, %arg3: memref<184x40xf32, #tpu.memory_space<vmem>>, %arg4: memref<2x8x2048xbf16, #tpu.memory_space<vmem>>, %arg5: memref<2x1x2048xf32, #tpu.memory_space<vmem>>, %arg6: memref<2x8x2048xbf16, #tpu.memory_space<vmem>>, %arg7: memref<2x128xf32, #tpu.memory_space<vmem>>) attributes {dimension_semantics = [#tpu.dimension_semantics<parallel>], iteration_bounds = array<i64: 1>, scalar_prefetch = 0 : i64, scratch_operands = 0 : i64, tpu.core_type = #tpu.core_type<tc>, window_params = [{transform_indices = @transform_0, window_bounds = array<i64: 2, 8, 6>}, {transform_indices = @transform_1, window_bounds = array<i64: 2, 1>}, {pipeline_mode = #tpu.pipeline_mode<synchronous>, transform_indices = @transform_2, window_bounds = array<i64: 184, 40>}, {pipeline_mode = #tpu.pipeline_mode<synchronous>, transform_indices = @transform_3, window_bounds = array<i64: 2, 8, 2048>}, {pipeline_mode = #tpu.pipeline_mode<synchronous>, transform_indices = @transform_4, window_bounds = array<i64: 2, 1, 2048>}, {pipeline_mode = #tpu.pipeline_mode<synchronous>, transform_indices = @transform_5, window_bounds = array<i64: 2, 8, 2048>}, {transform_indices = @transform_6, window_bounds = array<i64: 2, 128>}]} {
    %c0 = arith.constant 0 : index
    %c0_0 = arith.constant 0 : index
    %c0_1 = arith.constant 0 : index
    %0 = vector.load %arg1[%c0, %c0_0, %c0_1] : memref<2x8x6xf32, #tpu.memory_space<vmem>>, vector<2x8x6xf32>
    %1 = vector.shape_cast %0 : vector<2x8x6xf32> to vector<16x6xf32>
    %c0_2 = arith.constant 0 : index
    %c0_3 = arith.constant 0 : index
    %2 = vector.load %arg3[%c0_2, %c0_3] : memref<184x40xf32, #tpu.memory_space<vmem>>, vector<6x8xf32>
    %cst = arith.constant dense<0.000000e+00> : vector<16x8xf32>
    %3 = tpu.matmul %1, %2, %cst {dimension_numbers = #tpu.dot_dimension_numbers<[1], [0], [0], [1], [0, 0, 1, 1], [], []>} : vector<16x6xf32>, vector<6x8xf32>, vector<16x8xf32> -> vector<16x8xf32>
    %c8 = arith.constant 8 : index
    %c0_4 = arith.constant 0 : index
    %4 = vector.load %arg3[%c8, %c0_4] : memref<184x40xf32, #tpu.memory_space<vmem>>, vector<1x8xf32>
    %5 = vector.broadcast %4 : vector<1x8xf32> to vector<16x8xf32>
    %6 = arith.addf %3, %5 : vector<16x8xf32>
    %c32 = arith.constant 32 : index
    %c0_5 = arith.constant 0 : index
    %7 = vector.load %arg3[%c32, %c0_5] : memref<184x40xf32, #tpu.memory_space<vmem>>, vector<8x8xf32>
    %8 = vector.shape_cast %7 : vector<8x8xf32> to vector<1x8x8xf32>
    %9 = vector.shape_cast %8 : vector<1x8x8xf32> to vector<1x8x8xf32>
    %10 = vector.broadcast %9 : vector<1x8x8xf32> to vector<2x8x8xf32>
    %11 = vector.shape_cast %10 : vector<2x8x8xf32> to vector<16x8xf32>
    %12 = arith.addf %6, %11 : vector<16x8xf32>
    %c40 = arith.constant 40 : index
    %c0_6 = arith.constant 0 : index
    %13 = vector.load %arg3[%c40, %c0_6] : memref<184x40xf32, #tpu.memory_space<vmem>>, vector<8x40xf32>
    %cst_7 = arith.constant dense<0.000000e+00> : vector<16x40xf32>
    %14 = tpu.matmul %12, %13, %cst_7 {dimension_numbers = #tpu.dot_dimension_numbers<[1], [0], [0], [1], [0, 0, 1, 1], [], []>} : vector<16x8xf32>, vector<8x40xf32>, vector<16x40xf32> -> vector<16x40xf32>
    %c48 = arith.constant 48 : index
    %c0_8 = arith.constant 0 : index
    %15 = vector.load %arg3[%c48, %c0_8] : memref<184x40xf32, #tpu.memory_space<vmem>>, vector<1x40xf32>
    %16 = vector.broadcast %15 : vector<1x40xf32> to vector<16x40xf32>
    %17 = arith.addf %14, %16 : vector<16x40xf32>
    %18 = vector.extract_strided_slice %17 {offsets = [0, 0], sizes = [16, 8], strides = [1, 1]} : vector<16x40xf32> to vector<16x8xf32>
    %19 = vector.shape_cast %18 : vector<16x8xf32> to vector<2x8x8xf32>
    %20 = vector.extract_strided_slice %17 {offsets = [0, 8], sizes = [16, 8], strides = [1, 1]} : vector<16x40xf32> to vector<16x8xf32>
    %21 = vector.shape_cast %20 : vector<16x8xf32> to vector<2x8x8xf32>
    %22 = vector.extract_strided_slice %17 {offsets = [0, 16], sizes = [16, 8], strides = [1, 1]} : vector<16x40xf32> to vector<16x8xf32>
    %23 = vector.shape_cast %22 : vector<16x8xf32> to vector<2x8x8xf32>
    %24 = vector.extract_strided_slice %17 {offsets = [0, 24], sizes = [16, 8], strides = [1, 1]} : vector<16x40xf32> to vector<16x8xf32>
    %25 = vector.shape_cast %24 : vector<16x8xf32> to vector<2x8x8xf32>
    %26 = vector.extract_strided_slice %17 {offsets = [0, 32], sizes = [16, 8], strides = [1, 1]} : vector<16x40xf32> to vector<16x8xf32>
    %27 = vector.shape_cast %26 : vector<16x8xf32> to vector<2x8x8xf32>
    %28 = vector.shape_cast %19 : vector<2x8x8xf32> to vector<2x8x1x8xf32>
    %29 = vector.shape_cast %21 : vector<2x8x8xf32> to vector<2x1x8x8xf32>
    %30 = vector.broadcast %28 : vector<2x8x1x8xf32> to vector<2x8x8x8xf32>
    %31 = vector.broadcast %29 : vector<2x1x8x8xf32> to vector<2x8x8x8xf32>
    %32 = arith.mulf %30, %31 : vector<2x8x8x8xf32>
    %33 = vector.shape_cast %25 : vector<2x8x8xf32> to vector<2x8x1x8xf32>
    %34 = vector.shape_cast %27 : vector<2x8x8xf32> to vector<2x1x8x8xf32>
    %35 = vector.broadcast %33 : vector<2x8x1x8xf32> to vector<2x8x8x8xf32>
    %36 = vector.broadcast %34 : vector<2x1x8x8xf32> to vector<2x8x8x8xf32>
    %37 = arith.mulf %35, %36 : vector<2x8x8x8xf32>
    %38 = arith.addf %32, %37 : vector<2x8x8x8xf32>
    %cst_9 = arith.constant dense<0xFF800000> : vector<2x8x8xf32>
    %39 = vector.multi_reduction <maximumf>, %38, %cst_9 [2] : vector<2x8x8x8xf32> to vector<2x8x8xf32>
    %40 = vector.shape_cast %39 : vector<2x8x8xf32> to vector<2x8x1x8xf32>
    %41 = vector.broadcast %40 : vector<2x8x1x8xf32> to vector<2x8x8x8xf32>
    %42 = arith.subf %38, %41 : vector<2x8x8x8xf32>
    %43 = math.exp %42 : vector<2x8x8x8xf32>
    %cst_10 = arith.constant dense<0.000000e+00> : vector<2x8x8xf32>
    %44 = vector.multi_reduction <add>, %43, %cst_10 [2] : vector<2x8x8x8xf32> to vector<2x8x8xf32>
    %45 = vector.shape_cast %44 : vector<2x8x8xf32> to vector<2x8x1x8xf32>
    %46 = vector.broadcast %45 : vector<2x8x1x8xf32> to vector<2x8x8x8xf32>
    %47 = arith.divf %43, %46 : vector<2x8x8x8xf32>
    %48 = vector.shape_cast %23 : vector<2x8x8xf32> to vector<2x1x8x8xf32>
    %49 = vector.broadcast %48 : vector<2x1x8x8xf32> to vector<2x8x8x8xf32>
    %50 = arith.mulf %47, %49 : vector<2x8x8x8xf32>
    %cst_11 = arith.constant dense<0.000000e+00> : vector<2x8x8xf32>
    %51 = vector.multi_reduction <add>, %50, %cst_11 [2] : vector<2x8x8x8xf32> to vector<2x8x8xf32>
    %52 = vector.shape_cast %51 : vector<2x8x8xf32> to vector<16x8xf32>
    %c56 = arith.constant 56 : index
    %c0_12 = arith.constant 0 : index
    %53 = vector.load %arg3[%c56, %c0_12] : memref<184x40xf32, #tpu.memory_space<vmem>>, vector<8x8xf32>
    %cst_13 = arith.constant dense<0.000000e+00> : vector<16x8xf32>
    %54 = tpu.matmul %52, %53, %cst_13 {dimension_numbers = #tpu.dot_dimension_numbers<[1], [0], [0], [1], [0, 0, 1, 1], [], []>} : vector<16x8xf32>, vector<8x8xf32>, vector<16x8xf32> -> vector<16x8xf32>
    %c64 = arith.constant 64 : index
    %c0_14 = arith.constant 0 : index
    %55 = vector.load %arg3[%c64, %c0_14] : memref<184x40xf32, #tpu.memory_space<vmem>>, vector<1x8xf32>
    %56 = vector.broadcast %55 : vector<1x8xf32> to vector<16x8xf32>
    %57 = arith.addf %54, %56 : vector<16x8xf32>
    %58 = arith.addf %12, %57 : vector<16x8xf32>
    %c80 = arith.constant 80 : index
    %c0_15 = arith.constant 0 : index
    %59 = vector.load %arg3[%c80, %c0_15] : memref<184x40xf32, #tpu.memory_space<vmem>>, vector<1x8xf32>
    %c88 = arith.constant 88 : index
    %c0_16 = arith.constant 0 : index
    %60 = vector.load %arg3[%c88, %c0_16] : memref<184x40xf32, #tpu.memory_space<vmem>>, vector<1x8xf32>
    %cst_17 = arith.constant dense<0.000000e+00> : vector<16xf32>
    %61 = vector.multi_reduction <add>, %58, %cst_17 [1] : vector<16x8xf32> to vector<16xf32>
    %62 = vector.shape_cast %61 : vector<16xf32> to vector<16x1xf32>
    %cst_18 = arith.constant 8.000000e+00 : f32
    %63 = vector.broadcast %cst_18 : f32 to vector<16x1xf32>
    %64 = arith.divf %62, %63 : vector<16x1xf32>
    %65 = vector.broadcast %64 : vector<16x1xf32> to vector<16x8xf32>
    %66 = arith.subf %58, %65 : vector<16x8xf32>
    %67 = arith.mulf %66, %66 : vector<16x8xf32>
    %cst_19 = arith.constant dense<0.000000e+00> : vector<16xf32>
    %68 = vector.multi_reduction <add>, %67, %cst_19 [1] : vector<16x8xf32> to vector<16xf32>
    %69 = vector.shape_cast %68 : vector<16xf32> to vector<16x1xf32>
    %cst_20 = arith.constant 8.000000e+00 : f32
    %70 = vector.broadcast %cst_20 : f32 to vector<16x1xf32>
    %71 = arith.divf %69, %70 : vector<16x1xf32>
    %cst_21 = arith.constant 9.99999974E-6 : f32
    %72 = vector.broadcast %cst_21 : f32 to vector<16x1xf32>
    %73 = arith.addf %71, %72 : vector<16x1xf32>
    %74 = math.rsqrt %73 : vector<16x1xf32>
    %75 = vector.broadcast %74 : vector<16x1xf32> to vector<16x8xf32>
    %76 = arith.mulf %66, %75 : vector<16x8xf32>
    %77 = vector.broadcast %59 : vector<1x8xf32> to vector<16x8xf32>
    %78 = arith.mulf %76, %77 : vector<16x8xf32>
    %79 = vector.broadcast %60 : vector<1x8xf32> to vector<16x8xf32>
    %80 = arith.addf %78, %79 : vector<16x8xf32>
    %c0_22 = arith.constant 0 : index
    %c0_23 = arith.constant 0 : index
    %c0_24 = arith.constant 0 : index
    %81 = vector.load %arg4[%c0_22, %c0_23, %c0_24] : memref<2x8x2048xbf16, #tpu.memory_space<vmem>>, vector<1x8x2048xbf16>
    %82 = vector.shape_cast %81 : vector<1x8x2048xbf16> to vector<8x2048xbf16>
    %c0_25 = arith.constant 0 : index
    %c0_26 = arith.constant 0 : index
    %c0_27 = arith.constant 0 : index
    %83 = vector.load %arg6[%c0_25, %c0_26, %c0_27] : memref<2x8x2048xbf16, #tpu.memory_space<vmem>>, vector<1x8x2048xbf16>
    %84 = vector.shape_cast %83 : vector<1x8x2048xbf16> to vector<8x2048xbf16>
    %c0_28 = arith.constant 0 : index
    %c0_29 = arith.constant 0 : index
    %c0_30 = arith.constant 0 : index
    %85 = vector.load %arg5[%c0_28, %c0_29, %c0_30] : memref<2x1x2048xf32, #tpu.memory_space<vmem>>, vector<1x1x2048xf32>
    %86 = vector.shape_cast %85 : vector<1x1x2048xf32> to vector<1x2048xf32>
    %87 = arith.truncf %80 : vector<16x8xf32> to vector<16x8xbf16>
    %cst_31 = arith.constant dense<0.000000e+00> : vector<16x2048xf32>
    %88 = tpu.matmul %87, %82, %cst_31 {dimension_numbers = #tpu.dot_dimension_numbers<[1], [0], [0], [1], [0, 0, 1, 1], [], []>} : vector<16x8xbf16>, vector<8x2048xbf16>, vector<16x2048xf32> -> vector<16x2048xf32>
    %89 = vector.broadcast %86 : vector<1x2048xf32> to vector<16x2048xf32>
    %90 = arith.addf %88, %89 : vector<16x2048xf32>
    %cst_32 = arith.constant 0.000000e+00 : f32
    %91 = vector.broadcast %cst_32 : f32 to vector<16x2048xf32>
    %92 = arith.maximumf %90, %91 : vector<16x2048xf32>
    %93 = arith.truncf %92 : vector<16x2048xf32> to vector<16x2048xbf16>
    %cst_33 = arith.constant dense<0.000000e+00> : vector<16x8xf32>
    %94 = tpu.matmul %93, %84, %cst_33 {dimension_numbers = #tpu.dot_dimension_numbers<[1], [1], [0], [0], [0, 0, 1, 0], [], []>} : vector<16x2048xbf16>, vector<8x2048xbf16>, vector<16x8xf32> -> vector<16x8xf32>
    %c72 = arith.constant 72 : index
    %c0_34 = arith.constant 0 : index
    %95 = vector.load %arg3[%c72, %c0_34] : memref<184x40xf32, #tpu.memory_space<vmem>>, vector<1x8xf32>
    %96 = vector.broadcast %95 : vector<1x8xf32> to vector<16x8xf32>
    %97 = arith.addf %94, %96 : vector<16x8xf32>
    %98 = arith.addf %80, %97 : vector<16x8xf32>
    %c96 = arith.constant 96 : index
    %c0_35 = arith.constant 0 : index
    %99 = vector.load %arg3[%c96, %c0_35] : memref<184x40xf32, #tpu.memory_space<vmem>>, vector<1x8xf32>
    %c104 = arith.constant 104 : index
    %c0_36 = arith.constant 0 : index
    %100 = vector.load %arg3[%c104, %c0_36] : memref<184x40xf32, #tpu.memory_space<vmem>>, vector<1x8xf32>
    %cst_37 = arith.constant dense<0.000000e+00> : vector<16xf32>
    %101 = vector.multi_reduction <add>, %98, %cst_37 [1] : vector<16x8xf32> to vector<16xf32>
    %102 = vector.shape_cast %101 : vector<16xf32> to vector<16x1xf32>
    %cst_38 = arith.constant 8.000000e+00 : f32
    %103 = vector.broadcast %cst_38 : f32 to vector<16x1xf32>
    %104 = arith.divf %102, %103 : vector<16x1xf32>
    %105 = vector.broadcast %104 : vector<16x1xf32> to vector<16x8xf32>
    %106 = arith.subf %98, %105 : vector<16x8xf32>
    %107 = arith.mulf %106, %106 : vector<16x8xf32>
    %cst_39 = arith.constant dense<0.000000e+00> : vector<16xf32>
    %108 = vector.multi_reduction <add>, %107, %cst_39 [1] : vector<16x8xf32> to vector<16xf32>
    %109 = vector.shape_cast %108 : vector<16xf32> to vector<16x1xf32>
    %cst_40 = arith.constant 8.000000e+00 : f32
    %110 = vector.broadcast %cst_40 : f32 to vector<16x1xf32>
    %111 = arith.divf %109, %110 : vector<16x1xf32>
    %cst_41 = arith.constant 9.99999974E-6 : f32
    %112 = vector.broadcast %cst_41 : f32 to vector<16x1xf32>
    %113 = arith.addf %111, %112 : vector<16x1xf32>
    %114 = math.rsqrt %113 : vector<16x1xf32>
    %115 = vector.broadcast %114 : vector<16x1xf32> to vector<16x8xf32>
    %116 = arith.mulf %106, %115 : vector<16x8xf32>
    %117 = vector.broadcast %99 : vector<1x8xf32> to vector<16x8xf32>
    %118 = arith.mulf %116, %117 : vector<16x8xf32>
    %119 = vector.broadcast %100 : vector<1x8xf32> to vector<16x8xf32>
    %120 = arith.addf %118, %119 : vector<16x8xf32>
    %c112 = arith.constant 112 : index
    %c0_42 = arith.constant 0 : index
    %121 = vector.load %arg3[%c112, %c0_42] : memref<184x40xf32, #tpu.memory_space<vmem>>, vector<8x40xf32>
    %cst_43 = arith.constant dense<0.000000e+00> : vector<16x40xf32>
    %122 = tpu.matmul %120, %121, %cst_43 {dimension_numbers = #tpu.dot_dimension_numbers<[1], [0], [0], [1], [0, 0, 1, 1], [], []>} : vector<16x8xf32>, vector<8x40xf32>, vector<16x40xf32> -> vector<16x40xf32>
    %c120 = arith.constant 120 : index
    %c0_44 = arith.constant 0 : index
    %123 = vector.load %arg3[%c120, %c0_44] : memref<184x40xf32, #tpu.memory_space<vmem>>, vector<1x40xf32>
    %124 = vector.broadcast %123 : vector<1x40xf32> to vector<16x40xf32>
    %125 = arith.addf %122, %124 : vector<16x40xf32>
    %126 = vector.extract_strided_slice %125 {offsets = [0, 0], sizes = [16, 8], strides = [1, 1]} : vector<16x40xf32> to vector<16x8xf32>
    %127 = vector.shape_cast %126 : vector<16x8xf32> to vector<2x8x8xf32>
    %128 = vector.extract_strided_slice %125 {offsets = [0, 8], sizes = [16, 8], strides = [1, 1]} : vector<16x40xf32> to vector<16x8xf32>
    %129 = vector.shape_cast %128 : vector<16x8xf32> to vector<2x8x8xf32>
    %130 = vector.extract_strided_slice %125 {offsets = [0, 16], sizes = [16, 8], strides = [1, 1]} : vector<16x40xf32> to vector<16x8xf32>
    %131 = vector.shape_cast %130 : vector<16x8xf32> to vector<2x8x8xf32>
    %132 = vector.extract_strided_slice %125 {offsets = [0, 24], sizes = [16, 8], strides = [1, 1]} : vector<16x40xf32> to vector<16x8xf32>
    %133 = vector.shape_cast %132 : vector<16x8xf32> to vector<2x8x8xf32>
    %134 = vector.extract_strided_slice %125 {offsets = [0, 32], sizes = [16, 8], strides = [1, 1]} : vector<16x40xf32> to vector<16x8xf32>
    %135 = vector.shape_cast %134 : vector<16x8xf32> to vector<2x8x8xf32>
    %136 = vector.shape_cast %127 : vector<2x8x8xf32> to vector<2x8x1x8xf32>
    %137 = vector.shape_cast %129 : vector<2x8x8xf32> to vector<2x1x8x8xf32>
    %138 = vector.broadcast %136 : vector<2x8x1x8xf32> to vector<2x8x8x8xf32>
    %139 = vector.broadcast %137 : vector<2x1x8x8xf32> to vector<2x8x8x8xf32>
    %140 = arith.mulf %138, %139 : vector<2x8x8x8xf32>
    %141 = vector.shape_cast %133 : vector<2x8x8xf32> to vector<2x8x1x8xf32>
    %142 = vector.shape_cast %135 : vector<2x8x8xf32> to vector<2x1x8x8xf32>
    %143 = vector.broadcast %141 : vector<2x8x1x8xf32> to vector<2x8x8x8xf32>
    %144 = vector.broadcast %142 : vector<2x1x8x8xf32> to vector<2x8x8x8xf32>
    %145 = arith.mulf %143, %144 : vector<2x8x8x8xf32>
    %146 = arith.addf %140, %145 : vector<2x8x8x8xf32>
    %cst_45 = arith.constant dense<0xFF800000> : vector<2x8x8xf32>
    %147 = vector.multi_reduction <maximumf>, %146, %cst_45 [2] : vector<2x8x8x8xf32> to vector<2x8x8xf32>
    %148 = vector.shape_cast %147 : vector<2x8x8xf32> to vector<2x8x1x8xf32>
    %149 = vector.broadcast %148 : vector<2x8x1x8xf32> to vector<2x8x8x8xf32>
    %150 = arith.subf %146, %149 : vector<2x8x8x8xf32>
    %151 = math.exp %150 : vector<2x8x8x8xf32>
    %cst_46 = arith.constant dense<0.000000e+00> : vector<2x8x8xf32>
    %152 = vector.multi_reduction <add>, %151, %cst_46 [2] : vector<2x8x8x8xf32> to vector<2x8x8xf32>
    %153 = vector.shape_cast %152 : vector<2x8x8xf32> to vector<2x8x1x8xf32>
    %154 = vector.broadcast %153 : vector<2x8x1x8xf32> to vector<2x8x8x8xf32>
    %155 = arith.divf %151, %154 : vector<2x8x8x8xf32>
    %156 = vector.shape_cast %131 : vector<2x8x8xf32> to vector<2x1x8x8xf32>
    %157 = vector.broadcast %156 : vector<2x1x8x8xf32> to vector<2x8x8x8xf32>
    %158 = arith.mulf %155, %157 : vector<2x8x8x8xf32>
    %cst_47 = arith.constant dense<0.000000e+00> : vector<2x8x8xf32>
    %159 = vector.multi_reduction <add>, %158, %cst_47 [2] : vector<2x8x8x8xf32> to vector<2x8x8xf32>
    %160 = vector.shape_cast %159 : vector<2x8x8xf32> to vector<16x8xf32>
    %c128 = arith.constant 128 : index
    %c0_48 = arith.constant 0 : index
    %161 = vector.load %arg3[%c128, %c0_48] : memref<184x40xf32, #tpu.memory_space<vmem>>, vector<8x8xf32>
    %cst_49 = arith.constant dense<0.000000e+00> : vector<16x8xf32>
    %162 = tpu.matmul %160, %161, %cst_49 {dimension_numbers = #tpu.dot_dimension_numbers<[1], [0], [0], [1], [0, 0, 1, 1], [], []>} : vector<16x8xf32>, vector<8x8xf32>, vector<16x8xf32> -> vector<16x8xf32>
    %c136 = arith.constant 136 : index
    %c0_50 = arith.constant 0 : index
    %163 = vector.load %arg3[%c136, %c0_50] : memref<184x40xf32, #tpu.memory_space<vmem>>, vector<1x8xf32>
    %164 = vector.broadcast %163 : vector<1x8xf32> to vector<16x8xf32>
    %165 = arith.addf %162, %164 : vector<16x8xf32>
    %166 = arith.addf %120, %165 : vector<16x8xf32>
    %c152 = arith.constant 152 : index
    %c0_51 = arith.constant 0 : index
    %167 = vector.load %arg3[%c152, %c0_51] : memref<184x40xf32, #tpu.memory_space<vmem>>, vector<1x8xf32>
    %c160 = arith.constant 160 : index
    %c0_52 = arith.constant 0 : index
    %168 = vector.load %arg3[%c160, %c0_52] : memref<184x40xf32, #tpu.memory_space<vmem>>, vector<1x8xf32>
    %cst_53 = arith.constant dense<0.000000e+00> : vector<16xf32>
    %169 = vector.multi_reduction <add>, %166, %cst_53 [1] : vector<16x8xf32> to vector<16xf32>
    %170 = vector.shape_cast %169 : vector<16xf32> to vector<16x1xf32>
    %cst_54 = arith.constant 8.000000e+00 : f32
    %171 = vector.broadcast %cst_54 : f32 to vector<16x1xf32>
    %172 = arith.divf %170, %171 : vector<16x1xf32>
    %173 = vector.broadcast %172 : vector<16x1xf32> to vector<16x8xf32>
    %174 = arith.subf %166, %173 : vector<16x8xf32>
    %175 = arith.mulf %174, %174 : vector<16x8xf32>
    %cst_55 = arith.constant dense<0.000000e+00> : vector<16xf32>
    %176 = vector.multi_reduction <add>, %175, %cst_55 [1] : vector<16x8xf32> to vector<16xf32>
    %177 = vector.shape_cast %176 : vector<16xf32> to vector<16x1xf32>
    %cst_56 = arith.constant 8.000000e+00 : f32
    %178 = vector.broadcast %cst_56 : f32 to vector<16x1xf32>
    %179 = arith.divf %177, %178 : vector<16x1xf32>
    %cst_57 = arith.constant 9.99999974E-6 : f32
    %180 = vector.broadcast %cst_57 : f32 to vector<16x1xf32>
    %181 = arith.addf %179, %180 : vector<16x1xf32>
    %182 = math.rsqrt %181 : vector<16x1xf32>
    %183 = vector.broadcast %182 : vector<16x1xf32> to vector<16x8xf32>
    %184 = arith.mulf %174, %183 : vector<16x8xf32>
    %185 = vector.broadcast %167 : vector<1x8xf32> to vector<16x8xf32>
    %186 = arith.mulf %184, %185 : vector<16x8xf32>
    %187 = vector.broadcast %168 : vector<1x8xf32> to vector<16x8xf32>
    %188 = arith.addf %186, %187 : vector<16x8xf32>
    %c1 = arith.constant 1 : index
    %c0_58 = arith.constant 0 : index
    %c0_59 = arith.constant 0 : index
    %189 = vector.load %arg4[%c1, %c0_58, %c0_59] : memref<2x8x2048xbf16, #tpu.memory_space<vmem>>, vector<1x8x2048xbf16>
    %190 = vector.shape_cast %189 : vector<1x8x2048xbf16> to vector<8x2048xbf16>
    %c1_60 = arith.constant 1 : index
    %c0_61 = arith.constant 0 : index
    %c0_62 = arith.constant 0 : index
    %191 = vector.load %arg6[%c1_60, %c0_61, %c0_62] : memref<2x8x2048xbf16, #tpu.memory_space<vmem>>, vector<1x8x2048xbf16>
    %192 = vector.shape_cast %191 : vector<1x8x2048xbf16> to vector<8x2048xbf16>
    %c1_63 = arith.constant 1 : index
    %c0_64 = arith.constant 0 : index
    %c0_65 = arith.constant 0 : index
    %193 = vector.load %arg5[%c1_63, %c0_64, %c0_65] : memref<2x1x2048xf32, #tpu.memory_space<vmem>>, vector<1x1x2048xf32>
    %194 = vector.shape_cast %193 : vector<1x1x2048xf32> to vector<1x2048xf32>
    %195 = arith.truncf %188 : vector<16x8xf32> to vector<16x8xbf16>
    %cst_66 = arith.constant dense<0.000000e+00> : vector<16x2048xf32>
    %196 = tpu.matmul %195, %190, %cst_66 {dimension_numbers = #tpu.dot_dimension_numbers<[1], [0], [0], [1], [0, 0, 1, 1], [], []>} : vector<16x8xbf16>, vector<8x2048xbf16>, vector<16x2048xf32> -> vector<16x2048xf32>
    %197 = vector.broadcast %194 : vector<1x2048xf32> to vector<16x2048xf32>
    %198 = arith.addf %196, %197 : vector<16x2048xf32>
    %cst_67 = arith.constant 0.000000e+00 : f32
    %199 = vector.broadcast %cst_67 : f32 to vector<16x2048xf32>
    %200 = arith.maximumf %198, %199 : vector<16x2048xf32>
    %201 = arith.truncf %200 : vector<16x2048xf32> to vector<16x2048xbf16>
    %cst_68 = arith.constant dense<0.000000e+00> : vector<16x8xf32>
    %202 = tpu.matmul %201, %192, %cst_68 {dimension_numbers = #tpu.dot_dimension_numbers<[1], [1], [0], [0], [0, 0, 1, 0], [], []>} : vector<16x2048xbf16>, vector<8x2048xbf16>, vector<16x8xf32> -> vector<16x8xf32>
    %c144 = arith.constant 144 : index
    %c0_69 = arith.constant 0 : index
    %203 = vector.load %arg3[%c144, %c0_69] : memref<184x40xf32, #tpu.memory_space<vmem>>, vector<1x8xf32>
    %204 = vector.broadcast %203 : vector<1x8xf32> to vector<16x8xf32>
    %205 = arith.addf %202, %204 : vector<16x8xf32>
    %206 = arith.addf %188, %205 : vector<16x8xf32>
    %c168 = arith.constant 168 : index
    %c0_70 = arith.constant 0 : index
    %207 = vector.load %arg3[%c168, %c0_70] : memref<184x40xf32, #tpu.memory_space<vmem>>, vector<1x8xf32>
    %c176 = arith.constant 176 : index
    %c0_71 = arith.constant 0 : index
    %208 = vector.load %arg3[%c176, %c0_71] : memref<184x40xf32, #tpu.memory_space<vmem>>, vector<1x8xf32>
    %cst_72 = arith.constant dense<0.000000e+00> : vector<16xf32>
    %209 = vector.multi_reduction <add>, %206, %cst_72 [1] : vector<16x8xf32> to vector<16xf32>
    %210 = vector.shape_cast %209 : vector<16xf32> to vector<16x1xf32>
    %cst_73 = arith.constant 8.000000e+00 : f32
    %211 = vector.broadcast %cst_73 : f32 to vector<16x1xf32>
    %212 = arith.divf %210, %211 : vector<16x1xf32>
    %213 = vector.broadcast %212 : vector<16x1xf32> to vector<16x8xf32>
    %214 = arith.subf %206, %213 : vector<16x8xf32>
    %215 = arith.mulf %214, %214 : vector<16x8xf32>
    %cst_74 = arith.constant dense<0.000000e+00> : vector<16xf32>
    %216 = vector.multi_reduction <add>, %215, %cst_74 [1] : vector<16x8xf32> to vector<16xf32>
    %217 = vector.shape_cast %216 : vector<16xf32> to vector<16x1xf32>
    %cst_75 = arith.constant 8.000000e+00 : f32
    %218 = vector.broadcast %cst_75 : f32 to vector<16x1xf32>
    %219 = arith.divf %217, %218 : vector<16x1xf32>
    %cst_76 = arith.constant 9.99999974E-6 : f32
    %220 = vector.broadcast %cst_76 : f32 to vector<16x1xf32>
    %221 = arith.addf %219, %220 : vector<16x1xf32>
    %222 = math.rsqrt %221 : vector<16x1xf32>
    %223 = vector.broadcast %222 : vector<16x1xf32> to vector<16x8xf32>
    %224 = arith.mulf %214, %223 : vector<16x8xf32>
    %225 = vector.broadcast %207 : vector<1x8xf32> to vector<16x8xf32>
    %226 = arith.mulf %224, %225 : vector<16x8xf32>
    %227 = vector.broadcast %208 : vector<1x8xf32> to vector<16x8xf32>
    %228 = arith.addf %226, %227 : vector<16x8xf32>
    %229 = vector.shape_cast %228 : vector<16x8xf32> to vector<2x8x8xf32>
    %230 = vector.extract_strided_slice %229 {offsets = [0, 7, 0], sizes = [2, 1, 8], strides = [1, 1, 1]} : vector<2x8x8xf32> to vector<2x1x8xf32>
    %231 = vector.shape_cast %230 : vector<2x1x8xf32> to vector<2x8xf32>
    %c16 = arith.constant 16 : index
    %c0_77 = arith.constant 0 : index
    %232 = vector.load %arg3[%c16, %c0_77] : memref<184x40xf32, #tpu.memory_space<vmem>>, vector<1x9xf32>
    %c24 = arith.constant 24 : index
    %c0_78 = arith.constant 0 : index
    %233 = vector.load %arg3[%c24, %c0_78] : memref<184x40xf32, #tpu.memory_space<vmem>>, vector<1x1xf32>
    %c0_79 = arith.constant 0 : index
    %c0_80 = arith.constant 0 : index
    %234 = vector.load %arg2[%c0_79, %c0_80] : memref<2x1xf32, #tpu.memory_space<vmem>>, vector<2x1xf32>
    %235 = vector.extract_strided_slice %232 {offsets = [0, 0], sizes = [1, 8], strides = [1, 1]} : vector<1x9xf32> to vector<1x8xf32>
    %236 = vector.broadcast %235 : vector<1x8xf32> to vector<2x8xf32>
    %237 = arith.mulf %231, %236 : vector<2x8xf32>
    %cst_81 = arith.constant dense<0.000000e+00> : vector<2xf32>
    %238 = vector.multi_reduction <add>, %237, %cst_81 [1] : vector<2x8xf32> to vector<2xf32>
    %239 = vector.shape_cast %238 : vector<2xf32> to vector<2x1xf32>
    %240 = vector.extract_strided_slice %232 {offsets = [0, 8], sizes = [1, 1], strides = [1, 1]} : vector<1x9xf32> to vector<1x1xf32>
    %241 = vector.broadcast %240 : vector<1x1xf32> to vector<2x1xf32>
    %242 = arith.mulf %234, %241 : vector<2x1xf32>
    %243 = arith.addf %239, %242 : vector<2x1xf32>
    %244 = vector.broadcast %233 : vector<1x1xf32> to vector<2x1xf32>
    %245 = arith.addf %243, %244 : vector<2x1xf32>
    %246 = arith.negf %245 : vector<2x1xf32>
    %247 = math.exp %246 : vector<2x1xf32>
    %cst_82 = arith.constant 1.000000e+00 : f32
    %248 = vector.broadcast %cst_82 : f32 to vector<2x1xf32>
    %249 = arith.addf %248, %247 : vector<2x1xf32>
    %250 = arith.divf %248, %249 : vector<2x1xf32>
    %251 = vector.shape_cast %250 : vector<2x1xf32> to vector<2x1xf32>
    %252 = vector.broadcast %251 : vector<2x1xf32> to vector<2x128xf32>
    %c0_83 = arith.constant 0 : index
    %c0_84 = arith.constant 0 : index
    %253 = vector.load %arg7[%c0_83, %c0_84] : memref<2x128xf32, #tpu.memory_space<vmem>>, vector<2x128xf32>
    tpu.vector_store %arg7[%c0_83, %c0_84], %252 {strides = array<i32>} : memref<2x128xf32, #tpu.memory_space<vmem>>, vector<2x128xf32>,
    return
  }
  func.func @transform_0(%arg0: i32) -> (i32, i32, i32) {
    %c0_i32 = arith.constant 0 : i32
    %c0_i32_0 = arith.constant 0 : i32
    %c0_i32_1 = arith.constant 0 : i32
    return %arg0, %c0_i32, %c0_i32_0 : i32, i32, i32
  }
  func.func @transform_1(%arg0: i32) -> (i32, i32) {
    %c0_i32 = arith.constant 0 : i32
    %c0_i32_0 = arith.constant 0 : i32
    return %arg0, %c0_i32 : i32, i32
  }
  func.func @transform_2(%arg0: i32) -> (i32, i32) {
    %c0_i32 = arith.constant 0 : i32
    %c0_i32_0 = arith.constant 0 : i32
    %c0_i32_1 = arith.constant 0 : i32
    return %c0_i32, %c0_i32_0 : i32, i32
  }
  func.func @transform_3(%arg0: i32) -> (i32, i32, i32) {
    %c0_i32 = arith.constant 0 : i32
    %c0_i32_0 = arith.constant 0 : i32
    %c0_i32_1 = arith.constant 0 : i32
    %c0_i32_2 = arith.constant 0 : i32
    return %c0_i32, %c0_i32_0, %c0_i32_1 : i32, i32, i32
  }
  func.func @transform_4(%arg0: i32) -> (i32, i32, i32) {
    %c0_i32 = arith.constant 0 : i32
    %c0_i32_0 = arith.constant 0 : i32
    %c0_i32_1 = arith.constant 0 : i32
    %c0_i32_2 = arith.constant 0 : i32
    return %c0_i32, %c0_i32_0, %c0_i32_1 : i32, i32, i32
  }
  func.func @transform_5(%arg0: i32) -> (i32, i32, i32) {
    %c0_i32 = arith.constant 0 : i32
    %c0_i32_0 = arith.constant 0 : i32
    %c0_i32_1 = arith.constant 0 : i32
    %c0_i32_2 = arith.constant 0 : i32
    return %c0_i32, %c0_i32_0, %c0_i32_1 : i32, i32, i32
  }
  func.func @transform_6(%arg0: i32) -> (i32, i32) {
    %c0_i32 = arith.constant 0 : i32
    %c0_i32_0 = arith.constant 0 : i32
    return %arg0, %c0_i32 : i32, i32
  }
}

</mosaic_0001>

<bundles_post_ra>
// kernel: tpu_custom_call.1
= control target key start
LH: loop header
LB: loop body
LE: loop exit
PB: predicated region body
PF: predicated region fallthrough
CT: control target
= control target key end

     0   :  { %vm40_vm0 = vcmask 1045504   ;;  %vm33_vm1 = vcmask 48128   ;;  %s5810_s0 = inlined_call_operand.vmem [shape: f32[2,8,6], index: 0, kind: input, shape index: {}]   ;;  %s5811_s1 = inlined_call_operand.vmem [shape: f32[2,1], index: 1, kind: input, shape index: {}]   ;;  %s5812_s2 = inlined_call_operand.vmem [shape: f32[184,40], index: 2, kind: input, shape index: {}]   ;;  %s5813_s3 = inlined_call_operand.vmem [shape: bf16[2,8,2048], index: 3, kind: input, shape index: {}]   ;;  %s5814_s4 = inlined_call_operand.vmem [shape: f32[2,1,2048], index: 4, kind: input, shape index: {}]   ;;  %s5815_s5 = inlined_call_operand.vmem [shape: bf16[2,8,2048], index: 5, kind: input, shape index: {}]   ;;  %s5816_s6 = inlined_call_operand.hbm [shape: f32[2,128], index: 6, kind: output, shape index: {}]  }
   0x1   :  { %v27_v0 = vld [vmem:[%s5812_s2] sm:$0x3f]  ;;  %v26_v2 = vld [vmem:[%s5810_s0 + $0x8] sm:$0xff] }
   0x2   :  { %v25_v1 = vld [vmem:[%s5810_s0] sm:$0xff]  ;;  %4328 = vmatprep.subr.msk.mxu0 %vm40_vm0, %v27_v0 }
   0x3   :  { %4330 = vmatprep.mubr.msk.f32.mxu0 %vm33_vm1, %v25_v1 }
   0x4   :  { %11 = vsyncpa [#allocation3], 0  ;;  %4329 = vmatpush3.msk.msra.mxu0 %vm40_vm0, %v27_v0  ;;  %v122_v3 = vld [vmem:[%s5812_s2 + $0x28] sm:$0xff]  ;;  %v119_v7 = vld [vmem:[%s5812_s2 + $0x20] sm:$0xff]  ;;  %vm128_vm2 = vcmask 64512   ;;  %s4601_s10 = smov 120   ;;  %v216_v19 = vlaneseq }
   0x5   :  { %4331 = vmatmul.mubr.msk.f32.vlgmr.msra.gmra.mrb[0].mxu0 %vm33_vm1, %v26_v2  ;;  %4333 = vmatprep.subr.mxu1 %v122_v3  ;;  %v4169_v4 = vld [vmem:[%s5812_s2 + $0x8] ss:$0 sm:$0xff]  ;;  %v4173_v12 = vld [vmem:[%s5812_s2 + $0x30] ss:$0 sm:$0xff]  ;;  %v4602_v17 = vmov 1966171168  }
   0x6   :  { %4334 = vmatpush3.msra.mxu1 %v122_v3  ;;  %v214_v18 = vunpack.c.l.s4 %v4602_v17  ;;  %v4679_v21 = vshrl.u32 %v216_v19, 7  ;;  %s4603_s11 = smov 104   ;;  %s4604_s12 = smov 112   ;;  %vm952_vm3 = vcmask 1041409   ;;  %vm954_vm4 = vcmask 1042434  }
   0x7   :  { %vm956_vm5 = vcmask 1043459   ;;  %vm958_vm6 = vcmask 1044484   ;;  %vm960_vm7 = vcmask 1045509   ;;  %vm962_vm8 = vcmask 1046534  }
   0x8   :  { %v215_v20 = vunpack.c.0.s8 %v214_v18  ;;  %v4689_v26 = vsub.s32 0, %v4679_v21  ;;  %vm964_vm9 = vcmask 1047559   ;;  %vm1239_vm10 = vcmask 1043456  }
   0x9   :  { %vm4107_vm11 = vcmask 64519   ;;  %vm4111_vm12 = vcmask 57344  }
   0xa   :  { %v4682_v22 = vsub.s32 %v215_v20, %v4679_v21 }
  0xd8   :  { %v4332_v5 = vpop.f32.mrb[0].mxu0 }
  0xd9   :  { %v116_v6 = vadd.f32 %v4332_v5, %v4169_v4  ;;  %v110_v8 = vpop.f32.mrb[1].mxu0 }
  0xda   :  { %v111_v9 = vadd.f32 %v4169_v4, %v110_v8 }
  0xdb   :  { %v4662_v11 = vadd.f32 %v119_v7, %v116_v6 }
  0xdc   :  { %v4660_v10 = vadd.f32 %v119_v7, %v111_v9 }
  0xde   :  { %4335 = vmatprep.mubr.msk.f32.mxu1 %vm128_vm2, %v4660_v10 }
  0xdf   :  { %4336 = vmatmul.mubr.msk.f32.vlgmr.msra.gmra.mrb[0].mxu1 %vm128_vm2, %v4662_v11 }
 0x1b2   :  { %v4337_v13 = vpop.f32.mrb[0].mxu1 }
 0x1b3   :  { %v201_v14 = vpop.f32.mrb[1].mxu1  ;;  %v4675_v16 = vadd.f32 %v4337_v13, %v4173_v12 }
 0x1b4   :  { %v4671_v15 = vadd.f32 %v4173_v12, %v201_v14 }
 0x1b5   :  { %v268_v23 = vrot.slane %v4675_v16, %v4682_v22  ;;  %v261_v30 = vcombine.high %v4675_v16, %v4675_v16 }
 0x1b6   :  { %390 = vrot.lane.b32.xlu0 %v4671_v15, %s4601_s10  ;;  %v219_v25 = vrot.slane %v4671_v15, %v4682_v22  ;;  %v212_v39 = vcombine.high %v4671_v15, %v4671_v15 }
 0x1b7   :  { %v276_v24 = vcombine.high %v268_v23, %v268_v23  ;;  %v284_v28 = vrot.slane %v268_v23, %v4682_v22  ;;  %v275_v41 = vrot.slane %v261_v30, %v4682_v22 }
 0x1b8   :  { %v235_v31 = vrot.slane %v219_v25, %v4682_v22  ;;  %v227_v35 = vcombine.high %v219_v25, %v219_v25  ;;  %v226_v48 = vrot.slane %v212_v39, %v4682_v22 }
 0x1b9   :  { %v298_v27 = vrot.slane %v276_v24, %v4682_v22  ;;  %v306_v33 = vcombine.high %v284_v28, %v284_v28  ;;  %v345_v34 = vrot.slane %v284_v28, %v4689_v26  ;;  %v291_v47 = vrot.slane %v275_v41, %v4682_v22 }
 0x1ba   :  { %392 = vrot.lane.b32.xlu0 %v4675_v16, %s4601_s10  ;;  %v313_v40 = vrot.slane %v235_v31, %v4689_v26  ;;  %v249_v44 = vrot.slane %v227_v35, %v4682_v22  ;;  %v257_v55 = vcombine.high %v235_v31, %v235_v31  ;;  %v242_v56 = vrot.slane %v226_v48, %v4682_v22 }
 0x1bb   :  { %v349_v32 = vrot.slane %v298_v27, %v4689_v26  ;;  %v353_v42 = vrot.slane %v306_v33, %v4689_v26  ;;  %v308_v43 = vcombine.high %v298_v27, %v298_v27  ;;  %v361_v54 = vrot.slane %v291_v47, %v4689_v26  ;;  %v930_v27 = vld [vmem:[%s5812_s2 + $0x38] sm:$0xff] }
 0x1bc   :  { %v317_v50 = vrot.slane %v249_v44, %v4689_v26  ;;  %v259_v51 = vcombine.high %v249_v44, %v249_v44  ;;  %v277_v58 = vcombine.high %v275_v41, %v275_v41  ;;  %v228_v59 = vcombine.high %v226_v48, %v226_v48  ;;  %4338 = vmatprep.subr.mxu0 %v930_v27 }
 0x1bd   :  { %v357_v49 = vrot.slane %v308_v43, %v4689_v26  ;;  %v321_v62 = vrot.slane %v257_v55, %v4689_v26  ;;  %v329_v63 = vrot.slane %v242_v56, %v4689_v26  ;;  %v307_v4 = vcombine.high %v291_v47, %v291_v47  ;;  %4339 = vmatpush3.msra.mxu0 %v930_v27 }
 0x1be   :  { %v325_v57 = vrot.slane %v259_v51, %v4689_v26  ;;  %v305_v0 = vrot.slane %v277_v58, %v4682_v22  ;;  %v256_v1 = vrot.slane %v228_v59, %v4682_v22  ;;  %v258_v7 = vcombine.high %v242_v56, %v242_v56 }
 0x1bf   :  { %v369_v12 = vrot.slane %v307_v4, %v4689_v26 }
 0x1c0   :  { %v365_v5 = vrot.slane %v305_v0, %v4689_v26  ;;  %v333_v6 = vrot.slane %v256_v1, %v4689_v26  ;;  %v337_v13 = vrot.slane %v258_v7, %v4689_v26  ;;  %v260_v14 = vcombine.high %v256_v1, %v256_v1 }
 0x1c1   :  { %v309_v20 = vcombine.high %v305_v0, %v305_v0 }
 0x1c2   :  { %v341_v19 = vrot.slane %v260_v14, %v4689_v26 }
 0x1c3   :  { %v373_v24 = vrot.slane %v309_v20, %v4689_v26 }
 0x228   :  { %v4693_v29 = vpop.permute.xlu0 %390 }
 0x229   :  { %v4722_v46 = vmul.f32 %v4693_v29, %v313_v40  ;;  %v4736_v53 = vmul.f32 %v4693_v29, %v317_v50  ;;  %v4749_v61 = vmul.f32 %v4693_v29, %v325_v57  ;;  %v4760_v2 = vmul.f32 %v4693_v29, %v321_v62 }
 0x22a   :  { %v4763_v3 = vmul.f32 %v4693_v29, %v329_v63  ;;  %v4775_v9 = vmul.f32 %v4693_v29, %v333_v6  ;;  %v4787_v18 = vmul.f32 %v4693_v29, %v337_v13  ;;  %v4795_v23 = vmul.f32 %v4693_v29, %v341_v19 }
 0x22c   :  { %v4700_v36 = vpop.permute.xlu0 %392 }
 0x22d   :  { %v4703_v37 = vmul.f32 %v4700_v36, %v349_v32  ;;  %v4706_v38 = vmul.f32 %v4700_v36, %v345_v34  ;;  %v4719_v45 = vmul.f32 %v4700_v36, %v353_v42  ;;  %v4733_v52 = vmul.f32 %v4700_v36, %v357_v49 }
 0x22e   :  { %v4746_v60 = vmul.f32 %v4700_v36, %v361_v54  ;;  %v4772_v8 = vmul.f32 %v4700_v36, %v365_v5  ;;  %v4784_v17 = vmul.f32 %v4700_v36, %v369_v12  ;;  %v4803_v25 = vmul.f32 %v4700_v36, %v373_v24 }
 0x22f   :  { %446 = vrot.lane.b32.xlu0 %v4703_v37, %s4603_s11  ;;  %444 = vrot.lane.b32.xlu1 %v4706_v38, %s4603_s11 }
 0x233   :  { %448 = vrot.lane.b32.xlu0 %v4719_v45, %s4603_s11  ;;  %428 = vrot.lane.b32.xlu1 %v4722_v46, %s4603_s11 }
 0x237   :  { %450 = vrot.lane.b32.xlu0 %v4733_v52, %s4603_s11  ;;  %430 = vrot.lane.b32.xlu1 %v4736_v53, %s4603_s11 }
 0x23b   :  { %452 = vrot.lane.b32.xlu0 %v4746_v60, %s4603_s11  ;;  %434 = vrot.lane.b32.xlu1 %v4749_v61, %s4603_s11 }
 0x23f   :  { %432 = vrot.lane.b32.xlu0 %v4760_v2, %s4603_s11  ;;  %436 = vrot.lane.b32.xlu1 %v4763_v3, %s4603_s11 }
 0x243   :  { %454 = vrot.lane.b32.xlu0 %v4772_v8, %s4603_s11  ;;  %438 = vrot.lane.b32.xlu1 %v4775_v9, %s4603_s11 }
 0x247   :  { %456 = vrot.lane.b32.xlu0 %v4784_v17, %s4603_s11  ;;  %440 = vrot.lane.b32.xlu1 %v4787_v18, %s4603_s11 }
 0x24b   :  { %796 = vrot.lane.b32.xlu0 %v4671_v15, %s4604_s12  ;;  %442 = vrot.lane.b32.xlu1 %v4795_v23, %s4603_s11 }
 0x24f   :  { %458 = vrot.lane.b32.xlu1 %v4803_v25, %s4603_s11 }
 0x253   :  { %798 = vrot.lane.b32.xlu1 %v4675_v16, %s4604_s12 }
 0x2a1   :  { %v447_v15 = vpop.permute.xlu0 %446  ;;  %v445_v28 = vpop.permute.xlu1 %444 }
 0x2a2   :  { %v4813_v29 = vadd.f32 %v447_v15, %v4703_v37  ;;  %v4816_v30 = vadd.f32 %v445_v28, %v4706_v38 }
 0x2a4   :  { %v555_v31 = vsel %vm128_vm2, %v4813_v29, -inf  ;;  %v548_v16 = vsel %vm128_vm2, %v4816_v30, -inf }
 0x2a5   :  { %v556_v32 = vrot.slane %v555_v31, 4  ;;  %v549_v33 = vrot.slane %v548_v16, 4  ;;  %v449_v34 = vpop.permute.xlu0 %448  ;;  %v429_v35 = vpop.permute.xlu1 %428 }
 0x2a6   :  { %v4823_v36 = vadd.f32 %v449_v34, %v4719_v45  ;;  %v476_v39 = vadd.f32 %v429_v35, %v4722_v46 }
 0x2a7   :  { %v557_v37 = vmax.f32 %v555_v31, %v556_v32  ;;  %v550_v40 = vmax.f32 %v548_v16, %v549_v33 }
 0x2a8   :  { %v562_v38 = vsel %vm128_vm2, %v4823_v36, -inf  ;;  %v492_v41 = vsel %vm128_vm2, %v476_v39, -inf }
 0x2a9   :  { %v558_v42 = vrot.slane %v557_v37, 2  ;;  %v551_v43 = vrot.slane %v550_v40, 2  ;;  %v563_v44 = vrot.slane %v562_v38, 4  ;;  %v493_v47 = vrot.slane %v492_v41, 4  ;;  %v451_v48 = vpop.permute.xlu0 %450  ;;  %v431_v49 = vpop.permute.xlu1 %430 }
 0x2aa   :  { %v4830_v50 = vadd.f32 %v451_v48, %v4733_v52  ;;  %v4833_v45 = vadd.f32 %v431_v49, %v4736_v53 }
 0x2ab   :  { %v559_v46 = vmax.f32 %v557_v37, %v558_v42  ;;  %v552_v51 = vmax.f32 %v550_v40, %v551_v43  ;;  %v564_v54 = vmax.f32 %v562_v38, %v563_v44  ;;  %v494_v55 = vmax.f32 %v492_v41, %v493_v47 }
 0x2ac   :  { %v569_v56 = vsel %vm128_vm2, %v4830_v50, -inf  ;;  %v499_v57 = vsel %vm128_vm2, %v4833_v45, -inf }
 0x2ad   :  { %v560_v58 = vrot.slane %v559_v46, 1  ;;  %v565_v59 = vrot.slane %v564_v54, 2  ;;  %v495_v62 = vrot.slane %v494_v55, 2  ;;  %v453_v63 = vpop.permute.xlu0 %452  ;;  %v435_v0 = vpop.permute.xlu1 %434  ;;  %v570_v52 = vrot.slane %v569_v56, 4 }
 0x2ae   :  { %v500_v1 = vrot.slane %v499_v57, 4  ;;  %v4840_v53 = vadd.f32 %v453_v63, %v4746_v60  ;;  %v4843_v4 = vadd.f32 %v435_v0, %v4749_v61  ;;  %v553_v5 = vrot.slane %v552_v51, 1 }
 0x2af   :  { %v566_v6 = vmax.f32 %v564_v54, %v565_v59  ;;  %v496_v7 = vmax.f32 %v494_v55, %v495_v62  ;;  %v571_v12 = vmax.f32 %v569_v56, %v570_v52  ;;  %v561_v20 = vmax.f32 %v559_v46, %v560_v58 }
 0x2b0   :  { %v501_v13 = vmax.f32 %v499_v57, %v500_v1  ;;  %v576_v14 = vsel %vm128_vm2, %v4840_v53, -inf  ;;  %v513_v19 = vsel %vm128_vm2, %v4843_v4, -inf  ;;  %v554_v61 = vmax.f32 %v552_v51, %v553_v5 }
 0x2b1   :  { %v497_v24 = vrot.slane %v496_v7, 1  ;;  %v433_v27 = vpop.permute.xlu0 %432  ;;  %v572_v15 = vrot.slane %v571_v12, 2  ;;  %v577_v28 = vrot.slane %v576_v14, 4  ;;  %v514_v31 = vrot.slane %v513_v19, 4  ;;  %v437_v44 = vpop.permute.xlu1 %436 }
 0x2b2   :  { %v502_v60 = vrot.slane %v501_v13, 2  ;;  %v567_v32 = vrot.slane %v566_v6, 1  ;;  %v613_v37 = vsub.f32 %v4813_v29, %v561_v20  ;;  %v4851_v38 = vadd.f32 %v433_v27, %v4760_v2 }
 0x2b3   :  { %v498_v16 = vmax.f32 %v496_v7, %v497_v24  ;;  %v578_v34 = vmax.f32 %v576_v14, %v577_v28  ;;  %v515_v35 = vmax.f32 %v513_v19, %v514_v31  ;;  %v573_v41 = vmax.f32 %v571_v12, %v572_v15 }
 0x2b4   :  { %v503_v33 = vmax.f32 %v501_v13, %v502_v60  ;;  %v506_v46 = vsel %vm128_vm2, %v4851_v38, -inf  ;;  %v612_v51 = vsub.f32 %v4816_v30, %v554_v61  ;;  %v568_v54 = vmax.f32 %v566_v6, %v567_v32 }
 0x2b5   :  { %v604_v40 = vsub.f32 %v476_v39, %v498_v16  ;;  %v579_v43 = vrot.slane %v578_v34, 2  ;;  %v455_v47 = vpop.permute.xlu0 %454  ;;  %v516_v49 = vrot.slane %v515_v35, 2  ;;  %v507_v56 = vrot.slane %v506_v46, 4  ;;  %v439_v27 = vpop.permute.xlu1 %438 }
 0x2b6   :  { %v504_v42 = vrot.slane %v503_v33, 1  ;;  %v638_v29 = vmul.f32 1.442695, %v613_v37  ;;  %v480_v2 = vadd.f32 %v437_v44, %v4763_v3  ;;  %v4858_v57 = vadd.f32 %v455_v47, %v4772_v8 }
 0x2b7   :  { %v620_v48 = vmul.f32 1.442695, %v604_v40  ;;  %v517_v39 = vmax.f32 %v515_v35, %v516_v49  ;;  %v574_v58 = vrot.slane %v573_v41, 1  ;;  %v580_v62 = vmax.f32 %v578_v34, %v579_v43 }
 0x2b8   :  { %v505_v55 = vmax.f32 %v503_v33, %v504_v42  ;;  %v508_v0 = vmax.f32 %v506_v46, %v507_v56  ;;  %v520_v52 = vsel %vm128_vm2, %v480_v2, -inf  ;;  %v583_v30 = vsel %vm128_vm2, %v4858_v57, -inf }
 0x2b9   :  { %4425 = vpow2.f32 %v620_v48  ;;  %v518_v63 = vrot.slane %v517_v39, 1  ;;  %v636_v1 = vmul.f32 1.442695, %v612_v51  ;;  %v614_v5 = vsub.f32 %v4823_v36, %v568_v54 }
 0x2ba   :  { %v605_v59 = vsub.f32 %v4833_v45, %v505_v55  ;;  %v521_v3 = vrot.slane %v520_v52, 4  ;;  %v509_v8 = vrot.slane %v508_v0, 2  ;;  %v584_v12 = vrot.slane %v583_v30, 4 }
 0x2bb   :  { %v519_v7 = vmax.f32 %v517_v39, %v518_v63  ;;  %4427 = vpow2.f32 %v638_v29  ;;  %v575_v13 = vmax.f32 %v573_v41, %v574_v58  ;;  %v581_v14 = vrot.slane %v580_v62, 1 }
 0x2bc   :  { %v622_v6 = vmul.f32 1.442695, %v605_v59  ;;  %v522_v45 = vmax.f32 %v520_v52, %v521_v3  ;;  %v510_v20 = vmax.f32 %v508_v0, %v509_v8  ;;  %v585_v24 = vmax.f32 %v583_v30, %v584_v12  ;;  %v457_v59 = vpop.permute.xlu0 %456 }
 0x2bd   :  { %v607_v19 = vsub.f32 %v4843_v4, %v519_v7  ;;  %v640_v15 = vmul.f32 1.442695, %v614_v5  ;;  %v582_v31 = vmax.f32 %v580_v62, %v581_v14  ;;  %v4867_v32 = vadd.f32 %v439_v27, %v4775_v9 }
 0x2be   :  { %4429 = vpow2.f32 %v622_v6  ;;  %v523_v60 = vrot.slane %v522_v45, 2  ;;  %v511_v36 = vrot.slane %v510_v20, 1  ;;  %v586_v16 = vrot.slane %v585_v24, 2 }
 0x2bf   :  { %4431 = vpow2.f32 %v636_v1  ;;  %v626_v28 = vmul.f32 1.442695, %v607_v19  ;;  %v615_v33 = vsub.f32 %v4830_v50, %v575_v13  ;;  %v616_v41 = vsub.f32 %v4840_v53, %v582_v31 }
 0x2c0   :  { %v524_v61 = vmax.f32 %v522_v45, %v523_v60  ;;  %v512_v34 = vmax.f32 %v510_v20, %v511_v36  ;;  %4433 = vpow2.f32 %v640_v15  ;;  %v587_v37 = vmax.f32 %v585_v24, %v586_v16  ;;  %v441_v20 = vpop.permute.xlu1 %440 }
 0x2c1   :  { %4435 = vpow2.f32 %v626_v28  ;;  %v527_v44 = vsel %vm128_vm2, %v4867_v32, -inf  ;;  %v642_v9 = vmul.f32 1.442695, %v615_v33  ;;  %v644_v55 = vmul.f32 1.442695, %v616_v41 }
 0x2c2   :  { %v525_v4 = vrot.slane %v524_v61, 1  ;;  %v606_v40 = vsub.f32 %v4851_v38, %v512_v34  ;;  %v588_v43 = vrot.slane %v587_v37, 1  ;;  %v528_v38 = vrot.slane %v527_v44, 4 }
 0x2c3   :  { %v4870_v35 = vpop.eup %4425  ;;  %v4896_v5 = vadd.f32 %v457_v59, %v4784_v17  ;;  %v4911_v34 = vadd.f32 %v441_v20, %v4787_v18 }
 0x2c4   :  { %v526_v42 = vmax.f32 %v524_v61, %v525_v4  ;;  %v624_v47 = vmul.f32 1.442695, %v606_v40  ;;  %v652_v50 = vsel %vm128_vm2, %v4870_v35, 0.0  ;;  %v589_v51 = vmax.f32 %v587_v37, %v588_v43 }
 0x2c5   :  { %v4876_v48 = vpop.eup %4427  ;;  %v653_v29 = vrot.slane %v652_v50, 4  ;;  %v529_v63 = vmax.f32 %v527_v44, %v528_v38  ;;  %v590_v17 = vsel %vm128_vm2, %v4896_v5, -inf }
 0x2c6   :  { %v608_v49 = vsub.f32 %v480_v2, %v526_v42  ;;  %4437 = vpow2.f32 %v624_v47  ;;  %v715_v56 = vsel %vm128_vm2, %v4876_v48, 0.0  ;;  %v617_v62 = vsub.f32 %v4858_v57, %v589_v51 }
 0x2c7   :  { %4439 = vpow2.f32 %v642_v9  ;;  %v716_v52 = vrot.slane %v715_v56, 4  ;;  %v654_v1 = vadd.f32 %v653_v29, %v652_v50  ;;  %v530_v8 = vrot.slane %v529_v63, 2 }
 0x2c8   :  { %v4880_v46 = vpop.eup %4429  ;;  %v628_v39 = vmul.f32 1.442695, %v608_v49  ;;  %4441 = vpow2.f32 %v644_v55  ;;  %v646_v7 = vmul.f32 1.442695, %v617_v62  ;;  %v591_v61 = vrot.slane %v590_v17, 4 }
 0x2c9   :  { %v4882_v54 = vpop.eup %4431  ;;  %v659_v53 = vsel %vm128_vm2, %v4880_v46, 0.0  ;;  %v717_v12 = vadd.f32 %v716_v52, %v715_v56  ;;  %v655_v45 = vrot.slane %v654_v1, 2  ;;  %v531_v19 = vmax.f32 %v529_v63, %v530_v8 }
 0x2ca   :  { %v660_v58 = vrot.slane %v659_v53, 4  ;;  %v708_v2 = vsel %vm128_vm2, %v4882_v54, 0.0  ;;  %v4891_v0 = vpop.eup %4433  ;;  %4443 = vpow2.f32 %v628_v39  ;;  %v592_v41 = vmax.f32 %v590_v17, %v591_v61 }
 0x2cb   :  { %v4893_v30 = vpop.eup %4435  ;;  %v709_v6 = vrot.slane %v708_v2, 4  ;;  %v722_v57 = vsel %vm128_vm2, %v4891_v0, 0.0  ;;  %4445 = vpow2.f32 %v646_v7  ;;  %v532_v31 = vrot.slane %v531_v19, 1 }
 0x2cc   :  { %v661_v3 = vadd.f32 %v660_v58, %v659_v53  ;;  %v673_v13 = vsel %vm128_vm2, %v4893_v30, 0.0  ;;  %v718_v16 = vrot.slane %v717_v12, 2  ;;  %v723_v33 = vrot.slane %v722_v57, 4  ;;  %v443_v53 = vpop.permute.xlu1 %442 }
 0x2cd   :  { %v710_v24 = vadd.f32 %v709_v6, %v708_v2  ;;  %v674_v28 = vrot.slane %v673_v13, 4  ;;  %v656_v4 = vadd.f32 %v655_v45, %v654_v1  ;;  %v533_v40 = vmax.f32 %v531_v19, %v532_v31 }
 0x2ce   :  { %v662_v27 = vrot.slane %v661_v3, 2  ;;  %v534_v47 = vsel %vm128_vm2, %v4911_v34, -inf  ;;  %v593_v38 = vrot.slane %v592_v41, 2  ;;  %v4922_v55 = vadd.f32 %v718_v16, %v717_v12 }
 0x2cf   :  { %v711_v43 = vrot.slane %v710_v24, 2  ;;  %v675_v49 = vadd.f32 %v674_v28, %v673_v13  ;;  %v609_v18 = vsub.f32 %v4867_v32, %v533_v40  ;;  %v724_v56 = vadd.f32 %v723_v33, %v722_v57 }
 0x2d0   :  { %v4902_v14 = vpop.eup %4437  ;;  %v663_v9 = vadd.f32 %v662_v27, %v661_v3  ;;  %v535_v39 = vrot.slane %v534_v47, 4  ;;  %v657_v58 = vrot.slane %v656_v4, 1  ;;  %v594_v62 = vmax.f32 %v592_v41, %v593_v38 }
 0x2d1   :  { %v666_v15 = vsel %vm128_vm2, %v4902_v14, 0.0  ;;  %v4908_v60 = vpop.eup %4439  ;;  %v630_v2 = vmul.f32 1.442695, %v609_v18  ;;  %v4929_v32 = vadd.f32 %v443_v53, %v4795_v23  ;;  %v676_v7 = vrot.slane %v675_v49, 2 }
 0x2d2   :  { %v667_v36 = vrot.slane %v666_v15, 4  ;;  %v4913_v42 = vpop.eup %4441  ;;  %v729_v44 = vsel %vm128_vm2, %v4908_v60, 0.0  ;;  %v536_v1 = vmax.f32 %v534_v47, %v535_v39  ;;  %v664_v3 = vrot.slane %v663_v9, 1 }
 0x2d3   :  { %v730_v63 = vrot.slane %v729_v44, 4  ;;  %v736_v52 = vsel %vm128_vm2, %v4913_v42, 0.0  ;;  %4447 = vpow2.f32 %v630_v2  ;;  %v712_v12 = vadd.f32 %v711_v43, %v710_v24 }
 0x2d4   :  { %v668_v37 = vadd.f32 %v667_v36, %v666_v15  ;;  %v4919_v50 = vpop.eup %4443  ;;  %v595_v57 = vrot.slane %v594_v62, 1  ;;  %v537_v13 = vrot.slane %v536_v1, 2  ;;  %v541_v45 = vsel %vm128_vm2, %v4929_v32, -inf  ;;  %v459_v15 = vpop.permute.xlu1 %458 }
 0x2d5   :  { %v680_v29 = vsel %vm128_vm2, %v4919_v50, 0.0  ;;  %v4931_v6 = vpop.eup %4445  ;;  %v720_v19 = vrot.slane %v4922_v55, 1  ;;  %v658_v17 = vadd.f32 %v657_v58, %v656_v4  ;;  %v737_v20 = vrot.slane %v736_v52, 4 }
 0x2d6   :  { %v669_v51 = vrot.slane %v668_v37, 2  ;;  %v681_v59 = vrot.slane %v680_v29, 4  ;;  %v743_v23 = vsel %vm128_vm2, %v4931_v6, 0.0  ;;  %v596_v28 = vmax.f32 %v594_v62, %v595_v57 }
 0x2d7   :  { %v538_v36 = vmax.f32 %v536_v1, %v537_v13  ;;  %v542_v31 = vrot.slane %v541_v45, 4  ;;  %v731_v61 = vadd.f32 %v730_v63, %v729_v44  ;;  %v665_v16 = vadd.f32 %v664_v3, %v663_v9 }
 0x2d8   :  { %v670_v8 = vadd.f32 %v669_v51, %v668_v37  ;;  %v682_v27 = vadd.f32 %v681_v59, %v680_v29  ;;  %v677_v24 = vadd.f32 %v676_v7, %v675_v49  ;;  %v725_v37 = vrot.slane %v724_v56, 2 }
 0x2d9   :  { %v618_v40 = vsub.f32 %v4896_v5, %v596_v28  ;;  %v539_v41 = vrot.slane %v538_v36, 1  ;;  %v4940_v43 = vadd.f32 %v459_v15, %v4803_v25  ;;  %v713_v4 = vrot.slane %v712_v12, 1 }
 0x2da   :  { %v671_v33 = vrot.slane %v670_v8, 1  ;;  %v683_v47 = vrot.slane %v682_v27, 2  ;;  %v744_v51 = vrot.slane %v743_v23, 4  ;;  %v543_v18 = vmax.f32 %v541_v45, %v542_v31 }
 0x2db   :  { %4449 = vrcp.f32 %v658_v17  ;;  %v738_v38 = vadd.f32 %v737_v20, %v736_v52  ;;  %v648_v53 = vmul.f32 1.442695, %v618_v40  ;;  %v540_v29 = vmax.f32 %v538_v36, %v539_v41 }
 0x2dc   :  { %v732_v39 = vrot.slane %v731_v61, 2  ;;  %4451 = vrcp.f32 %v665_v16  ;;  %v678_v44 = vrot.slane %v677_v24, 1  ;;  %v672_v9 = vadd.f32 %v671_v33, %v670_v8 }
 0x2dd   :  { %4453 = vpow2.f32 %v648_v53  ;;  %v610_v49 = vsub.f32 %v4911_v34, %v540_v29  ;;  %v544_v5 = vrot.slane %v543_v18, 2  ;;  %v597_v25 = vsel %vm128_vm2, %v4940_v43, -inf  ;;  %v4945_v58 = vpop.eup %4447 }
 0x2de   :  { %v714_v59 = vadd.f32 %v713_v4, %v712_v12  ;;  %v726_v2 = vadd.f32 %v725_v37, %v724_v56  ;;  %v684_v62 = vadd.f32 %v683_v47, %v682_v27  ;;  %v745_v63 = vadd.f32 %v744_v51, %v743_v23 }
 0x2df   :  { %v739_v52 = vrot.slane %v738_v38, 2  ;;  %v687_v1 = vsel %vm128_vm2, %v4945_v58, 0.0  ;;  %v632_v3 = vmul.f32 1.442695, %v610_v49  ;;  %v545_v7 = vmax.f32 %v543_v18, %v544_v5 }
 0x2e0   :  { %v733_v8 = vadd.f32 %v732_v39, %v731_v61  ;;  %4455 = vrcp.f32 %v672_v9  ;;  %v688_v57 = vrot.slane %v687_v1, 4  ;;  %v598_v34 = vrot.slane %v597_v25, 4 }
 0x2e1   :  { %v679_v13 = vadd.f32 %v678_v44, %v677_v24  ;;  %4457 = vpow2.f32 %v632_v3  ;;  %v546_v45 = vrot.slane %v545_v7, 1  ;;  %v685_v17 = vrot.slane %v684_v62, 1 }
 0x2e2   :  { %v746_v20 = vrot.slane %v745_v63, 2  ;;  %v689_v15 = vadd.f32 %v688_v57, %v687_v1  ;;  %v599_v12 = vmax.f32 %v597_v25, %v598_v34  ;;  %v721_v56 = vadd.f32 %v720_v19, %v4922_v55 }
 0x2e3   :  { %v727_v27 = vrot.slane %v726_v2, 1  ;;  %v740_v23 = vadd.f32 %v739_v52, %v738_v38  ;;  %v547_v28 = vmax.f32 %v545_v7, %v546_v45  ;;  %4459 = vrcp.f32 %v714_v59  ;;  %v4961_v52 = vpop.permute.xlu0 %796 }
 0x2e4   :  { %v734_v36 = vrot.slane %v733_v8, 1  ;;  %v690_v31 = vrot.slane %v689_v15, 2  ;;  %v600_v16 = vrot.slane %v599_v12, 2  ;;  %4461 = vrcp.f32 %v679_v13 }
 0x2e5   :  { %v4450_v61 = vpop.eup %4449  ;;  %v611_v33 = vsub.f32 %v4929_v32, %v547_v28  ;;  %v686_v37 = vadd.f32 %v685_v17, %v684_v62  ;;  %v747_v40 = vadd.f32 %v746_v20, %v745_v63  ;;  %4463 = vrcp.f32 %v721_v56 }
 0x2e6   :  { %v4452_v24 = vpop.eup %4451  ;;  %v691_v41 = vadd.f32 %v690_v31, %v689_v15  ;;  %v601_v4 = vmax.f32 %v599_v12, %v600_v16  ;;  %v728_v55 = vadd.f32 %v727_v27, %v726_v2  ;;  %v741_v19 = vrot.slane %v740_v23, 1 }
 0x2e7   :  { %v4951_v47 = vpop.eup %4453  ;;  %v634_v51 = vmul.f32 1.442695, %v611_v33  ;;  %v735_v18 = vadd.f32 %v734_v36, %v733_v8  ;;  %v765_v39 = vmul.f32 %v4450_v61, %v4870_v35  ;;  %v767_v32 = vmul.f32 %v4452_v24, %v4880_v46 }
 0x2e8   :  { %v692_v38 = vrot.slane %v691_v41, 1  ;;  %v750_v53 = vsel %vm128_vm2, %v4951_v47, 0.0  ;;  %v602_v29 = vrot.slane %v601_v4, 1  ;;  %v748_v49 = vrot.slane %v747_v40, 1 }
 0x2e9   :  { %v751_v44 = vrot.slane %v750_v53, 4  ;;  %4465 = vpow2.f32 %v634_v51  ;;  %v742_v2 = vadd.f32 %v741_v19, %v740_v23  ;;  %v802_v3 = vmul.f32 %v4961_v52, %v765_v39 }
 0x2ea   :  { %v4456_v9 = vpop.eup %4455  ;;  %4467 = vrcp.f32 %v686_v37  ;;  %v693_v5 = vadd.f32 %v692_v38, %v691_v41  ;;  %v603_v25 = vmax.f32 %v601_v4, %v602_v29  ;;  %v749_v57 = vadd.f32 %v748_v49, %v747_v40 }
 0x2eb   :  { %v4957_v59 = vpop.eup %4457  ;;  %4469 = vrcp.f32 %v728_v55  ;;  %v752_v62 = vadd.f32 %v751_v44, %v750_v53  ;;  %v769_v8 = vmul.f32 %v4456_v9, %v4902_v14  ;;  %v803_v34 = vmul.f32 %v4961_v52, %v767_v32 }
 0x2ec   :  { %4471 = vrcp.f32 %v693_v5  ;;  %v694_v63 = vsel %vm128_vm2, %v4957_v59, 0.0  ;;  %v619_v35 = vsub.f32 %v4940_v43, %v603_v25  ;;  %v818_v56 = vsel %vm128_vm2, %v802_v3, 0.0 }
 0x2ed   :  { %4473 = vrcp.f32 %v735_v18  ;;  %v753_v46 = vrot.slane %v752_v62, 2  ;;  %v695_v1 = vrot.slane %v694_v63, 4  ;;  %v4460_v7 = vpop.eup %4459  ;;  %v804_v23 = vmul.f32 %v4961_v52, %v769_v8 }
 0x2ee   :  { %v650_v13 = vmul.f32 1.442695, %v619_v35  ;;  %v4462_v45 = vpop.eup %4461  ;;  %4475 = vrcp.f32 %v742_v2  ;;  %v825_v14 = vsel %vm128_vm2, %v803_v34, 0.0  ;;  %v781_v36 = vmul.f32 %v4460_v7, %v4882_v54  ;;  %v4979_v54 = vpop.permute.xlu1 %798 }
 0x2ef   :  { %v754_v17 = vadd.f32 %v753_v46, %v752_v62  ;;  %v696_v20 = vadd.f32 %v695_v1, %v694_v63  ;;  %v4464_v15 = vpop.eup %4463  ;;  %v771_v27 = vmul.f32 %v4462_v45, %v4893_v30  ;;  %v819_v33 = vrot.slane %v818_v56, 4 }
 0x2f0   :  { %4477 = vpow2.f32 %v650_v13  ;;  %v826_v30 = vrot.slane %v825_v14, 4  ;;  %v783_v55 = vmul.f32 %v4464_v15, %v4876_v48  ;;  %v832_v51 = vsel %vm128_vm2, %v804_v23, 0.0 }
 0x2f1   :  { %v755_v12 = vrot.slane %v754_v17, 1  ;;  %v697_v43 = vrot.slane %v696_v20, 2  ;;  %4479 = vrcp.f32 %v749_v57  ;;  %v805_v19 = vmul.f32 %v4961_v52, %v771_v27 }
 0x2f2   :  { %v810_v39 = vmul.f32 %v4979_v54, %v781_v36  ;;  %v820_v9 = vadd.f32 %v819_v33, %v818_v56  ;;  %v827_v48 = vadd.f32 %v826_v30, %v825_v14  ;;  %v833_v5 = vrot.slane %v832_v51, 4 }
 0x2f3   :  { %v4971_v28 = vpop.eup %4465  ;;  %v756_v31 = vadd.f32 %v755_v12, %v754_v17  ;;  %v698_v16 = vadd.f32 %v697_v43, %v696_v20  ;;  %v811_v63 = vmul.f32 %v4979_v54, %v783_v55 }
 0x2f4   :  { %v4468_v61 = vpop.eup %4467  ;;  %v701_v24 = vsel %vm128_vm2, %v4971_v28, 0.0  ;;  %v821_v57 = vrot.slane %v820_v9, 2  ;;  %v828_v34 = vrot.slane %v827_v48, 2  ;;  %v834_v13 = vadd.f32 %v833_v5, %v832_v51 }
 0x2f5   :  { %v4470_v37 = vpop.eup %4469  ;;  %4481 = vrcp.f32 %v756_v31  ;;  %v699_v40 = vrot.slane %v698_v16, 1  ;;  %v702_v41 = vrot.slane %v701_v24, 4  ;;  %v773_v38 = vmul.f32 %v4468_v61, %v4919_v50 }
 0x2f6   :  { %v4472_v4 = vpop.eup %4471  ;;  %v785_v32 = vmul.f32 %v4470_v37, %v4891_v0  ;;  %v839_v50 = vsel %vm128_vm2, %v805_v19, 0.0  ;;  %v881_v12 = vsel %vm128_vm2, %v811_v63, 0.0 }
 0x2f7   :  { %v4474_v18 = vpop.eup %4473  ;;  %v700_v53 = vadd.f32 %v699_v40, %v698_v16  ;;  %v703_v29 = vadd.f32 %v702_v41, %v701_v24  ;;  %v775_v44 = vmul.f32 %v4472_v4, %v4945_v58  ;;  %v806_v35 = vmul.f32 %v4961_v52, %v773_v38 }
 0x2f8   :  { %v4476_v49 = vpop.eup %4475  ;;  %v787_v62 = vmul.f32 %v4474_v18, %v4908_v60  ;;  %v874_v58 = vsel %vm128_vm2, %v810_v39, 0.0  ;;  %v812_v8 = vmul.f32 %v4979_v54, %v785_v32  ;;  %v840_v17 = vrot.slane %v839_v50, 4 }
 0x2f9   :  { %4483 = vrcp.f32 %v700_v53  ;;  %v704_v25 = vrot.slane %v703_v29, 2  ;;  %v789_v3 = vmul.f32 %v4476_v49, %v4913_v42  ;;  %v807_v60 = vmul.f32 %v4961_v52, %v775_v44 }
 0x2fa   :  { %v4985_v2 = vpop.eup %4477  ;;  %v875_v15 = vrot.slane %v874_v58, 4  ;;  %v813_v42 = vmul.f32 %v4979_v54, %v787_v62  ;;  %v846_v23 = vsel %vm128_vm2, %v806_v35, 0.0  ;;  %v888_v31 = vsel %vm128_vm2, %v812_v8, 0.0 }
 0x2fb   :  { %v705_v46 = vadd.f32 %v704_v25, %v703_v29  ;;  %v757_v0 = vsel %vm128_vm2, %v4985_v2, 0.0  ;;  %v4480_v1 = vpop.eup %4479  ;;  %v853_v16 = vsel %vm128_vm2, %v807_v60, 0.0  ;;  %v814_v61 = vmul.f32 %v4979_v54, %v789_v3 }
 0x2fc   :  { %v758_v7 = vrot.slane %v757_v0, 4  ;;  %v791_v56 = vmul.f32 %v4480_v1, %v4931_v6  ;;  %v882_v33 = vrot.slane %v881_v12, 4  ;;  %v835_v24 = vrot.slane %v834_v13, 2 }
 0x2fd   :  { %v706_v45 = vrot.slane %v705_v46, 1  ;;  %v876_v40 = vadd.f32 %v875_v15, %v874_v58  ;;  %v841_v6 = vadd.f32 %v840_v17, %v839_v50  ;;  %v847_v30 = vrot.slane %v846_v23, 4 }
 0x2fe   :  { %v759_v20 = vadd.f32 %v758_v7, %v757_v0  ;;  %v815_v4 = vmul.f32 %v4979_v54, %v791_v56  ;;  %v889_v55 = vrot.slane %v888_v31, 4  ;;  %v854_v19 = vrot.slane %v853_v16, 4 }
 0x2ff   :  { %v4482_v43 = vpop.eup %4481  ;;  %v707_v27 = vadd.f32 %v706_v45, %v705_v46  ;;  %v829_v38 = vadd.f32 %v828_v34, %v827_v48  ;;  %v883_v29 = vadd.f32 %v882_v33, %v881_v12  ;;  %v902_v39 = vsel %vm128_vm2, %v814_v61, 0.0 }
 0x300   :  { %v793_v14 = vmul.f32 %v4482_v43, %v4951_v47  ;;  %v760_v36 = vrot.slane %v759_v20, 2  ;;  %v895_v47 = vsel %vm128_vm2, %v813_v42, 0.0  ;;  %v822_v32 = vadd.f32 %v821_v57, %v820_v9 }
 0x301   :  { %4485 = vrcp.f32 %v707_v27  ;;  %v836_v44 = vadd.f32 %v835_v24, %v834_v13  ;;  %v842_v25 = vrot.slane %v841_v6, 2  ;;  %v848_v62 = vadd.f32 %v847_v30, %v846_v23 }
 0x302   :  { %v761_v37 = vadd.f32 %v760_v36, %v759_v20  ;;  %v816_v53 = vmul.f32 %v4979_v54, %v793_v14  ;;  %v890_v50 = vadd.f32 %v889_v55, %v888_v31  ;;  %v896_v63 = vrot.slane %v895_v47, 4 }
 0x303   :  { %v4484_v41 = vpop.eup %4483  ;;  %v855_v35 = vadd.f32 %v854_v19, %v853_v16  ;;  %v830_v48 = vrot.slane %v829_v38, 1  ;;  %v903_v9 = vrot.slane %v902_v39, 4  ;;  %v823_v58 = vrot.slane %v822_v32, 1 }
 0x304   :  { %v777_v51 = vmul.f32 %v4484_v41, %v4957_v59  ;;  %v762_v18 = vrot.slane %v761_v37, 1  ;;  %v909_v59 = vsel %vm128_vm2, %v815_v4, 0.0  ;;  %v916_v0 = vsel %vm128_vm2, %v816_v53, 0.0 }
 0x305   :  { %v837_v1 = vrot.slane %v836_v44, 1  ;;  %v877_v7 = vrot.slane %v876_v40, 2  ;;  %v843_v8 = vadd.f32 %v842_v25, %v841_v6  ;;  %v849_v60 = vrot.slane %v848_v62, 2 }
 0x306   :  { %v763_v49 = vadd.f32 %v762_v18, %v761_v37  ;;  %v808_v5 = vmul.f32 %v4961_v52, %v777_v51  ;;  %v910_v57 = vrot.slane %v909_v59, 4  ;;  %v884_v13 = vrot.slane %v883_v29, 2 }
 0x307   :  { %v856_v45 = vrot.slane %v855_v35, 2  ;;  %v917_v20 = vrot.slane %v916_v0, 4  ;;  %v891_v12 = vrot.slane %v890_v50, 2  ;;  %v897_v43 = vadd.f32 %v896_v63, %v895_v47 }
 0x308   :  { %4487 = vrcp.f32 %v763_v49  ;;  %v860_v46 = vsel %vm128_vm2, %v808_v5, 0.0  ;;  %v831_v56 = vadd.f32 %v830_v48, %v829_v38  ;;  %v824_v27 = vadd.f32 %v823_v58, %v822_v32 }
 0x309   :  { %v861_v3 = vrot.slane %v860_v46, 4  ;;  %v838_v42 = vadd.f32 %v837_v1, %v836_v44  ;;  %v904_v14 = vadd.f32 %v903_v9, %v902_v39  ;;  %v844_v31 = vrot.slane %v843_v8, 1 }
 0x30a   :  { %v850_v16 = vadd.f32 %v849_v60, %v848_v62  ;;  %v911_v61 = vadd.f32 %v910_v57, %v909_v59  ;;  %v878_v33 = vadd.f32 %v877_v7, %v876_v40  ;;  %v857_v24 = vadd.f32 %v856_v45, %v855_v35 }
 0x30b   :  { %v4486_v34 = vpop.eup %4485  ;;  %v862_v17 = vadd.f32 %v861_v3, %v860_v46  ;;  %v918_v37 = vadd.f32 %v917_v20, %v916_v0  ;;  %v953_v30 = vsel %vm952_vm3, %v831_v56, %v824_v27  ;;  %v898_v41 = vrot.slane %v897_v43, 2 }
 0x30c   :  { %v779_v15 = vmul.f32 %v4486_v34, %v4971_v28  ;;  %v885_v4 = vadd.f32 %v884_v13, %v883_v29  ;;  %v955_v47 = vsel %vm954_vm4, %v838_v42, %v953_v30  ;;  %v905_v19 = vrot.slane %v904_v14, 2 }
 0x30d   :  { %v863_v23 = vrot.slane %v862_v17, 2  ;;  %v851_v18 = vrot.slane %v850_v16, 1  ;;  %v892_v38 = vadd.f32 %v891_v12, %v890_v50  ;;  %v912_v53 = vrot.slane %v911_v61, 2 }
 0x30e   :  { %v809_v36 = vmul.f32 %v4961_v52, %v779_v15  ;;  %v845_v52 = vadd.f32 %v844_v31, %v843_v8  ;;  %v858_v39 = vrot.slane %v857_v24, 1  ;;  %v919_v44 = vrot.slane %v918_v37, 2 }
 0x30f   :  { %v864_v6 = vadd.f32 %v863_v23, %v862_v17  ;;  %v879_v5 = vrot.slane %v878_v33, 1  ;;  %v899_v25 = vadd.f32 %v898_v41, %v897_v43  ;;  %v906_v35 = vadd.f32 %v905_v19, %v904_v14 }
 0x310   :  { %v867_v28 = vsel %vm128_vm2, %v809_v36, 0.0  ;;  %v957_v29 = vsel %vm956_vm5, %v845_v52, %v955_v47  ;;  %v852_v59 = vadd.f32 %v851_v18, %v850_v16  ;;  %v886_v48 = vrot.slane %v885_v4, 1 }
 0x311   :  { %v868_v55 = vrot.slane %v867_v28, 4  ;;  %v865_v49 = vrot.slane %v864_v6, 1  ;;  %v893_v46 = vrot.slane %v892_v38, 1  ;;  %v913_v50 = vadd.f32 %v912_v53, %v911_v61 }
 0x312   :  { %v4488_v51 = vpop.eup %4487  ;;  %v859_v0 = vadd.f32 %v858_v39, %v857_v24  ;;  %v959_v3 = vsel %vm958_vm6, %v852_v59, %v957_v29  ;;  %v900_v7 = vrot.slane %v899_v25, 1  ;;  %v907_v57 = vrot.slane %v906_v35, 1 }
 0x313   :  { %v795_v40 = vmul.f32 %v4488_v51, %v4985_v2  ;;  %v869_v32 = vadd.f32 %v868_v55, %v867_v28  ;;  %v920_v2 = vadd.f32 %v919_v44, %v918_v37  ;;  %v866_v1 = vadd.f32 %v865_v49, %v864_v6 }
 0x314   :  { %v887_v34 = vadd.f32 %v886_v48, %v885_v4  ;;  %v914_v13 = vrot.slane %v913_v50, 1  ;;  %v961_v20 = vsel %vm960_vm7, %v859_v0, %v959_v3  ;;  %v894_v15 = vadd.f32 %v893_v46, %v892_v38  ;;  %v4176_v4 = vld [vmem:[%s5812_s2 + $0x40] ss:$0 sm:$0xff] }
 0x315   :  { %v870_v62 = vrot.slane %v869_v32, 2  ;;  %v817_v63 = vmul.f32 %v4979_v54, %v795_v40  ;;  %v880_v54 = vadd.f32 %v879_v5, %v878_v33  ;;  %v921_v12 = vrot.slane %v920_v2, 1 }
 0x316   :  { %v963_v43 = vsel %vm962_vm8, %v866_v1, %v961_v20  ;;  %v901_v56 = vadd.f32 %v900_v7, %v899_v25  ;;  %v908_v23 = vadd.f32 %v907_v57, %v906_v35  ;;  %v915_v14 = vadd.f32 %v914_v13, %v913_v50  ;;  %v1098_v1 = vld [vmem:[%s5813_s3 + $0x18] sm:$0xff] }
 0x317   :  { %v871_v9 = vadd.f32 %v870_v62, %v869_v32  ;;  %v923_v58 = vsel %vm128_vm2, %v817_v63, 0.0  ;;  %v966_v31 = vsel %vm952_vm3, %v887_v34, %v880_v54  ;;  %v922_v16 = vadd.f32 %v921_v12, %v920_v2  ;;  %v1096_v63 = vld [vmem:[%s5813_s3 + $0x8] sm:$0xff] }
 0x318   :  { %v924_v8 = vrot.slane %v923_v58, 4  ;;  %v967_v61 = vsel %vm954_vm4, %v894_v15, %v966_v31  ;;  %v4184_v48 = vcombine.high %v1096_v63, %v1096_v63  ;;  %v4183_v46 = vcombine.low %v1096_v63, %v1096_v63  ;;  %v1100_v31 = vld [vmem:[%s5813_s3 + $0x28] sm:$0xff] }
 0x319   :  { %v872_v60 = vrot.slane %v871_v9, 1  ;;  %v968_v24 = vsel %vm956_vm5, %v901_v56, %v967_v61  ;;  %v4605_v2 = vmov 0   ;;  %v4188_v3 = vcombine.high %v1098_v1, %v1098_v1 }
 0x31a   :  { %v925_v45 = vadd.f32 %v924_v8, %v923_v58  ;;  %v969_v37 = vsel %vm958_vm6, %v908_v23, %v968_v24  ;;  %4199 = vmatprep.subr.msk.bf16.mxu0 %vm1239_vm10, %v4184_v48  ;;  %v1247_v0 = vsel %vm1239_vm10, %v4183_v46, 0  ;;  %1320 = vmatprep.mubr.bf16.mxu1 %v4605_v2  ;;  %v5142_v63 = vsub.s32 1, %v4679_v21 }
 0x31b   :  { %v873_v17 = vadd.f32 %v872_v60, %v871_v9  ;;  %v970_v28 = vsel %vm960_vm7, %v915_v14, %v969_v37  ;;  %v1097_v9 = vld [vmem:[%s5813_s3 + $0x10] sm:$0xff]  ;;  %4360 = vset.pattern.permute.xlu1 %v4605_v2  ;;  %4359 = vset.pattern.permute.xlu0 %v4605_v2  ;;  %v4192_v37 = vcombine.high %v1100_v31, %v1100_v31 }
 0x31c   :  { %v926_v27 = vrot.slane %v925_v45, 2  ;;  %v971_v30 = vsel %vm962_vm8, %v922_v16, %v970_v28  ;;  %v4186_v58 = vcombine.high %v1097_v9, %v1097_v9  ;;  %v4191_v28 = vcombine.low %v1100_v31, %v1100_v31 }
 0x31d   :  { %v965_v42 = vsel %vm964_vm9, %v873_v17, %v963_v43  ;;  %v4179_v17 = vld [vmem:[%s5812_s2 + $0x50] ss:$0 sm:$0xff]  ;;  %v4180_v43 = vld [vmem:[%s5812_s2 + $0x58] ss:$0 sm:$0xff] }
 0x31e   :  { %4340 = vmatprep.mubr.msk.f32.mxu0 %vm128_vm2, %v965_v42  ;;  %v927_v36 = vadd.f32 %v926_v27, %v925_v45  ;;  %v4185_v27 = vcombine.low %v1097_v9, %v1097_v9  ;;  %v4187_v42 = vcombine.low %v1098_v1, %v1098_v1  ;;  %v5155_v9 = vsub.s32 6, %v4679_v21 }
 0x320   :  { %v928_v33 = vrot.slane %v927_v36, 1  ;;  %v1253_v61 = vsel %vm1239_vm10, %v4185_v27, 0 }
 0x322   :  { %v929_v6 = vadd.f32 %v928_v33, %v927_v36  ;;  %v1099_v36 = vld [vmem:[%s5813_s3 + $0x20] sm:$0xff]  ;;  %v1259_v33 = vsel %vm1239_vm10, %v4187_v42, 0 }
 0x323   :  { %v4190_v24 = vcombine.high %v1099_v36, %v1099_v36 }
 0x324   :  { %v972_v41 = vsel %vm964_vm9, %v929_v6, %v971_v30  ;;  %v4189_v6 = vcombine.low %v1099_v36, %v1099_v36  ;;  %v1101_v30 = vld [vmem:[%s5813_s3 + $0x30] sm:$0xff] }
 0x325   :  { %4341 = vmatmul.mubr.msk.f32.vlgmr.msra.gmra.mrb[2].mxu0 %vm128_vm2, %v972_v41  ;;  %v1102_v41 = vld [vmem:[%s5813_s3 + $0x38] sm:$0xff] }
 0x326   :  { %1332 = vmatpush1.bf16.msra.mxu0 %v1247_v0  ;;  %1363 = vmatprep.mubr.bf16.mxu0 %v4605_v2  ;;  %v5152_v0 = vsub.s32 4, %v4679_v21 }
 0x327   :  { %4203 = vmatprep.subr.msk.bf16.mxu0 %vm1239_vm10, %v4188_v3  ;;  %v5158_v3 = vsub.s32 5, %v4679_v21 }
 0x3f8   :  { %v4342_v55 = vpop.f32.mrb[2].mxu0 }
 0x3f9   :  { %v1049_v47 = vadd.f32 %v4342_v55, %v4176_v4  ;;  %v1043_v19 = vpop.f32.mrb[3].mxu0  ;;  %v1271_v55 = vsel %vm1239_vm10, %v4191_v28, 0 }
 0x3fa   :  { %v1044_v51 = vadd.f32 %v4176_v4, %v1043_v19  ;;  %v1265_v4 = vsel %vm1239_vm10, %v4189_v6, 0  ;;  %v4196_v19 = vcombine.high %v1102_v41, %v1102_v41 }
 0x3fb   :  { %v1053_v52 = vadd.f32 %v1049_v47, %v4662_v11  ;;  %v4194_v47 = vcombine.high %v1101_v30, %v1101_v30 }
 0x3fc   :  { %v1052_v18 = vadd.f32 %v1044_v51, %v4660_v10  ;;  %v1095_v10 = vld [vmem:[%s5813_s3] sm:$0xff]  ;;  %v4193_v51 = vcombine.low %v1101_v30, %v1101_v30 }
 0x3fd   :  { %v1059_v38 = vsel %vm128_vm2, %v1053_v52, 0.0  ;;  %v4182_v35 = vcombine.high %v1095_v10, %v1095_v10  ;;  %v4181_v59 = vcombine.low %v1095_v10, %v1095_v10  ;;  %v1111_v10 = vld [vmem:[%s5814_s4] sm:$0xff] }
 0x3fe   :  { %1060 = vadd.xlane.f32.xlu1 %v1059_v38  ;;  %v1056_v53 = vsel %vm128_vm2, %v1052_v18, 0.0  ;;  %v1123_v46 = vrot.slane %v1111_v10, %v5142_v63  ;;  %v1143_v27 = vrot.slane %v1111_v10, %v5155_v9 }
 0x3ff   :  { %1057 = vadd.xlane.f32.xlu0 %v1056_v53  ;;  %4197 = vmatprep.subr.msk.bf16.mxu1 %vm1239_vm10, %v4182_v35  ;;  %v1241_v50 = vsel %vm1239_vm10, %v4181_v59, 0  ;;  %v1103_v53 = vld [vmem:[%s5815_s5] sm:$0xff]  ;;  %v5145_v35 = vsub.s32 3, %v4679_v21  ;;  %v1119_v59 = vrot.slane %v1111_v10, %v4689_v26 }
 0x400   :  { %1289 = vmatpush1.bf16.msra.mxu1 %v1241_v50 }
 0x401   :  { %4201 = vmatprep.subr.msk.bf16.mxu1 %vm1239_vm10, %v4186_v58  ;;  %v1131_v50 = vrot.slane %v1111_v10, %v5145_v35 }
 0x48b   :  { %v1061_v40 = vpop.xlane.xlu1 %1060 }
 0x48c   :  { %v1064_v39 = vmul.f32 0.125, %v1061_v40  ;;  %v1058_v32 = vpop.xlane.xlu0 %1057  ;;  %v1104_v40 = vld [vmem:[%s5815_s5 + $0x8] sm:$0xff] }
 0x48d   :  { %v1063_v44 = vmul.f32 0.125, %v1058_v32  ;;  %v4217_v32 = vcombine.high %v1104_v40, %v1104_v40 }
 0x48e   :  { %v1066_v49 = vsub.f32 %v1053_v52, %v1064_v39  ;;  %v4195_v52 = vcombine.low %v1102_v41, %v1102_v41  ;;  %v4215_v39 = vcombine.high %v1103_v53, %v1103_v53 }
 0x48f   :  { %v1065_v5 = vsub.f32 %v1052_v18, %v1063_v44  ;;  %v1277_v18 = vsel %vm1239_vm10, %v4193_v51, 0  ;;  %v4214_v44 = vcombine.low %v1103_v53, %v1103_v53 }
 0x490   :  { %v1068_v29 = vmul.f32 %v1066_v49, %v1066_v49  ;;  %v1283_v38 = vsel %vm1239_vm10, %v4195_v52, 0 }
 0x491   :  { %v1067_v25 = vmul.f32 %v1065_v5, %v1065_v5 }
 0x492   :  { %v1072_v11 = vsel %vm128_vm2, %v1068_v29, 0.0 }
 0x493   :  { %v1069_v62 = vsel %vm128_vm2, %v1067_v25, 0.0  ;;  %v5129_v25 = vld [vmem:[%s5815_s5 + $0x18] sm:$0xff] }
 0x494   :  { %1070 = vadd.xlane.f32.xlu0 %v1069_v62  ;;  %v4221_v29 = vcombine.high %v5129_v25, %v5129_v25 }
 0x498   :  { %1073 = vadd.xlane.f32.xlu0 %v1072_v11  ;;  %v5136_v11 = vsub.s32 2, %v4679_v21 }
 0x49a   :  { %v1127_v48 = vrot.slane %v1111_v10, %v5136_v11 }
 0x521   :  { %v1071_v7 = vpop.xlane.xlu0 %1070 }
 0x522   :  { %v1075_v8 = vmul.f32 0.125, %v1071_v7  ;;  %v5161_v7 = vsub.s32 7, %v4679_v21  ;;  %v1139_v21 = vrot.slane %v1111_v10, %v5158_v3 }
 0x524   :  { %v1077_v60 = vadd.f32 1e-05, %v1075_v8  ;;  %v1147_v31 = vrot.slane %v1111_v10, %v5161_v7 }
 0x525   :  { %v1074_v57 = vpop.xlane.xlu0 %1073 }
 0x526   :  { %4489 = vrsqrt.f32 %v1077_v60  ;;  %v1076_v54 = vmul.f32 0.125, %v1074_v57 }
 0x528   :  { %v1078_v34 = vadd.f32 1e-05, %v1076_v54 }
 0x52a   :  { %4491 = vrsqrt.f32 %v1078_v34 }
 0x530   :  { %v4490_v13 = vpop.eup %4489 }
 0x531   :  { %v1081_v45 = vmul.f32 %v4490_v13, %v1065_v5  ;;  %v5124_v5 = vld [vmem:[%s5815_s5 + $0x10] sm:$0xff] }
 0x532   :  { %v4219_v62 = vcombine.high %v5124_v5, %v5124_v5  ;;  %v4218_v51 = vcombine.low %v5124_v5, %v5124_v5 }
 0x533   :  { %v1087_v15 = vmul.f32 %v4179_v17, %v1081_v45 }
 0x534   :  { %v4492_v20 = vpop.eup %4491 }
 0x535   :  { %v1082_v12 = vmul.f32 %v4492_v20, %v1066_v49  ;;  %v5073_v23 = vadd.f32 %v4180_v43, %v1087_v15  ;;  %v4216_v49 = vcombine.low %v1104_v40, %v1104_v40  ;;  %v4220_v40 = vcombine.low %v5129_v25, %v5129_v25 }
 0x537   :  { %v1088_v56 = vmul.f32 %v4179_v17, %v1082_v12 }
 0x539   :  { %v5075_v14 = vadd.f32 %v4180_v43, %v1088_v56  ;;  %v1135_v56 = vrot.slane %v1111_v10, %v5152_v0 }
 0x53b   :  { %v1113_v16 = vpack.c.bf16 %v5075_v14, %v5073_v23 }
 0x53d   :  { %4198 = vmatmul.mubr.msk.bf16.vlgmr.msra.gmra.mrb[4].mxu1 %vm128_vm2, %v1113_v16  ;;  %4200 = vmatmul.mubr.msk.bf16.vlgmr.msra.gmra.mrb[4].mxu0 %vm128_vm2, %v1113_v16 }
 0x53e   :  { %1375 = vmatpush1.bf16.msra.mxu1 %v1253_v61  ;;  %1418 = vmatpush1.bf16.msra.mxu0 %v1259_v33 }
 0x53f   :  { %1406 = vmatprep.mubr.bf16.mxu1 %v4605_v2  ;;  %1449 = vmatprep.mubr.bf16.mxu0 %v4605_v2 }
 0x540   :  { %4205 = vmatprep.subr.msk.bf16.mxu1 %vm1239_vm10, %v4190_v24  ;;  %4207 = vmatprep.subr.msk.bf16.mxu0 %vm1239_vm10, %v4192_v37  ;;  %v5170_v37 = vld [vmem:[%s5814_s4 + $0x8] sm:$0xff] }
 0x541   :  { %v1159_v25 = vrot.slane %v5170_v37, %v5136_v11 }
 0x545   :  { %4202 = vmatmul.mubr.msk.bf16.vlgmr.msra.gmra.mrb[8].mxu1 %vm128_vm2, %v1113_v16  ;;  %4204 = vmatmul.mubr.msk.bf16.vlgmr.msra.gmra.mrb[8].mxu0 %vm128_vm2, %v1113_v16 }
 0x546   :  { %1461 = vmatpush1.bf16.msra.mxu1 %v1265_v4  ;;  %1504 = vmatpush1.bf16.msra.mxu0 %v1271_v55  ;;  %v5175_v4 = vld [vmem:[%s5815_s5 + $0x20] sm:$0xff]  ;;  %v5180_v55 = vld [vmem:[%s5815_s5 + $0x28] sm:$0xff] }
 0x547   :  { %1492 = vmatprep.mubr.bf16.mxu1 %v4605_v2  ;;  %1535 = vmatprep.mubr.bf16.mxu0 %v4605_v2  ;;  %v4225_v5 = vcombine.high %v5180_v55, %v5180_v55 }
 0x548   :  { %4209 = vmatprep.subr.msk.bf16.mxu1 %vm1239_vm10, %v4194_v47  ;;  %4211 = vmatprep.subr.msk.bf16.mxu0 %vm1239_vm10, %v4196_v19 }
 0x54d   :  { %4206 = vmatmul.mubr.msk.bf16.vlgmr.msra.gmra.mrb[12].mxu1 %vm128_vm2, %v1113_v16  ;;  %4208 = vmatmul.mubr.msk.bf16.vlgmr.msra.gmra.mrb[12].mxu0 %vm128_vm2, %v1113_v16 }
 0x54e   :  { %1547 = vmatpush1.bf16.msra.mxu1 %v1277_v18  ;;  %1590 = vmatpush1.bf16.msra.mxu0 %v1283_v38 }
 0x54f   :  { %1578 = vmatprep.mubr.bf16.mxu1 %v4605_v2  ;;  %1621 = vmatprep.mubr.bf16.mxu0 %v4605_v2 }
 0x550   :  { %1741 = vmatprep.subr.bf16.mxu1 %v4215_v39  ;;  %1782 = vmatprep.subr.bf16.mxu0 %v4217_v32  ;;  %v1151_v39 = vrot.slane %v5170_v37, %v4689_v26 }
 0x555   :  { %4210 = vmatmul.mubr.msk.bf16.vlgmr.msra.gmra.mrb[16].mxu1 %vm128_vm2, %v1113_v16  ;;  %4212 = vmatmul.mubr.msk.bf16.vlgmr.msra.gmra.mrb[16].mxu0 %vm128_vm2, %v1113_v16 }
 0x557   :  { %1742 = vmatpush1.bf16.xpose.msra.mxu1 %v4214_v44  ;;  %1783 = vmatpush1.bf16.xpose.msra.mxu0 %v4216_v49 }
 0x558   :  { %1823 = vmatprep.subr.bf16.mxu1 %v4219_v62  ;;  %1864 = vmatprep.subr.bf16.mxu0 %v4221_v29  ;;  %v4223_v29 = vcombine.high %v5175_v4, %v5175_v4 }
 0x610   :  { %v1322_v58 = vpop.f32.mrb[4].mxu1  ;;  %v1365_v1 = vpop.f32.mrb[4].mxu0 }
 0x611   :  { %v1323_v8 = vadd.f32 %v1322_v58, %v1119_v59  ;;  %v1366_v60 = vadd.f32 %v1365_v1, %v1127_v48  ;;  %v1324_v57 = vpop.f32.mrb[5].mxu1  ;;  %v1367_v54 = vpop.f32.mrb[5].mxu0 }
 0x612   :  { %v1325_v34 = vadd.f32 %v1324_v57, %v1123_v46  ;;  %v1368_v13 = vadd.f32 %v1367_v54, %v1131_v50  ;;  %v1326_v45 = vpop.f32.mrb[6].mxu1  ;;  %v1369_v17 = vpop.f32.mrb[6].mxu0 }
 0x613   :  { %v1327_v20 = vadd.f32 %v1326_v45, %v1119_v59  ;;  %v1370_v15 = vadd.f32 %v1369_v17, %v1127_v48  ;;  %v1328_v12 = vpop.f32.mrb[7].mxu1  ;;  %v1371_v43 = vpop.f32.mrb[7].mxu0  ;;  %v1632_v16 = vmax.f32 %v1323_v8, 0.0  ;;  %v1634_v61 = vmax.f32 %v1366_v60, 0.0 }
 0x614   :  { %v1329_v42 = vadd.f32 %v1328_v12, %v1123_v46  ;;  %v1372_v36 = vadd.f32 %v1371_v43, %v1131_v50  ;;  %v1633_v6 = vmax.f32 %v1325_v34, 0.0  ;;  %v1635_v28 = vmax.f32 %v1368_v13, 0.0 }
 0x615   :  { %v1648_v33 = vmax.f32 %v1327_v20, 0.0  ;;  %v1650_v24 = vmax.f32 %v1370_v15, 0.0  ;;  %v1155_v60 = vrot.slane %v5170_v37, %v5142_v63  ;;  %v1163_v34 = vrot.slane %v5170_v37, %v5145_v35 }
 0x616   :  { %v1649_v30 = vmax.f32 %v1329_v42, 0.0  ;;  %v1651_v41 = vmax.f32 %v1372_v36, 0.0  ;;  %v5206_v42 = vld [vmem:[%s5815_s5 + $0x38] sm:$0xff] }
 0x617   :  { %v1664_v47 = vpack.c.bf16 %v1648_v33, %v1632_v16  ;;  %v1666_v19 = vpack.c.bf16 %v1650_v24, %v1634_v61 }
 0x618   :  { %v1665_v52 = vpack.c.bf16 %v1649_v30, %v1633_v6  ;;  %v1667_v18 = vpack.c.bf16 %v1651_v41, %v1635_v28  ;;  %v1408_v38 = vpop.f32.mrb[8].mxu1  ;;  %v1451_v53 = vpop.f32.mrb[8].mxu0  ;;  %v4224_v6 = vcombine.low %v5180_v55, %v5180_v55  ;;  %v1167_v28 = vrot.slane %v5170_v37, %v5152_v0 }
 0x619   :  { %v1409_v32 = vadd.f32 %v1408_v38, %v1135_v56  ;;  %v1452_v44 = vadd.f32 %v1451_v53, %v1143_v27  ;;  %v1410_v49 = vpop.f32.mrb[9].mxu1  ;;  %v1453_v62 = vpop.f32.mrb[9].mxu0  ;;  %v1175_v55 = vrot.slane %v5170_v37, %v5155_v9 }
 0x61a   :  { %v1411_v10 = vadd.f32 %v1410_v49, %v1139_v21  ;;  %v1454_v59 = vadd.f32 %v1453_v62, %v1147_v31  ;;  %v1412_v48 = vpop.f32.mrb[10].mxu1  ;;  %v1455_v46 = vpop.f32.mrb[10].mxu0  ;;  %1773 = vmatprep.mubr.bf16.mxu1 %v1665_v52  ;;  %1814 = vmatprep.mubr.bf16.mxu0 %v1667_v18  ;;  %v1171_v62 = vrot.slane %v5170_v37, %v5158_v3 }
 0x61b   :  { %v1413_v50 = vadd.f32 %v1412_v48, %v1135_v56  ;;  %v1456_v58 = vadd.f32 %v1455_v46, %v1143_v27  ;;  %v1414_v1 = vpop.f32.mrb[11].mxu1  ;;  %v1457_v8 = vpop.f32.mrb[11].mxu0  ;;  %1774 = vmatmul.mubr.bf16.vlgmr.msra.gmra.mrb[20].mxu1 %v1664_v47  ;;  %1815 = vmatmul.mubr.bf16.vlgmr.msra.gmra.mrb[20].mxu0 %v1666_v19  ;;  %v1636_v13 = vmax.f32 %v1409_v32, 0.0  ;;  %v1638_v45 = vmax.f32 %v1452_v44, 0.0  ;;  %v5201_v27 = vld [vmem:[%s5815_s5 + $0x30] sm:$0xff] }
 0x61c   :  { %v1415_v57 = vadd.f32 %v1414_v1, %v1139_v21  ;;  %v1458_v54 = vadd.f32 %v1457_v8, %v1147_v31  ;;  %1824 = vmatpush1.bf16.xpose.msra.mxu1 %v4218_v51  ;;  %1865 = vmatpush1.bf16.xpose.msra.mxu0 %v4220_v40  ;;  %v1637_v15 = vmax.f32 %v1411_v10, 0.0  ;;  %v1639_v12 = vmax.f32 %v1454_v59, 0.0 }
 0x61d   :  { %v1652_v17 = vmax.f32 %v1413_v50, 0.0  ;;  %v1654_v20 = vmax.f32 %v1456_v58, 0.0  ;;  %1905 = vmatprep.subr.bf16.mxu1 %v4223_v29  ;;  %1946 = vmatprep.subr.bf16.mxu0 %v4225_v5  ;;  %v4222_v31 = vcombine.low %v5175_v4, %v5175_v4  ;;  %v4227_v51 = vcombine.high %v5201_v27, %v5201_v27 }
 0x61e   :  { %v1653_v43 = vmax.f32 %v1415_v57, 0.0  ;;  %v1655_v56 = vmax.f32 %v1458_v54, 0.0  ;;  %v4229_v4 = vcombine.high %v5206_v42, %v5206_v42  ;;  %v1179_v10 = vrot.slane %v5170_v37, %v5161_v7 }
 0x61f   :  { %v1668_v36 = vpack.c.bf16 %v1652_v17, %v1636_v13  ;;  %v1670_v21 = vpack.c.bf16 %v1654_v20, %v1638_v45  ;;  %v4226_v45 = vcombine.low %v5201_v27, %v5201_v27  ;;  %v4228_v37 = vcombine.low %v5206_v42, %v5206_v42 }
 0x620   :  { %v1669_v16 = vpack.c.bf16 %v1653_v43, %v1637_v15  ;;  %v1671_v61 = vpack.c.bf16 %v1655_v56, %v1639_v12  ;;  %v1494_v33 = vpop.f32.mrb[12].mxu1  ;;  %v1537_v24 = vpop.f32.mrb[12].mxu0 }
 0x621   :  { %v1495_v30 = vadd.f32 %v1494_v33, %v1151_v39  ;;  %v1538_v41 = vadd.f32 %v1537_v24, %v1159_v25  ;;  %v1496_v47 = vpop.f32.mrb[13].mxu1  ;;  %v1539_v19 = vpop.f32.mrb[13].mxu0 }
 0x622   :  { %v1497_v52 = vadd.f32 %v1496_v47, %v1155_v60  ;;  %v1540_v18 = vadd.f32 %v1539_v19, %v1163_v34  ;;  %v1498_v38 = vpop.f32.mrb[14].mxu1  ;;  %v1541_v53 = vpop.f32.mrb[14].mxu0  ;;  %1855 = vmatprep.mubr.bf16.mxu1 %v1669_v16  ;;  %1896 = vmatprep.mubr.bf16.mxu0 %v1671_v61 }
 0x623   :  { %v1499_v40 = vadd.f32 %v1498_v38, %v1151_v39  ;;  %v1542_v32 = vadd.f32 %v1541_v53, %v1159_v25  ;;  %v1500_v44 = vpop.f32.mrb[15].mxu1  ;;  %v1543_v49 = vpop.f32.mrb[15].mxu0  ;;  %1856 = vmatmul.mubr.bf16.vlgmr.msra.gmra.mrb[24].mxu1 %v1668_v36  ;;  %1897 = vmatmul.mubr.bf16.vlgmr.msra.gmra.mrb[24].mxu0 %v1670_v21  ;;  %v1640_v59 = vmax.f32 %v1495_v30, 0.0  ;;  %v1642_v48 = vmax.f32 %v1538_v41, 0.0  ;;  %v4213_v53 = vld [vmem:[%s5812_s2 + $0x48] ss:$0 sm:$0xff] }
 0x624   :  { %v1501_v29 = vadd.f32 %v1500_v44, %v1155_v60  ;;  %v1544_v5 = vadd.f32 %v1543_v49, %v1163_v34  ;;  %1906 = vmatpush1.bf16.xpose.msra.mxu1 %v4222_v31  ;;  %1947 = vmatpush1.bf16.xpose.msra.mxu0 %v4224_v6  ;;  %v1641_v39 = vmax.f32 %v1497_v52, 0.0  ;;  %v1643_v25 = vmax.f32 %v1540_v18, 0.0 }
 0x625   :  { %v1656_v46 = vmax.f32 %v1499_v40, 0.0  ;;  %v1658_v50 = vmax.f32 %v1542_v32, 0.0  ;;  %1987 = vmatprep.subr.bf16.mxu1 %v4227_v51  ;;  %2028 = vmatprep.subr.bf16.mxu0 %v4229_v4 }
 0x626   :  { %v1657_v58 = vmax.f32 %v1501_v29, 0.0  ;;  %v1659_v1 = vmax.f32 %v1544_v5, 0.0 }
 0x627   :  { %v1672_v8 = vpack.c.bf16 %v1656_v46, %v1640_v59  ;;  %v1674_v57 = vpack.c.bf16 %v1658_v50, %v1642_v48 }
 0x628   :  { %v1673_v54 = vpack.c.bf16 %v1657_v58, %v1641_v39  ;;  %v1675_v60 = vpack.c.bf16 %v1659_v1, %v1643_v25  ;;  %v1580_v34 = vpop.f32.mrb[16].mxu1  ;;  %v1623_v13 = vpop.f32.mrb[16].mxu0 }
 0x629   :  { %v1581_v17 = vadd.f32 %v1580_v34, %v1167_v28  ;;  %v1624_v20 = vadd.f32 %v1623_v13, %v1175_v55  ;;  %v1582_v15 = vpop.f32.mrb[17].mxu1  ;;  %v1625_v12 = vpop.f32.mrb[17].mxu0 }
 0x62a   :  { %v1583_v43 = vadd.f32 %v1582_v15, %v1171_v62  ;;  %v1626_v56 = vadd.f32 %v1625_v12, %v1179_v10  ;;  %v1584_v36 = vpop.f32.mrb[18].mxu1  ;;  %v1627_v21 = vpop.f32.mrb[18].mxu0  ;;  %1937 = vmatprep.mubr.bf16.mxu1 %v1673_v54  ;;  %1978 = vmatprep.mubr.bf16.mxu0 %v1675_v60 }
 0x62b   :  { %v1585_v31 = vadd.f32 %v1584_v36, %v1167_v28  ;;  %v1628_v16 = vadd.f32 %v1627_v21, %v1175_v55  ;;  %v1586_v61 = vpop.f32.mrb[19].mxu1  ;;  %v1629_v33 = vpop.f32.mrb[19].mxu0  ;;  %1938 = vmatmul.mubr.bf16.vlgmr.msra.gmra.mrb[28].mxu1 %v1672_v8  ;;  %1979 = vmatmul.mubr.bf16.vlgmr.msra.gmra.mrb[28].mxu0 %v1674_v57  ;;  %v1644_v42 = vmax.f32 %v1581_v17, 0.0  ;;  %v1646_v6 = vmax.f32 %v1624_v20, 0.0 }
 0x62c   :  { %v1587_v27 = vadd.f32 %v1586_v61, %v1171_v62  ;;  %v1630_v24 = vadd.f32 %v1629_v33, %v1179_v10  ;;  %1988 = vmatpush1.bf16.xpose.msra.mxu1 %v4226_v45  ;;  %2029 = vmatpush1.bf16.xpose.msra.mxu0 %v4228_v37  ;;  %v1645_v47 = vmax.f32 %v1583_v43, 0.0  ;;  %v1647_v19 = vmax.f32 %v1626_v56, 0.0 }
 0x62d   :  { %v1660_v30 = vmax.f32 %v1585_v31, 0.0  ;;  %v1662_v41 = vmax.f32 %v1628_v16, 0.0 }
 0x62e   :  { %v1661_v51 = vmax.f32 %v1587_v27, 0.0  ;;  %v1663_v4 = vmax.f32 %v1630_v24, 0.0 }
 0x62f   :  { %v1676_v52 = vpack.c.bf16 %v1660_v30, %v1644_v42  ;;  %v1678_v18 = vpack.c.bf16 %v1662_v41, %v1646_v6 }
 0x630   :  { %v1677_v28 = vpack.c.bf16 %v1661_v51, %v1645_v47  ;;  %v1679_v38 = vpack.c.bf16 %v1663_v4, %v1647_v19 }
 0x632   :  { %2019 = vmatprep.mubr.bf16.mxu1 %v1677_v28  ;;  %2060 = vmatprep.mubr.bf16.mxu0 %v1679_v38 }
 0x633   :  { %2020 = vmatmul.mubr.bf16.vlgmr.msra.gmra.mrb[32].mxu1 %v1676_v52  ;;  %2061 = vmatmul.mubr.bf16.vlgmr.msra.gmra.mrb[32].mxu0 %v1678_v18 }
 0x6ee   :  { %v1775_v55 = vpop.f32.mrb[20].mxu1  ;;  %v1816_v40 = vpop.f32.mrb[20].mxu0 }
 0x6ef   :  { %v1776_v32 = vadd.f32 %v4213_v53, %v1775_v55  ;;  %v1777_v44 = vpop.f32.mrb[21].mxu1  ;;  %v1818_v49 = vpop.f32.mrb[21].mxu0 }
 0x6f0   :  { %v1778_v62 = vpop.f32.mrb[22].mxu1  ;;  %v1819_v29 = vpop.f32.mrb[22].mxu0 }
 0x6f1   :  { %v1817_v5 = vadd.f32 %v1816_v40, %v1776_v32  ;;  %v1779_v10 = vadd.f32 %v4213_v53, %v1778_v62  ;;  %v1780_v59 = vpop.f32.mrb[23].mxu1  ;;  %v1821_v48 = vpop.f32.mrb[23].mxu0 }
 0x6f3   :  { %v1820_v46 = vadd.f32 %v1819_v29, %v1779_v10 }
 0x6f6   :  { %v1857_v50 = vpop.f32.mrb[24].mxu1  ;;  %v1898_v39 = vpop.f32.mrb[24].mxu0 }
 0x6f7   :  { %v1858_v25 = vadd.f32 %v1857_v50, %v1817_v5  ;;  %v1859_v58 = vpop.f32.mrb[25].mxu1  ;;  %v1900_v1 = vpop.f32.mrb[25].mxu0 }
 0x6f8   :  { %v1860_v8 = vpop.f32.mrb[26].mxu1  ;;  %v1901_v57 = vpop.f32.mrb[26].mxu0  ;;  %v4230_v1 = vld [vmem:[%s5812_s2 + $0x60] ss:$0 sm:$0xff] }
 0x6f9   :  { %v1899_v54 = vadd.f32 %v1898_v39, %v1858_v25  ;;  %v1861_v60 = vadd.f32 %v1860_v8, %v1820_v46  ;;  %v1862_v34 = vpop.f32.mrb[27].mxu1  ;;  %v1903_v13 = vpop.f32.mrb[27].mxu0 }
 0x6fb   :  { %v1902_v45 = vadd.f32 %v1901_v57, %v1861_v60 }
 0x6fe   :  { %v1939_v37 = vpop.f32.mrb[28].mxu1  ;;  %v1980_v17 = vpop.f32.mrb[28].mxu0 }
 0x6ff   :  { %v1940_v20 = vadd.f32 %v1939_v37, %v1899_v54  ;;  %v1941_v15 = vpop.f32.mrb[29].mxu1  ;;  %v1982_v12 = vpop.f32.mrb[29].mxu0  ;;  %v4231_v54 = vld [vmem:[%s5812_s2 + $0x68] ss:$0 sm:$0xff] }
 0x700   :  { %v1942_v43 = vpop.f32.mrb[30].mxu1  ;;  %v1983_v56 = vpop.f32.mrb[30].mxu0 }
 0x701   :  { %v1981_v36 = vadd.f32 %v1980_v17, %v1940_v20  ;;  %v1943_v21 = vadd.f32 %v1942_v43, %v1902_v45  ;;  %v1944_v31 = vpop.f32.mrb[31].mxu1  ;;  %v1985_v16 = vpop.f32.mrb[31].mxu0  ;;  %v4232_v17 = vld [vmem:[%s5812_s2 + $0x78] ss:$0 sm:$0xff] }
 0x703   :  { %v1984_v61 = vadd.f32 %v1983_v56, %v1943_v21 }
 0x706   :  { %v2021_v33 = vpop.f32.mrb[32].mxu1  ;;  %v2062_v27 = vpop.f32.mrb[32].mxu0 }
 0x707   :  { %v2022_v24 = vadd.f32 %v2021_v33, %v1981_v36  ;;  %v2023_v42 = vpop.f32.mrb[33].mxu1  ;;  %v2064_v6 = vpop.f32.mrb[33].mxu0 }
 0x708   :  { %v2024_v30 = vpop.f32.mrb[34].mxu1  ;;  %v2065_v41 = vpop.f32.mrb[34].mxu0 }
 0x709   :  { %v2063_v47 = vadd.f32 %v2062_v27, %v2022_v24  ;;  %v2025_v19 = vadd.f32 %v2024_v30, %v1984_v61  ;;  %v2026_v51 = vpop.f32.mrb[35].mxu1  ;;  %v2067_v4 = vpop.f32.mrb[35].mxu0 }
 0x70b   :  { %v2066_v52 = vadd.f32 %v2065_v41, %v2025_v19  ;;  %v2069_v18 = vadd.f32 %v2063_v47, %v5073_v23 }
 0x70d   :  { %v2073_v28 = vsel %vm128_vm2, %v2069_v18, 0.0  ;;  %v2070_v38 = vadd.f32 %v2066_v52, %v5075_v14  ;;  %v2111_v14 = vld [vmem:[%s5812_s2 + $0x70] sm:$0xff] }
 0x70e   :  { %2074 = vadd.xlane.f32.xlu1 %v2073_v28  ;;  %4343 = vmatprep.subr.mxu1 %v2111_v14 }
 0x70f   :  { %v2076_v53 = vsel %vm128_vm2, %v2070_v38, 0.0  ;;  %4344 = vmatpush3.msra.mxu1 %v2111_v14 }
 0x710   :  { %2077 = vadd.xlane.f32.xlu0 %v2076_v53 }
 0x79b   :  { %v2075_v55 = vpop.xlane.xlu1 %2074 }
 0x79c   :  { %v2079_v40 = vmul.f32 0.125, %v2075_v55 }
 0x79d   :  { %v2078_v32 = vpop.xlane.xlu0 %2077 }
 0x79e   :  { %v2081_v44 = vsub.f32 %v2069_v18, %v2079_v40  ;;  %v2080_v49 = vmul.f32 0.125, %v2078_v32 }
 0x7a0   :  { %v2082_v62 = vsub.f32 %v2070_v38, %v2080_v49  ;;  %v2083_v29 = vmul.f32 %v2081_v44, %v2081_v44 }
 0x7a2   :  { %v2085_v5 = vsel %vm128_vm2, %v2083_v29, 0.0  ;;  %v2084_v10 = vmul.f32 %v2082_v62, %v2082_v62 }
 0x7a3   :  { %2086 = vadd.xlane.f32.xlu1 %v2085_v5 }
 0x7a4   :  { %v2088_v23 = vsel %vm128_vm2, %v2084_v10, 0.0 }
 0x7a5   :  { %2089 = vadd.xlane.f32.xlu0 %v2088_v23 }
 0x830   :  { %v2087_v59 = vpop.xlane.xlu1 %2086 }
 0x831   :  { %v2091_v48 = vmul.f32 0.125, %v2087_v59 }
 0x832   :  { %v2090_v46 = vpop.xlane.xlu0 %2089 }
 0x833   :  { %v2093_v50 = vadd.f32 1e-05, %v2091_v48  ;;  %v2092_v39 = vmul.f32 0.125, %v2090_v46 }
 0x835   :  { %4493 = vrsqrt.f32 %v2093_v50  ;;  %v2094_v25 = vadd.f32 1e-05, %v2092_v39 }
 0x837   :  { %4495 = vrsqrt.f32 %v2094_v25 }
 0x83f   :  { %v4494_v58 = vpop.eup %4493 }
 0x840   :  { %v2097_v8 = vmul.f32 %v4494_v58, %v2081_v44 }
 0x841   :  { %v4496_v57 = vpop.eup %4495 }
 0x842   :  { %v2098_v60 = vmul.f32 %v4496_v57, %v2082_v62  ;;  %v2103_v34 = vmul.f32 %v4230_v1, %v2097_v8 }
 0x844   :  { %v2104_v13 = vmul.f32 %v4230_v1, %v2098_v60  ;;  %v5246_v45 = vadd.f32 %v4231_v54, %v2103_v34 }
 0x846   :  { %v5248_v37 = vadd.f32 %v4231_v54, %v2104_v13  ;;  %4345 = vmatprep.mubr.msk.f32.mxu1 %vm128_vm2, %v5246_v45 }
 0x848   :  { %4346 = vmatmul.mubr.msk.f32.vlgmr.msra.gmra.mrb[2].mxu1 %vm128_vm2, %v5248_v37 }
 0x849   :  { %3302 = vmatprep.mubr.bf16.mxu1 %v4605_v2 }
 0x91b   :  { %v4347_v20 = vpop.f32.mrb[2].mxu1 }
 0x91c   :  { %v5258_v15 = vadd.f32 %v4347_v20, %v4232_v17  ;;  %v2189_v12 = vpop.f32.mrb[3].mxu1 }
 0x91d   :  { %v5260_v43 = vadd.f32 %v4232_v17, %v2189_v12 }
 0x91e   :  { %2380 = vrot.lane.b32.xlu0 %v5258_v15, %s4601_s10  ;;  %v2256_v56 = vrot.slane %v5258_v15, %v4682_v22  ;;  %v2249_v61 = vcombine.high %v5258_v15, %v5258_v15 }
 0x91f   :  { %2378 = vrot.lane.b32.xlu1 %v5260_v43, %s4601_s10  ;;  %v2207_v21 = vrot.slane %v5260_v43, %v4682_v22  ;;  %v2200_v19 = vcombine.high %v5260_v43, %v5260_v43 }
 0x920   :  { %v2264_v36 = vcombine.high %v2256_v56, %v2256_v56  ;;  %v2272_v16 = vrot.slane %v2256_v56, %v4682_v22  ;;  %v2263_v52 = vrot.slane %v2249_v61, %v4682_v22 }
 0x921   :  { %v2223_v33 = vrot.slane %v2207_v21, %v4682_v22  ;;  %v2215_v6 = vcombine.high %v2207_v21, %v2207_v21  ;;  %v2214_v32 = vrot.slane %v2200_v19, %v4682_v22 }
 0x922   :  { %v2286_v31 = vrot.slane %v2264_v36, %v4682_v22  ;;  %v2333_v24 = vrot.slane %v2272_v16, %v4689_v26  ;;  %v2294_v42 = vcombine.high %v2272_v16, %v2272_v16  ;;  %v2279_v40 = vrot.slane %v2263_v52, %v4682_v22 }
 0x923   :  { %v2301_v4 = vrot.slane %v2223_v33, %v4689_v26  ;;  %v2237_v38 = vrot.slane %v2215_v6, %v4682_v22  ;;  %v2245_v23 = vcombine.high %v2223_v33, %v2223_v33  ;;  %v2230_v14 = vrot.slane %v2214_v32, %v4682_v22 }
 0x924   :  { %v2337_v27 = vrot.slane %v2286_v31, %v4689_v26  ;;  %v2341_v18 = vrot.slane %v2294_v42, %v4689_v26  ;;  %v2296_v28 = vcombine.high %v2286_v31, %v2286_v31  ;;  %v2349_v10 = vrot.slane %v2279_v40, %v4689_v26  ;;  %v2918_v42 = vld [vmem:[%s5812_s2 + $0x80] sm:$0xff] }
 0x925   :  { %v2305_v49 = vrot.slane %v2237_v38, %v4689_v26  ;;  %v2247_v62 = vcombine.high %v2237_v38, %v2237_v38  ;;  %v2265_v48 = vcombine.high %v2263_v52, %v2263_v52  ;;  %v2216_v46 = vcombine.high %v2214_v32, %v2214_v32  ;;  %4348 = vmatprep.subr.mxu0 %v2918_v42 }
 0x926   :  { %v2345_v44 = vrot.slane %v2296_v28, %v4689_v26  ;;  %v2309_v25 = vrot.slane %v2245_v23, %v4689_v26  ;;  %v2317_v58 = vrot.slane %v2230_v14, %v4689_v26  ;;  %v2295_v60 = vcombine.high %v2279_v40, %v2279_v40  ;;  %4349 = vmatpush3.msra.mxu0 %v2918_v42 }
 0x927   :  { %v2313_v59 = vrot.slane %v2247_v62, %v4689_v26  ;;  %v2293_v1 = vrot.slane %v2265_v48, %v4682_v22  ;;  %v2244_v8 = vrot.slane %v2216_v46, %v4682_v22  ;;  %v2246_v17 = vcombine.high %v2230_v14, %v2230_v14 }
 0x928   :  { %v2357_v12 = vrot.slane %v2295_v60, %v4689_v26 }
 0x929   :  { %v2353_v34 = vrot.slane %v2293_v1, %v4689_v26  ;;  %v2321_v13 = vrot.slane %v2244_v8, %v4689_v26  ;;  %v2325_v56 = vrot.slane %v2246_v17, %v4689_v26  ;;  %v2248_v36 = vcombine.high %v2244_v8, %v2244_v8 }
 0x92a   :  { %v2297_v61 = vcombine.high %v2293_v1, %v2293_v1 }
 0x92b   :  { %v2329_v16 = vrot.slane %v2248_v36, %v4689_v26 }
 0x990   :  { %v5277_v30 = vpop.permute.xlu0 %2380 }
 0x991   :  { %v5280_v41 = vmul.f32 %v5277_v30, %v2337_v27  ;;  %v5283_v47 = vmul.f32 %v5277_v30, %v2333_v24  ;;  %v2379_v51 = vpop.permute.xlu1 %2378  ;;  %v5296_v53 = vmul.f32 %v5277_v30, %v2341_v18  ;;  %v5309_v29 = vmul.f32 %v5277_v30, %v2345_v44 }
 0x992   :  { %v5298_v55 = vmul.f32 %v2379_v51, %v2301_v4  ;;  %v5311_v5 = vmul.f32 %v2379_v51, %v2305_v49  ;;  %v5321_v50 = vmul.f32 %v5277_v30, %v2349_v10  ;;  %v5323_v39 = vmul.f32 %v2379_v51, %v2313_v59 }
 0x993   :  { %2434 = vrot.lane.b32.xlu0 %v5280_v41, %s4603_s11  ;;  %2432 = vrot.lane.b32.xlu1 %v5283_v47, %s4603_s11  ;;  %v5333_v57 = vmul.f32 %v2379_v51, %v2309_v25  ;;  %v5335_v54 = vmul.f32 %v2379_v51, %v2317_v58  ;;  %v5344_v20 = vmul.f32 %v5277_v30, %v2353_v34 }
 0x994   :  { %v5346_v22 = vmul.f32 %v2379_v51, %v2321_v13  ;;  %v5355_v21 = vmul.f32 %v5277_v30, %v2357_v12  ;;  %v5357_v31 = vmul.f32 %v2379_v51, %v2325_v56  ;;  %v5364_v33 = vmul.f32 %v2379_v51, %v2329_v16 }
 0x995   :  { %v2361_v27 = vrot.slane %v2297_v61, %v4689_v26 }
 0x997   :  { %2436 = vrot.lane.b32.xlu0 %v5296_v53, %s4603_s11  ;;  %2416 = vrot.lane.b32.xlu1 %v5298_v55, %s4603_s11  ;;  %v5372_v24 = vmul.f32 %v5277_v30, %v2361_v27 }
 0x99b   :  { %2438 = vrot.lane.b32.xlu0 %v5309_v29, %s4603_s11  ;;  %2418 = vrot.lane.b32.xlu1 %v5311_v5, %s4603_s11 }
 0x99f   :  { %2440 = vrot.lane.b32.xlu0 %v5321_v50, %s4603_s11  ;;  %2422 = vrot.lane.b32.xlu1 %v5323_v39, %s4603_s11 }
 0x9a3   :  { %2420 = vrot.lane.b32.xlu0 %v5333_v57, %s4603_s11  ;;  %2424 = vrot.lane.b32.xlu1 %v5335_v54, %s4603_s11 }
 0x9a7   :  { %2442 = vrot.lane.b32.xlu0 %v5344_v20, %s4603_s11  ;;  %2426 = vrot.lane.b32.xlu1 %v5346_v22, %s4603_s11 }
 0x9ab   :  { %2444 = vrot.lane.b32.xlu0 %v5355_v21, %s4603_s11  ;;  %2428 = vrot.lane.b32.xlu1 %v5357_v31, %s4603_s11 }
 0x9af   :  { %2784 = vrot.lane.b32.xlu0 %v5260_v43, %s4604_s12  ;;  %2430 = vrot.lane.b32.xlu1 %v5364_v33, %s4603_s11 }
 0x9b3   :  { %2446 = vrot.lane.b32.xlu1 %v5372_v24, %s4603_s11 }
 0x9b7   :  { %2786 = vrot.lane.b32.xlu1 %v5258_v15, %s4604_s12 }
 0xa05   :  { %v2435_v43 = vpop.permute.xlu0 %2434  ;;  %v2433_v6 = vpop.permute.xlu1 %2432 }
 0xa06   :  { %v5382_v19 = vadd.f32 %v2435_v43, %v5280_v41  ;;  %v5385_v30 = vadd.f32 %v2433_v6, %v5283_v47 }
 0xa08   :  { %v2543_v51 = vsel %vm128_vm2, %v5382_v19, -inf  ;;  %v2536_v15 = vsel %vm128_vm2, %v5385_v30, -inf }
 0xa09   :  { %v2544_v4 = vrot.slane %v2543_v51, 4  ;;  %v2537_v52 = vrot.slane %v2536_v15, 4  ;;  %v2437_v18 = vpop.permute.xlu0 %2436  ;;  %v2417_v28 = vpop.permute.xlu1 %2416 }
 0xa0a   :  { %v5392_v38 = vadd.f32 %v2437_v18, %v5296_v53  ;;  %v2464_v40 = vadd.f32 %v2417_v28, %v5298_v55 }
 0xa0b   :  { %v2545_v41 = vmax.f32 %v2543_v51, %v2544_v4  ;;  %v2538_v32 = vmax.f32 %v2536_v15, %v2537_v52 }
 0xa0c   :  { %v2550_v47 = vsel %vm128_vm2, %v5392_v38, -inf  ;;  %v2480_v44 = vsel %vm128_vm2, %v2464_v40, -inf }
 0xa0d   :  { %v2546_v49 = vrot.slane %v2545_v41, 2  ;;  %v2539_v62 = vrot.slane %v2538_v32, 2  ;;  %v2551_v10 = vrot.slane %v2550_v47, 4  ;;  %v2481_v23 = vrot.slane %v2480_v44, 4  ;;  %v2439_v14 = vpop.permute.xlu0 %2438  ;;  %v2419_v59 = vpop.permute.xlu1 %2418 }
 0xa0e   :  { %v5399_v48 = vadd.f32 %v2439_v14, %v5309_v29  ;;  %v5402_v53 = vadd.f32 %v2419_v59, %v5311_v5 }
 0xa0f   :  { %v2547_v55 = vmax.f32 %v2545_v41, %v2546_v49  ;;  %v2540_v46 = vmax.f32 %v2538_v32, %v2539_v62  ;;  %v2552_v25 = vmax.f32 %v2550_v47, %v2551_v10  ;;  %v2482_v58 = vmax.f32 %v2480_v44, %v2481_v23 }
 0xa10   :  { %v2557_v1 = vsel %vm128_vm2, %v5399_v48, -inf  ;;  %v2487_v8 = vsel %vm128_vm2, %v5402_v53, -inf }
 0xa11   :  { %v2548_v60 = vrot.slane %v2547_v55, 1  ;;  %v2553_v34 = vrot.slane %v2552_v25, 2  ;;  %v2483_v13 = vrot.slane %v2482_v58, 2  ;;  %v2441_v17 = vpop.permute.xlu0 %2440  ;;  %v2423_v12 = vpop.permute.xlu1 %2422  ;;  %v2558_v29 = vrot.slane %v2557_v1, 4 }
 0xa12   :  { %v2488_v56 = vrot.slane %v2487_v8, 4  ;;  %v5409_v5 = vadd.f32 %v2441_v17, %v5321_v50  ;;  %v5412_v36 = vadd.f32 %v2423_v12, %v5323_v39  ;;  %v2541_v16 = vrot.slane %v2540_v46, 1 }
 0xa13   :  { %v2554_v61 = vmax.f32 %v2552_v25, %v2553_v34  ;;  %v2484_v27 = vmax.f32 %v2482_v58, %v2483_v13  ;;  %v2559_v42 = vmax.f32 %v2557_v1, %v2558_v29  ;;  %v2549_v15 = vmax.f32 %v2547_v55, %v2548_v60 }
 0xa14   :  { %v2489_v43 = vmax.f32 %v2487_v8, %v2488_v56  ;;  %v2564_v6 = vsel %vm128_vm2, %v5409_v5, -inf  ;;  %v2501_v51 = vsel %vm128_vm2, %v5412_v36, -inf  ;;  %v2542_v39 = vmax.f32 %v2540_v46, %v2541_v16 }
 0xa15   :  { %v2485_v4 = vrot.slane %v2484_v27, 1  ;;  %v2421_v52 = vpop.permute.xlu0 %2420  ;;  %v2560_v18 = vrot.slane %v2559_v42, 2  ;;  %v2565_v28 = vrot.slane %v2564_v6, 4  ;;  %v2502_v41 = vrot.slane %v2501_v51, 4  ;;  %v2425_v58 = vpop.permute.xlu1 %2424 }
 0xa16   :  { %v2490_v50 = vrot.slane %v2489_v43, 2  ;;  %v2555_v47 = vrot.slane %v2554_v61, 1  ;;  %v2601_v10 = vsub.f32 %v5382_v19, %v2549_v15  ;;  %v5420_v14 = vadd.f32 %v2421_v52, %v5333_v57 }
 0xa17   :  { %v2486_v32 = vmax.f32 %v2484_v27, %v2485_v4  ;;  %v2566_v49 = vmax.f32 %v2564_v6, %v2565_v28  ;;  %v2503_v62 = vmax.f32 %v2501_v51, %v2502_v41  ;;  %v2561_v59 = vmax.f32 %v2559_v42, %v2560_v18 }
 0xa18   :  { %v2491_v44 = vmax.f32 %v2489_v43, %v2490_v50  ;;  %v2494_v46 = vsel %vm128_vm2, %v5420_v14, -inf  ;;  %v2600_v34 = vsub.f32 %v5385_v30, %v2542_v39  ;;  %v2556_v13 = vmax.f32 %v2554_v61, %v2555_v47 }
 0xa19   :  { %v2592_v23 = vsub.f32 %v2464_v40, %v2486_v32  ;;  %v2567_v25 = vrot.slane %v2566_v49, 2  ;;  %v2443_v1 = vpop.permute.xlu0 %2442  ;;  %v2504_v60 = vrot.slane %v2503_v62, 2  ;;  %v2495_v12 = vrot.slane %v2494_v46, 4  ;;  %v2427_v32 = vpop.permute.xlu1 %2426 }
 0xa1a   :  { %v2492_v55 = vrot.slane %v2491_v44, 1  ;;  %v2626_v19 = vmul.f32 1.442695, %v2601_v10  ;;  %v2468_v57 = vadd.f32 %v2425_v58, %v5335_v54  ;;  %v5427_v29 = vadd.f32 %v2443_v1, %v5344_v20 }
 0xa1b   :  { %v2608_v8 = vmul.f32 1.442695, %v2592_v23  ;;  %v2505_v40 = vmax.f32 %v2503_v62, %v2504_v60  ;;  %v2562_v56 = vrot.slane %v2561_v59, 1  ;;  %v2568_v27 = vmax.f32 %v2566_v49, %v2567_v25 }
 0xa1c   :  { %v2493_v17 = vmax.f32 %v2491_v44, %v2492_v55  ;;  %v2496_v43 = vmax.f32 %v2494_v46, %v2495_v12  ;;  %v2508_v6 = vsel %vm128_vm2, %v2468_v57, -inf  ;;  %v2571_v30 = vsel %vm128_vm2, %v5427_v29, -inf }
 0xa1d   :  { %4497 = vpow2.f32 %v2608_v8  ;;  %v2506_v42 = vrot.slane %v2505_v40, 1  ;;  %v2624_v61 = vmul.f32 1.442695, %v2600_v34  ;;  %v2602_v51 = vsub.f32 %v5392_v38, %v2556_v13 }
 0xa1e   :  { %v2593_v16 = vsub.f32 %v5402_v53, %v2493_v17  ;;  %v2509_v54 = vrot.slane %v2508_v6, 4  ;;  %v2497_v20 = vrot.slane %v2496_v43, 2  ;;  %v2572_v52 = vrot.slane %v2571_v30, 4 }
 0xa1f   :  { %v2507_v4 = vmax.f32 %v2505_v40, %v2506_v42  ;;  %4499 = vpow2.f32 %v2626_v19  ;;  %v2563_v18 = vmax.f32 %v2561_v59, %v2562_v56  ;;  %v2569_v50 = vrot.slane %v2568_v27, 1 }
 0xa20   :  { %v2610_v15 = vmul.f32 1.442695, %v2593_v16  ;;  %v2510_v53 = vmax.f32 %v2508_v6, %v2509_v54  ;;  %v2498_v41 = vmax.f32 %v2496_v43, %v2497_v20  ;;  %v2573_v39 = vmax.f32 %v2571_v30, %v2572_v52 }
 0xa21   :  { %v2595_v28 = vsub.f32 %v5412_v36, %v2507_v4  ;;  %v2628_v47 = vmul.f32 1.442695, %v2602_v51  ;;  %v2570_v62 = vmax.f32 %v2568_v27, %v2569_v50  ;;  %v5436_v55 = vadd.f32 %v2427_v32, %v5346_v22 }
 0xa22   :  { %4501 = vpow2.f32 %v2610_v15  ;;  %v2511_v44 = vrot.slane %v2510_v53, 2  ;;  %v2499_v38 = vrot.slane %v2498_v41, 1  ;;  %v2574_v23 = vrot.slane %v2573_v39, 2 }
 0xa23   :  { %4503 = vpow2.f32 %v2624_v61  ;;  %v2614_v49 = vmul.f32 1.442695, %v2595_v28  ;;  %v2603_v59 = vsub.f32 %v5399_v48, %v2563_v18  ;;  %v2604_v60 = vsub.f32 %v5409_v5, %v2570_v62  ;;  %v2445_v61 = vpop.permute.xlu0 %2444 }
 0xa24   :  { %v2512_v10 = vmax.f32 %v2510_v53, %v2511_v44  ;;  %v2500_v25 = vmax.f32 %v2498_v41, %v2499_v38  ;;  %4505 = vpow2.f32 %v2628_v47  ;;  %v2575_v1 = vmax.f32 %v2573_v39, %v2574_v23  ;;  %v2429_v38 = vpop.permute.xlu1 %2428 }
 0xa25   :  { %4507 = vpow2.f32 %v2614_v49  ;;  %v2515_v13 = vsel %vm128_vm2, %v5436_v55, -inf  ;;  %v2630_v22 = vmul.f32 1.442695, %v2603_v59  ;;  %v2632_v27 = vmul.f32 1.442695, %v2604_v60 }
 0xa26   :  { %v2513_v36 = vrot.slane %v2512_v10, 1  ;;  %v2594_v8 = vsub.f32 %v5420_v14, %v2500_v25  ;;  %v2576_v34 = vrot.slane %v2575_v1, 1  ;;  %v2516_v14 = vrot.slane %v2515_v13, 4 }
 0xa27   :  { %v5439_v58 = vpop.eup %4497  ;;  %v5465_v18 = vadd.f32 %v2445_v61, %v5355_v21 }
 0xa28   :  { %v2514_v46 = vmax.f32 %v2512_v10, %v2513_v36  ;;  %v2612_v17 = vmul.f32 1.442695, %v2594_v8  ;;  %v2640_v48 = vsel %vm128_vm2, %v5439_v58, 0.0  ;;  %v2577_v56 = vmax.f32 %v2575_v1, %v2576_v34  ;;  %v2431_v61 = vpop.permute.xlu1 %2430 }
 0xa29   :  { %v5445_v12 = vpop.eup %4499  ;;  %v2641_v43 = vrot.slane %v2640_v48, 4  ;;  %v2517_v15 = vmax.f32 %v2515_v13, %v2516_v14  ;;  %v2578_v21 = vsel %vm128_vm2, %v5465_v18, -inf  ;;  %v5480_v34 = vadd.f32 %v2429_v38, %v5357_v31 }
 0xa2a   :  { %v2596_v19 = vsub.f32 %v2468_v57, %v2514_v46  ;;  %4509 = vpow2.f32 %v2612_v17  ;;  %v2703_v42 = vsel %vm128_vm2, %v5445_v12, 0.0  ;;  %v2605_v51 = vsub.f32 %v5427_v29, %v2577_v56 }
 0xa2b   :  { %4511 = vpow2.f32 %v2630_v22  ;;  %v2704_v4 = vrot.slane %v2703_v42, 4  ;;  %v2642_v52 = vadd.f32 %v2641_v43, %v2640_v48  ;;  %v2518_v41 = vrot.slane %v2517_v15, 2 }
 0xa2c   :  { %v5449_v40 = vpop.eup %4501  ;;  %v2616_v6 = vmul.f32 1.442695, %v2596_v19  ;;  %4513 = vpow2.f32 %v2632_v27  ;;  %v2634_v28 = vmul.f32 1.442695, %v2605_v51  ;;  %v2579_v8 = vrot.slane %v2578_v21, 4 }
 0xa2d   :  { %v5451_v16 = vpop.eup %4503  ;;  %v2647_v5 = vsel %vm128_vm2, %v5449_v40, 0.0  ;;  %v2705_v39 = vadd.f32 %v2704_v4, %v2703_v42  ;;  %v2643_v44 = vrot.slane %v2642_v52, 2  ;;  %v2519_v49 = vmax.f32 %v2517_v15, %v2518_v41 }
 0xa2e   :  { %v2648_v30 = vrot.slane %v2647_v5, 4  ;;  %v2696_v57 = vsel %vm128_vm2, %v5451_v16, 0.0  ;;  %v5460_v54 = vpop.eup %4505  ;;  %4515 = vpow2.f32 %v2616_v6  ;;  %v2580_v48 = vmax.f32 %v2578_v21, %v2579_v8 }
 0xa2f   :  { %v5462_v20 = vpop.eup %4507  ;;  %v2697_v50 = vrot.slane %v2696_v57, 4  ;;  %v2710_v29 = vsel %vm128_vm2, %v5460_v54, 0.0  ;;  %4517 = vpow2.f32 %v2634_v28  ;;  %v2520_v1 = vrot.slane %v2519_v49, 1 }
 0xa30   :  { %v2649_v53 = vadd.f32 %v2648_v30, %v2647_v5  ;;  %v2661_v32 = vsel %vm128_vm2, %v5462_v20, 0.0  ;;  %v2706_v60 = vrot.slane %v2705_v39, 2  ;;  %v2711_v46 = vrot.slane %v2710_v29, 4 }
 0xa31   :  { %v2698_v62 = vadd.f32 %v2697_v50, %v2696_v57  ;;  %v2662_v25 = vrot.slane %v2661_v32, 4  ;;  %v2644_v13 = vadd.f32 %v2643_v44, %v2642_v52  ;;  %v2521_v17 = vmax.f32 %v2519_v49, %v2520_v1 }
 0xa32   :  { %v2650_v10 = vrot.slane %v2649_v53, 2  ;;  %v2522_v27 = vsel %vm128_vm2, %v5480_v34, -inf  ;;  %v2581_v30 = vrot.slane %v2580_v48, 2  ;;  %v5491_v57 = vadd.f32 %v2706_v60, %v2705_v39 }
 0xa33   :  { %v2699_v56 = vrot.slane %v2698_v62, 2  ;;  %v2663_v43 = vadd.f32 %v2662_v25, %v2661_v32  ;;  %v2597_v31 = vsub.f32 %v5436_v55, %v2521_v17  ;;  %v2712_v51 = vadd.f32 %v2711_v46, %v2710_v29  ;;  %v2447_v46 = vpop.permute.xlu1 %2446 }
 0xa34   :  { %v5471_v47 = vpop.eup %4509  ;;  %v2651_v5 = vadd.f32 %v2650_v10, %v2649_v53  ;;  %v2523_v4 = vrot.slane %v2522_v27, 4  ;;  %v2645_v52 = vrot.slane %v2644_v13, 1  ;;  %v2582_v28 = vmax.f32 %v2580_v48, %v2581_v30 }
 0xa35   :  { %v2654_v23 = vsel %vm128_vm2, %v5471_v47, 0.0  ;;  %v5477_v59 = vpop.eup %4511  ;;  %v2618_v53 = vmul.f32 1.442695, %v2597_v31  ;;  %v5498_v55 = vadd.f32 %v2431_v61, %v5364_v33  ;;  %v2664_v29 = vrot.slane %v2663_v43, 2 }
 0xa36   :  { %v2655_v36 = vrot.slane %v2654_v23, 4  ;;  %v5482_v19 = vpop.eup %4513  ;;  %v2717_v14 = vsel %vm128_vm2, %v5477_v59, 0.0  ;;  %v2524_v44 = vmax.f32 %v2522_v27, %v2523_v4  ;;  %v2652_v39 = vrot.slane %v2651_v5, 1 }
 0xa37   :  { %v2718_v41 = vrot.slane %v2717_v14, 4  ;;  %v2724_v32 = vsel %vm128_vm2, %v5482_v19, 0.0  ;;  %4519 = vpow2.f32 %v2618_v53  ;;  %v2700_v38 = vadd.f32 %v2699_v56, %v2698_v62 }
 0xa38   :  { %v2656_v22 = vadd.f32 %v2655_v36, %v2654_v23  ;;  %v5488_v42 = vpop.eup %4515  ;;  %v2583_v10 = vrot.slane %v2582_v28, 1  ;;  %v2525_v23 = vrot.slane %v2524_v44, 2  ;;  %v2529_v25 = vsel %vm128_vm2, %v5498_v55, -inf }
 0xa39   :  { %v2668_v15 = vsel %vm128_vm2, %v5488_v42, 0.0  ;;  %v5500_v49 = vpop.eup %4517  ;;  %v2708_v36 = vrot.slane %v5491_v57, 1  ;;  %v2646_v1 = vadd.f32 %v2645_v52, %v2644_v13  ;;  %v2725_v8 = vrot.slane %v2724_v32, 4 }
 0xa3a   :  { %v2657_v6 = vrot.slane %v2656_v22, 2  ;;  %v2669_v50 = vrot.slane %v2668_v15, 4  ;;  %v2731_v33 = vsel %vm128_vm2, %v5500_v49, 0.0  ;;  %v2584_v17 = vmax.f32 %v2582_v28, %v2583_v10 }
 0xa3b   :  { %v2526_v48 = vmax.f32 %v2524_v44, %v2525_v23  ;;  %v2530_v27 = vrot.slane %v2529_v25, 4  ;;  %v2665_v62 = vadd.f32 %v2664_v29, %v2663_v43  ;;  %v2713_v31 = vrot.slane %v2712_v51, 2 }
 0xa3c   :  { %v2658_v21 = vadd.f32 %v2657_v6, %v2656_v22  ;;  %v2670_v60 = vadd.f32 %v2669_v50, %v2668_v15  ;;  %v2719_v22 = vadd.f32 %v2718_v41, %v2717_v14  ;;  %v2653_v6 = vadd.f32 %v2652_v39, %v2651_v5 }
 0xa3d   :  { %v2606_v30 = vsub.f32 %v5465_v18, %v2584_v17  ;;  %v2527_v61 = vrot.slane %v2526_v48, 1  ;;  %v5509_v4 = vadd.f32 %v2447_v46, %v5372_v24  ;;  %v2701_v13 = vrot.slane %v2700_v38, 1 }
 0xa3e   :  { %v2659_v56 = vrot.slane %v2658_v21, 1  ;;  %v2671_v15 = vrot.slane %v2670_v60, 2  ;;  %v2732_v52 = vrot.slane %v2731_v33, 4  ;;  %v2531_v50 = vmax.f32 %v2529_v25, %v2530_v27 }
 0xa3f   :  { %4521 = vrcp.f32 %v2646_v1  ;;  %v2726_v53 = vadd.f32 %v2725_v8, %v2724_v32  ;;  %v2636_v28 = vmul.f32 1.442695, %v2606_v30  ;;  %v2528_v44 = vmax.f32 %v2526_v48, %v2527_v61 }
 0xa40   :  { %v2720_v10 = vrot.slane %v2719_v22, 2  ;;  %4523 = vrcp.f32 %v2653_v6  ;;  %v2666_v14 = vrot.slane %v2665_v62, 1  ;;  %v2660_v5 = vadd.f32 %v2659_v56, %v2658_v21 }
 0xa41   :  { %4525 = vpow2.f32 %v2636_v28  ;;  %v2598_v43 = vsub.f32 %v5480_v34, %v2528_v44  ;;  %v2532_v18 = vrot.slane %v2531_v50, 2  ;;  %v2585_v24 = vsel %vm128_vm2, %v5509_v4, -inf  ;;  %v5514_v41 = vpop.eup %4519 }
 0xa42   :  { %v2702_v39 = vadd.f32 %v2701_v13, %v2700_v38  ;;  %v2714_v29 = vadd.f32 %v2713_v31, %v2712_v51  ;;  %v2672_v23 = vadd.f32 %v2671_v15, %v2670_v60  ;;  %v2733_v25 = vadd.f32 %v2732_v52, %v2731_v33 }
 0xa43   :  { %v2727_v32 = vrot.slane %v2726_v53, 2  ;;  %v2675_v1 = vsel %vm128_vm2, %v5514_v41, 0.0  ;;  %v2620_v8 = vmul.f32 1.442695, %v2598_v43  ;;  %v2533_v46 = vmax.f32 %v2531_v50, %v2532_v18 }
 0xa44   :  { %v2721_v21 = vadd.f32 %v2720_v10, %v2719_v22  ;;  %4527 = vrcp.f32 %v2660_v5  ;;  %v2676_v17 = vrot.slane %v2675_v1, 4  ;;  %v2586_v34 = vrot.slane %v2585_v24, 4 }
 0xa45   :  { %v2667_v48 = vadd.f32 %v2666_v14, %v2665_v62  ;;  %4529 = vpow2.f32 %v2620_v8  ;;  %v2534_v27 = vrot.slane %v2533_v46, 1  ;;  %v2673_v6 = vrot.slane %v2672_v23, 1 }
 0xa46   :  { %v2734_v56 = vrot.slane %v2733_v25, 2  ;;  %v2677_v30 = vadd.f32 %v2676_v17, %v2675_v1  ;;  %v2587_v38 = vmax.f32 %v2585_v24, %v2586_v34  ;;  %v2709_v51 = vadd.f32 %v2708_v36, %v5491_v57  ;;  %v5530_v34 = vpop.permute.xlu0 %2784 }
 0xa47   :  { %v2715_v60 = vrot.slane %v2714_v29, 1  ;;  %v2728_v33 = vadd.f32 %v2727_v32, %v2726_v53  ;;  %v2535_v31 = vmax.f32 %v2533_v46, %v2534_v27  ;;  %4531 = vrcp.f32 %v2702_v39 }
 0xa48   :  { %v2722_v61 = vrot.slane %v2721_v21, 1  ;;  %v2678_v13 = vrot.slane %v2677_v30, 2  ;;  %v2588_v15 = vrot.slane %v2587_v38, 2  ;;  %4533 = vrcp.f32 %v2667_v48 }
 0xa49   :  { %v4522_v22 = vpop.eup %4521  ;;  %v2599_v52 = vsub.f32 %v5498_v55, %v2535_v31  ;;  %v2674_v50 = vadd.f32 %v2673_v6, %v2672_v23  ;;  %v2735_v28 = vadd.f32 %v2734_v56, %v2733_v25  ;;  %4535 = vrcp.f32 %v2709_v51 }
 0xa4a   :  { %v4524_v62 = vpop.eup %4523  ;;  %v2679_v44 = vadd.f32 %v2678_v13, %v2677_v30  ;;  %v2589_v10 = vmax.f32 %v2587_v38, %v2588_v15  ;;  %v2716_v57 = vadd.f32 %v2715_v60, %v2714_v29  ;;  %v2729_v36 = vrot.slane %v2728_v33, 1 }
 0xa4b   :  { %v5520_v14 = vpop.eup %4525  ;;  %v2622_v53 = vmul.f32 1.442695, %v2599_v52  ;;  %v2723_v5 = vadd.f32 %v2722_v61, %v2721_v21  ;;  %v2753_v39 = vmul.f32 %v4522_v22, %v5439_v58  ;;  %v2755_v55 = vmul.f32 %v4524_v62, %v5449_v40 }
 0xa4c   :  { %v2680_v43 = vrot.slane %v2679_v44, 1  ;;  %v2738_v18 = vsel %vm128_vm2, %v5520_v14, 0.0  ;;  %v2590_v24 = vrot.slane %v2589_v10, 1  ;;  %v2736_v32 = vrot.slane %v2735_v28, 1 }
 0xa4d   :  { %v2739_v23 = vrot.slane %v2738_v18, 4  ;;  %4537 = vpow2.f32 %v2622_v53  ;;  %v2730_v46 = vadd.f32 %v2729_v36, %v2728_v33  ;;  %v2790_v27 = vmul.f32 %v5530_v34, %v2753_v39 }
 0xa4e   :  { %v4528_v25 = vpop.eup %4527  ;;  %4539 = vrcp.f32 %v2674_v50  ;;  %v2681_v1 = vadd.f32 %v2680_v43, %v2679_v44  ;;  %v2591_v8 = vmax.f32 %v2589_v10, %v2590_v24  ;;  %v2737_v30 = vadd.f32 %v2736_v32, %v2735_v28 }
 0xa4f   :  { %v5526_v29 = vpop.eup %4529  ;;  %4541 = vrcp.f32 %v2716_v57  ;;  %v2740_v21 = vadd.f32 %v2739_v23, %v2738_v18  ;;  %v2757_v56 = vmul.f32 %v4528_v25, %v5471_v47  ;;  %v2791_v38 = vmul.f32 %v5530_v34, %v2755_v55 }
 0xa50   :  { %4543 = vrcp.f32 %v2681_v1  ;;  %v2682_v17 = vsel %vm128_vm2, %v5526_v29, 0.0  ;;  %v2607_v58 = vsub.f32 %v5509_v4, %v2591_v8  ;;  %v2806_v15 = vsel %vm128_vm2, %v2790_v27, 0.0 }
 0xa51   :  { %4545 = vrcp.f32 %v2723_v5  ;;  %v2741_v40 = vrot.slane %v2740_v21, 2  ;;  %v2683_v48 = vrot.slane %v2682_v17, 4  ;;  %v4532_v6 = vpop.eup %4531  ;;  %v2792_v52 = vmul.f32 %v5530_v34, %v2757_v56 }
 0xa52   :  { %v2638_v51 = vmul.f32 1.442695, %v2607_v58  ;;  %v4534_v60 = vpop.eup %4533  ;;  %4547 = vrcp.f32 %v2730_v46  ;;  %v2813_v47 = vsel %vm128_vm2, %v2791_v38, 0.0  ;;  %v2769_v50 = vmul.f32 %v4532_v6, %v5451_v16  ;;  %v5548_v16 = vpop.permute.xlu1 %2786 }
 0xa53   :  { %v2742_v33 = vadd.f32 %v2741_v40, %v2740_v21  ;;  %v2684_v31 = vadd.f32 %v2683_v48, %v2682_v17  ;;  %v4536_v61 = vpop.eup %4535  ;;  %v2759_v22 = vmul.f32 %v4534_v60, %v5462_v20  ;;  %v2807_v57 = vrot.slane %v2806_v15, 4 }
 0xa54   :  { %4549 = vpow2.f32 %v2638_v51  ;;  %v2814_v20 = vrot.slane %v2813_v47, 4  ;;  %v2771_v24 = vmul.f32 %v4536_v61, %v5445_v12  ;;  %v2820_v55 = vsel %vm128_vm2, %v2792_v52, 0.0 }
 0xa55   :  { %v2743_v13 = vrot.slane %v2742_v33, 1  ;;  %v2685_v4 = vrot.slane %v2684_v31, 2  ;;  %4551 = vrcp.f32 %v2737_v30  ;;  %v2793_v39 = vmul.f32 %v5530_v34, %v2759_v22 }
 0xa56   :  { %v2798_v8 = vmul.f32 %v5548_v16, %v2769_v50  ;;  %v2808_v17 = vadd.f32 %v2807_v57, %v2806_v15  ;;  %v2815_v12 = vadd.f32 %v2814_v20, %v2813_v47  ;;  %v2821_v40 = vrot.slane %v2820_v55, 4 }
 0xa57   :  { %v5540_v62 = vpop.eup %4537  ;;  %v2744_v28 = vadd.f32 %v2743_v13, %v2742_v33  ;;  %v2686_v44 = vadd.f32 %v2685_v4, %v2684_v31  ;;  %v2799_v56 = vmul.f32 %v5548_v16, %v2771_v24 }
 0xa58   :  { %v4540_v10 = vpop.eup %4539  ;;  %v2689_v36 = vsel %vm128_vm2, %v5540_v62, 0.0  ;;  %v2809_v61 = vrot.slane %v2808_v17, 2  ;;  %v2816_v13 = vrot.slane %v2815_v12, 2  ;;  %v2822_v4 = vadd.f32 %v2821_v40, %v2820_v55 }
 0xa59   :  { %v4542_v53 = vpop.eup %4541  ;;  %4553 = vrcp.f32 %v2744_v28  ;;  %v2687_v5 = vrot.slane %v2686_v44, 1  ;;  %v2690_v43 = vrot.slane %v2689_v36, 4  ;;  %v2761_v25 = vmul.f32 %v4540_v10, %v5488_v42 }
 0xa5a   :  { %v4544_v18 = vpop.eup %4543  ;;  %v2773_v46 = vmul.f32 %v4542_v53, %v5460_v54  ;;  %v2827_v42 = vsel %vm128_vm2, %v2793_v39, 0.0  ;;  %v2869_v50 = vsel %vm128_vm2, %v2799_v56, 0.0  ;;  %v2823_v24 = vrot.slane %v2822_v4, 2 }
 0xa5b   :  { %v4546_v23 = vpop.eup %4545  ;;  %v2688_v32 = vadd.f32 %v2687_v5, %v2686_v44  ;;  %v2691_v1 = vadd.f32 %v2690_v43, %v2689_v36  ;;  %v2763_v21 = vmul.f32 %v4544_v18, %v5514_v41  ;;  %v2794_v30 = vmul.f32 %v5530_v34, %v2761_v25 }
 0xa5c   :  { %v4548_v58 = vpop.eup %4547  ;;  %v2775_v6 = vmul.f32 %v4546_v23, %v5477_v59  ;;  %v2862_v41 = vsel %vm128_vm2, %v2798_v8, 0.0  ;;  %v2800_v31 = vmul.f32 %v5548_v16, %v2773_v46  ;;  %v2828_v22 = vrot.slane %v2827_v42, 4 }
 0xa5d   :  { %4555 = vrcp.f32 %v2688_v32  ;;  %v2692_v48 = vrot.slane %v2691_v1, 2  ;;  %v2777_v60 = vmul.f32 %v4548_v58, %v5482_v19  ;;  %v2795_v59 = vmul.f32 %v5530_v34, %v2763_v21 }
 0xa5e   :  { %v5554_v27 = vpop.eup %4549  ;;  %v2863_v47 = vrot.slane %v2862_v41, 4  ;;  %v2801_v19 = vmul.f32 %v5548_v16, %v2775_v6  ;;  %v2834_v57 = vsel %vm128_vm2, %v2794_v30, 0.0  ;;  %v2876_v5 = vsel %vm128_vm2, %v2800_v31, 0.0 }
 0xa5f   :  { %v2693_v38 = vadd.f32 %v2692_v48, %v2691_v1  ;;  %v2745_v54 = vsel %vm128_vm2, %v5554_v27, 0.0  ;;  %v4552_v51 = vpop.eup %4551  ;;  %v2841_v20 = vsel %vm128_vm2, %v2795_v59, 0.0  ;;  %v2802_v43 = vmul.f32 %v5548_v16, %v2777_v60 }
 0xa60   :  { %v2746_v33 = vrot.slane %v2745_v54, 4  ;;  %v2779_v44 = vmul.f32 %v4552_v51, %v5500_v49  ;;  %v2870_v18 = vrot.slane %v2869_v50, 4  ;;  %v2864_v55 = vadd.f32 %v2863_v47, %v2862_v41 }
 0xa61   :  { %v2694_v15 = vrot.slane %v2693_v38, 1  ;;  %v2829_v49 = vadd.f32 %v2828_v22, %v2827_v42  ;;  %v2835_v23 = vrot.slane %v2834_v57, 4  ;;  %v2877_v1 = vrot.slane %v2876_v5, 4 }
 0xa62   :  { %v2747_v52 = vadd.f32 %v2746_v33, %v2745_v54  ;;  %v2803_v32 = vmul.f32 %v5548_v16, %v2779_v44  ;;  %v2842_v8 = vrot.slane %v2841_v20, 4  ;;  %v2817_v58 = vadd.f32 %v2816_v13, %v2815_v12 }
 0xa63   :  { %v4554_v28 = vpop.eup %4553  ;;  %v2695_v10 = vadd.f32 %v2694_v15, %v2693_v38  ;;  %v2871_v48 = vadd.f32 %v2870_v18, %v2869_v50  ;;  %v2890_v6 = vsel %vm128_vm2, %v2802_v43, 0.0  ;;  %v2810_v56 = vadd.f32 %v2809_v61, %v2808_v17 }
 0xa64   :  { %v2781_v36 = vmul.f32 %v4554_v28, %v5520_v14  ;;  %v2748_v53 = vrot.slane %v2747_v52, 2  ;;  %v2883_v14 = vsel %vm128_vm2, %v2801_v19, 0.0  ;;  %v2824_v30 = vadd.f32 %v2823_v24, %v2822_v4 }
 0xa65   :  { %4557 = vrcp.f32 %v2695_v10  ;;  %v2830_v54 = vrot.slane %v2829_v49, 2  ;;  %v2836_v41 = vadd.f32 %v2835_v23, %v2834_v57  ;;  %v2878_v51 = vadd.f32 %v2877_v1, %v2876_v5 }
 0xa66   :  { %v2749_v39 = vadd.f32 %v2748_v53, %v2747_v52  ;;  %v2804_v40 = vmul.f32 %v5548_v16, %v2781_v36  ;;  %v2884_v60 = vrot.slane %v2883_v14, 4  ;;  %v2843_v33 = vadd.f32 %v2842_v8, %v2841_v20 }
 0xa67   :  { %v4556_v25 = vpop.eup %4555  ;;  %v2897_v31 = vsel %vm128_vm2, %v2803_v32, 0.0  ;;  %v2891_v13 = vrot.slane %v2890_v6, 4  ;;  %v2811_v15 = vrot.slane %v2810_v56, 1  ;;  %v2825_v17 = vrot.slane %v2824_v30, 1 }
 0xa68   :  { %v2765_v46 = vmul.f32 %v4556_v25, %v5526_v29  ;;  %v2750_v21 = vrot.slane %v2749_v39, 1  ;;  %v2818_v29 = vrot.slane %v2817_v58, 1  ;;  %v2904_v59 = vsel %vm128_vm2, %v2804_v40, 0.0 }
 0xa69   :  { %v2865_v4 = vrot.slane %v2864_v55, 2  ;;  %v2831_v22 = vadd.f32 %v2830_v54, %v2829_v49  ;;  %v2837_v52 = vrot.slane %v2836_v41, 2  ;;  %v2898_v47 = vrot.slane %v2897_v31, 4 }
 0xa6a   :  { %v2751_v42 = vadd.f32 %v2750_v21, %v2749_v39  ;;  %v2796_v38 = vmul.f32 %v5530_v34, %v2765_v46  ;;  %v2872_v28 = vrot.slane %v2871_v48, 2  ;;  %v2844_v44 = vrot.slane %v2843_v33, 2 }
 0xa6b   :  { %v2905_v19 = vrot.slane %v2904_v59, 4  ;;  %v2879_v36 = vrot.slane %v2878_v51, 2  ;;  %v2885_v53 = vadd.f32 %v2884_v60, %v2883_v14  ;;  %v2819_v5 = vadd.f32 %v2818_v29, %v2817_v58 }
 0xa6c   :  { %4559 = vrcp.f32 %v2751_v42  ;;  %v2848_v12 = vsel %vm128_vm2, %v2796_v38, 0.0  ;;  %v2812_v20 = vadd.f32 %v2811_v15, %v2810_v56  ;;  %v2826_v43 = vadd.f32 %v2825_v17, %v2824_v30 }
 0xa6d   :  { %v2849_v61 = vrot.slane %v2848_v12, 4  ;;  %v2892_v24 = vadd.f32 %v2891_v13, %v2890_v6  ;;  %v2832_v23 = vrot.slane %v2831_v22, 1  ;;  %v2838_v49 = vadd.f32 %v2837_v52, %v2836_v41 }
 0xa6e   :  { %v2899_v25 = vadd.f32 %v2898_v47, %v2897_v31  ;;  %v2866_v32 = vadd.f32 %v2865_v4, %v2864_v55  ;;  %v2845_v1 = vadd.f32 %v2844_v44, %v2843_v33  ;;  %v2906_v8 = vadd.f32 %v2905_v19, %v2904_v59 }
 0xa6f   :  { %v4558_v50 = vpop.eup %4557  ;;  %v2850_v10 = vadd.f32 %v2849_v61, %v2848_v12  ;;  %v2886_v40 = vrot.slane %v2885_v53, 2  ;;  %v2873_v14 = vadd.f32 %v2872_v28, %v2871_v48  ;;  %v2893_v30 = vrot.slane %v2892_v24, 2 }
 0xa70   :  { %v2767_v57 = vmul.f32 %v4558_v50, %v5540_v62  ;;  %v2940_v62 = vsel %vm952_vm3, %v2819_v5, %v2812_v20  ;;  %v2833_v42 = vadd.f32 %v2832_v23, %v2831_v22  ;;  %v2880_v38 = vadd.f32 %v2879_v36, %v2878_v51 }
 0xa71   :  { %v2851_v18 = vrot.slane %v2850_v10, 2  ;;  %v2941_v56 = vsel %vm954_vm4, %v2826_v43, %v2940_v62  ;;  %v2900_v54 = vrot.slane %v2899_v25, 2  ;;  %v2846_v41 = vrot.slane %v2845_v1, 1 }
 0xa72   :  { %v2797_v39 = vmul.f32 %v5530_v34, %v2767_v57  ;;  %v2839_v34 = vrot.slane %v2838_v49, 1  ;;  %v2907_v33 = vrot.slane %v2906_v8, 2  ;;  %v2867_v29 = vrot.slane %v2866_v32, 1 }
 0xa73   :  { %v2852_v46 = vadd.f32 %v2851_v18, %v2850_v10  ;;  %v2887_v12 = vadd.f32 %v2886_v40, %v2885_v53  ;;  %v2942_v48 = vsel %vm956_vm5, %v2833_v42, %v2941_v56  ;;  %v2894_v15 = vadd.f32 %v2893_v30, %v2892_v24 }
 0xa74   :  { %v2855_v21 = vsel %vm128_vm2, %v2797_v39, 0.0  ;;  %v2840_v17 = vadd.f32 %v2839_v34, %v2838_v49  ;;  %v2874_v61 = vrot.slane %v2873_v14, 1  ;;  %v2881_v4 = vrot.slane %v2880_v38, 1  ;;  %v4235_v34 = vld [vmem:[%s5812_s2 + $0x88] ss:$0 sm:$0xff] }
 0xa75   :  { %v2856_v58 = vrot.slane %v2855_v21, 4  ;;  %v2853_v31 = vrot.slane %v2852_v46, 1  ;;  %v2901_v22 = vadd.f32 %v2900_v54, %v2899_v25  ;;  %v2847_v51 = vadd.f32 %v2846_v41, %v2845_v1 }
 0xa76   :  { %v4560_v6 = vpop.eup %4559  ;;  %v2908_v47 = vadd.f32 %v2907_v33, %v2906_v8  ;;  %v2943_v28 = vsel %vm958_vm6, %v2840_v17, %v2942_v48  ;;  %v2888_v44 = vrot.slane %v2887_v12, 1  ;;  %v2895_v57 = vrot.slane %v2894_v15, 1 }
 0xa77   :  { %v2783_v55 = vmul.f32 %v4560_v6, %v5554_v27  ;;  %v2857_v60 = vadd.f32 %v2856_v58, %v2855_v21  ;;  %v2854_v50 = vadd.f32 %v2853_v31, %v2852_v46  ;;  %v2868_v36 = vadd.f32 %v2867_v29, %v2866_v32 }
 0xa78   :  { %v2875_v53 = vadd.f32 %v2874_v61, %v2873_v14  ;;  %v2944_v43 = vsel %vm960_vm7, %v2847_v51, %v2943_v28  ;;  %v2882_v18 = vadd.f32 %v2881_v4, %v2880_v38  ;;  %v2909_v24 = vrot.slane %v2908_v47, 1  ;;  %v4241_v51 = vld [vmem:[%s5813_s3 + $0x48] sm:$0xff] }
 0xa79   :  { %v2858_v59 = vrot.slane %v2857_v60, 2  ;;  %v2805_v13 = vmul.f32 %v5548_v16, %v2783_v55  ;;  %v2902_v16 = vrot.slane %v2901_v22, 1  ;;  %v2945_v39 = vsel %vm962_vm8, %v2854_v50, %v2944_v43 }
 0xa7a   :  { %v2889_v23 = vadd.f32 %v2888_v44, %v2887_v12  ;;  %v2896_v1 = vadd.f32 %v2895_v57, %v2894_v15  ;;  %v2947_v32 = vsel %vm952_vm3, %v2875_v53, %v2868_v36  ;;  %v2910_v21 = vadd.f32 %v2909_v24, %v2908_v47  ;;  %v4243_v57 = vld [vmem:[%s5813_s3 + $0x58] sm:$0xff] }
 0xa7b   :  { %v2859_v52 = vadd.f32 %v2858_v59, %v2857_v60  ;;  %v2911_v27 = vsel %vm128_vm2, %v2805_v13, 0.0  ;;  %v2903_v8 = vadd.f32 %v2902_v16, %v2901_v22  ;;  %v2948_v62 = vsel %vm954_vm4, %v2882_v18, %v2947_v32 }
 0xa7c   :  { %v2912_v10 = vrot.slane %v2911_v27, 4  ;;  %v2949_v14 = vsel %vm956_vm5, %v2889_v23, %v2948_v62  ;;  %v4260_v50 = vcombine.low %v4241_v51, %v4241_v51  ;;  %v4265_v36 = vcombine.high %v4243_v57, %v4243_v57  ;;  %v4238_v23 = vld [vmem:[%s5812_s2 + $0x98] ss:$0 sm:$0xff] }
 0xa7d   :  { %v2860_v19 = vrot.slane %v2859_v52, 1  ;;  %v2950_v58 = vsel %vm958_vm6, %v2896_v1, %v2949_v14  ;;  %v4244_v14 = vld [vmem:[%s5813_s3 + $0x60] sm:$0xff] }
 0xa7e   :  { %v2913_v5 = vadd.f32 %v2912_v10, %v2911_v27  ;;  %v2951_v30 = vsel %vm960_vm7, %v2903_v8, %v2950_v58  ;;  %v4261_v27 = vcombine.high %v4241_v51, %v4241_v51  ;;  %v3229_v44 = vsel %vm1239_vm10, %v4260_v50, 0  ;;  %v4242_v10 = vld [vmem:[%s5813_s3 + $0x50] sm:$0xff]  ;;  %v4239_v8 = vld [vmem:[%s5812_s2 + $0xa0] ss:$0 sm:$0xff]  ;;  %v4245_v58 = vld [vmem:[%s5813_s3 + $0x68] sm:$0xff] }
 0xa7f   :  { %v2861_v20 = vadd.f32 %v2860_v19, %v2859_v52  ;;  %v2952_v6 = vsel %vm962_vm8, %v2910_v21, %v2951_v30  ;;  %v4263_v19 = vcombine.high %v4242_v10, %v4242_v10  ;;  %v4262_v32 = vcombine.low %v4242_v10, %v4242_v10 }
 0xa80   :  { %v2914_v49 = vrot.slane %v2913_v5, 2  ;;  %4276 = vmatprep.subr.msk.bf16.mxu0 %vm1239_vm10, %v4261_v27  ;;  %v4264_v21 = vcombine.low %v4243_v57, %v4243_v57 }
 0xa81   :  { %v2946_v25 = vsel %vm964_vm9, %v2861_v20, %v2945_v39  ;;  %v3235_v30 = vsel %vm1239_vm10, %v4262_v32, 0 }
 0xa82   :  { %4350 = vmatprep.mubr.msk.f32.mxu0 %vm128_vm2, %v2946_v25  ;;  %v2915_v46 = vadd.f32 %v2914_v49, %v2913_v5 }
 0xa84   :  { %v2916_v40 = vrot.slane %v2915_v46, 1 }
 0xa86   :  { %v2917_v56 = vadd.f32 %v2916_v40, %v2915_v46 }
 0xa88   :  { %v2953_v42 = vsel %vm964_vm9, %v2917_v56, %v2952_v6  ;;  %v3241_v6 = vsel %vm1239_vm10, %v4264_v21, 0 }
 0xa89   :  { %4351 = vmatmul.mubr.msk.f32.vlgmr.msra.gmra.mrb[36].mxu0 %vm128_vm2, %v2953_v42  ;;  %v4267_v42 = vcombine.high %v4244_v14, %v4244_v14 }
 0xa8a   :  { %3345 = vmatprep.mubr.bf16.mxu0 %v4605_v2  ;;  %3314 = vmatpush1.bf16.msra.mxu0 %v3229_v44 }
 0xa8b   :  { %4280 = vmatprep.subr.msk.bf16.mxu0 %vm1239_vm10, %v4265_v36 }
 0xb5c   :  { %v4352_v38 = vpop.f32.mrb[36].mxu0 }
 0xb5d   :  { %v3030_v54 = vadd.f32 %v4352_v38, %v4235_v34  ;;  %v3024_v55 = vpop.f32.mrb[37].mxu0  ;;  %v4266_v38 = vcombine.low %v4244_v14, %v4244_v14 }
 0xb5e   :  { %v3025_v41 = vadd.f32 %v4235_v34, %v3024_v55  ;;  %v4269_v34 = vcombine.high %v4245_v58, %v4245_v58  ;;  %v4246_v55 = vld [vmem:[%s5813_s3 + $0x70] sm:$0xff] }
 0xb5f   :  { %v3034_v60 = vadd.f32 %v3030_v54, %v5248_v37  ;;  %v4268_v54 = vcombine.low %v4245_v58, %v4245_v58 }
 0xb60   :  { %v3033_v33 = vadd.f32 %v3025_v41, %v5246_v45  ;;  %v4240_v45 = vld [vmem:[%s5813_s3 + $0x40] sm:$0xff]  ;;  %v4247_v41 = vld [vmem:[%s5813_s3 + $0x78] sm:$0xff] }
 0xb61   :  { %v3040_v31 = vsel %vm128_vm2, %v3034_v60, 0.0  ;;  %v4259_v52 = vcombine.high %v4240_v45, %v4240_v45  ;;  %v4258_v47 = vcombine.low %v4240_v45, %v4240_v45  ;;  %v5695_v45 = vld [vmem:[%s5815_s5 + $0x58] sm:$0xff] }
 0xb62   :  { %3041 = vadd.xlane.f32.xlu1 %v3040_v31  ;;  %v3037_v29 = vsel %vm128_vm2, %v3033_v33, 0.0  ;;  %v4271_v31 = vcombine.high %v4246_v55, %v4246_v55 }
 0xb63   :  { %3038 = vadd.xlane.f32.xlu0 %v3037_v29  ;;  %4274 = vmatprep.subr.msk.bf16.mxu1 %vm1239_vm10, %v4259_v52  ;;  %v3223_v28 = vsel %vm1239_vm10, %v4258_v47, 0  ;;  %v4273_v29 = vcombine.high %v4247_v41, %v4247_v41  ;;  %v4298_v52 = vcombine.high %v5695_v45, %v5695_v45  ;;  %v4256_v47 = vld [vmem:[%s5814_s4 + $0x10] sm:$0xff] }
 0xb64   :  { %3271 = vmatpush1.bf16.msra.mxu1 %v3223_v28  ;;  %v3102_v27 = vrot.slane %v4256_v47, %v4689_v26  ;;  %v3110_v50 = vrot.slane %v4256_v47, %v5136_v11  ;;  %v3106_v28 = vrot.slane %v4256_v47, %v5142_v63  ;;  %v3114_v44 = vrot.slane %v4256_v47, %v5145_v35 }
 0xb65   :  { %4278 = vmatprep.subr.msk.bf16.mxu1 %vm1239_vm10, %v4263_v19  ;;  %v3122_v32 = vrot.slane %v4256_v47, %v5158_v3  ;;  %v3130_v21 = vrot.slane %v4256_v47, %v5161_v7 }
 0xbef   :  { %v3042_v12 = vpop.xlane.xlu1 %3041 }
 0xbf0   :  { %v3044_v59 = vmul.f32 0.125, %v3042_v12  ;;  %v3039_v48 = vpop.xlane.xlu0 %3038  ;;  %v4270_v12 = vcombine.low %v4246_v55, %v4246_v55  ;;  %v5720_v55 = vld [vmem:[%s5815_s5 + $0x60] sm:$0xff] }
 0xbf1   :  { %v3043_v13 = vmul.f32 0.125, %v3039_v48 }
 0xbf2   :  { %v3046_v15 = vsub.f32 %v3034_v60, %v3044_v59  ;;  %v3247_v60 = vsel %vm1239_vm10, %v4266_v38, 0  ;;  %v4272_v59 = vcombine.low %v4247_v41, %v4247_v41  ;;  %v3259_v48 = vsel %vm1239_vm10, %v4270_v12, 0  ;;  %v5725_v41 = vld [vmem:[%s5815_s5 + $0x68] sm:$0xff] }
 0xbf3   :  { %v3045_v17 = vsub.f32 %v3033_v33, %v3043_v13  ;;  %v3253_v33 = vsel %vm1239_vm10, %v4268_v54, 0 }
 0xbf4   :  { %v3048_v22 = vmul.f32 %v3046_v15, %v3046_v15  ;;  %v3265_v13 = vsel %vm1239_vm10, %v4272_v59, 0 }
 0xbf5   :  { %v3047_v61 = vmul.f32 %v3045_v17, %v3045_v17 }
 0xbf6   :  { %v3052_v37 = vsel %vm128_vm2, %v3048_v22, 0.0 }
 0xbf7   :  { %v3049_v4 = vsel %vm128_vm2, %v3047_v61, 0.0 }
 0xbf8   :  { %3050 = vadd.xlane.f32.xlu0 %v3049_v4 }
 0xbfc   :  { %3053 = vadd.xlane.f32.xlu0 %v3052_v37 }
 0xc85   :  { %v3051_v53 = vpop.xlane.xlu0 %3050 }
 0xc86   :  { %v3055_v16 = vmul.f32 0.125, %v3051_v53 }
 0xc88   :  { %v3057_v5 = vadd.f32 1e-05, %v3055_v16 }
 0xc89   :  { %v3054_v20 = vpop.xlane.xlu0 %3053 }
 0xc8a   :  { %4561 = vrsqrt.f32 %v3057_v5  ;;  %v3056_v43 = vmul.f32 0.125, %v3054_v20 }
 0xc8c   :  { %v3058_v18 = vadd.f32 1e-05, %v3056_v43 }
 0xc8e   :  { %4563 = vrsqrt.f32 %v3058_v18 }
 0xc94   :  { %v4562_v24 = vpop.eup %4561 }
 0xc95   :  { %v3061_v39 = vmul.f32 %v4562_v24, %v3045_v17  ;;  %v4249_v17 = vld [vmem:[%s5815_s5 + $0x48] sm:$0xff] }
 0xc96   :  { %v4294_v4 = vcombine.high %v4249_v17, %v4249_v17  ;;  %v4293_v37 = vcombine.low %v4249_v17, %v4249_v17 }
 0xc97   :  { %v3067_v25 = vmul.f32 %v4238_v23, %v3061_v39 }
 0xc98   :  { %v4564_v49 = vpop.eup %4563 }
 0xc99   :  { %v3062_v1 = vmul.f32 %v4564_v49, %v3046_v15  ;;  %v5639_v62 = vadd.f32 %v4239_v8, %v3067_v25  ;;  %v4248_v15 = vld [vmem:[%s5815_s5 + $0x40] sm:$0xff]  ;;  %v3118_v25 = vrot.slane %v4256_v47, %v5152_v0 }
 0xc9a   :  { %v4292_v61 = vcombine.high %v4248_v15, %v4248_v15  ;;  %v4291_v22 = vcombine.low %v4248_v15, %v4248_v15 }
 0xc9b   :  { %v3068_v46 = vmul.f32 %v4238_v23, %v3062_v1  ;;  %v3126_v1 = vrot.slane %v4256_v47, %v5155_v9 }
 0xc9d   :  { %v5641_v40 = vadd.f32 %v4239_v8, %v3068_v46 }
 0xc9f   :  { %v3096_v56 = vpack.c.bf16 %v5641_v40, %v5639_v62 }
 0xca1   :  { %4275 = vmatmul.mubr.msk.bf16.vlgmr.msra.gmra.mrb[36].mxu1 %vm128_vm2, %v3096_v56  ;;  %4277 = vmatmul.mubr.msk.bf16.vlgmr.msra.gmra.mrb[40].mxu0 %vm128_vm2, %v3096_v56 }
 0xca2   :  { %3357 = vmatpush1.bf16.msra.mxu1 %v3235_v30  ;;  %3400 = vmatpush1.bf16.msra.mxu0 %v3241_v6  ;;  %v5715_v6 = vld [vmem:[%s5814_s4 + $0x18] sm:$0xff] }
 0xca3   :  { %3388 = vmatprep.mubr.bf16.mxu1 %v4605_v2  ;;  %3431 = vmatprep.mubr.bf16.mxu0 %v4605_v2  ;;  %v3134_v15 = vrot.slane %v5715_v6, %v4689_v26 }
 0xca4   :  { %4282 = vmatprep.subr.msk.bf16.mxu1 %vm1239_vm10, %v4267_v42  ;;  %4284 = vmatprep.subr.msk.bf16.mxu0 %vm1239_vm10, %v4269_v34 }
 0xca9   :  { %4279 = vmatmul.mubr.msk.bf16.vlgmr.msra.gmra.mrb[40].mxu1 %vm128_vm2, %v3096_v56  ;;  %4281 = vmatmul.mubr.msk.bf16.vlgmr.msra.gmra.mrb[44].mxu0 %vm128_vm2, %v3096_v56 }
 0xcaa   :  { %3443 = vmatpush1.bf16.msra.mxu1 %v3247_v60  ;;  %3486 = vmatpush1.bf16.msra.mxu0 %v3253_v33 }
 0xcab   :  { %3474 = vmatprep.mubr.bf16.mxu1 %v4605_v2  ;;  %3517 = vmatprep.mubr.bf16.mxu0 %v4605_v2 }
 0xcac   :  { %4286 = vmatprep.subr.msk.bf16.mxu1 %vm1239_vm10, %v4271_v31  ;;  %4288 = vmatprep.subr.msk.bf16.mxu0 %vm1239_vm10, %v4273_v29 }
 0xcb1   :  { %4283 = vmatmul.mubr.msk.bf16.vlgmr.msra.gmra.mrb[44].mxu1 %vm128_vm2, %v3096_v56  ;;  %4285 = vmatmul.mubr.msk.bf16.vlgmr.msra.gmra.mrb[48].mxu0 %vm128_vm2, %v3096_v56 }
 0xcb2   :  { %3529 = vmatpush1.bf16.msra.mxu1 %v3259_v48  ;;  %3572 = vmatpush1.bf16.msra.mxu0 %v3265_v13  ;;  %v4297_v13 = vcombine.low %v5695_v45, %v5695_v45  ;;  %v3142_v45 = vrot.slane %v5715_v6, %v5136_v11 }
 0xcb3   :  { %3560 = vmatprep.mubr.bf16.mxu1 %v4605_v2  ;;  %3603 = vmatprep.mubr.bf16.mxu0 %v4605_v2  ;;  %v5690_v2 = vld [vmem:[%s5815_s5 + $0x50] sm:$0xff] }
 0xcb4   :  { %3723 = vmatprep.subr.bf16.mxu1 %v4292_v61  ;;  %3764 = vmatprep.subr.bf16.mxu0 %v4294_v4  ;;  %v4296_v51 = vcombine.high %v5690_v2, %v5690_v2  ;;  %v4295_v31 = vcombine.low %v5690_v2, %v5690_v2  ;;  %v4302_v2 = vcombine.high %v5725_v41, %v5725_v41 }
 0xcb9   :  { %4287 = vmatmul.mubr.msk.bf16.vlgmr.msra.gmra.mrb[48].mxu1 %vm128_vm2, %v3096_v56  ;;  %4289 = vmatmul.mubr.msk.bf16.vlgmr.msra.gmra.mrb[52].mxu0 %vm128_vm2, %v3096_v56 }
 0xcbb   :  { %3724 = vmatpush1.bf16.xpose.msra.mxu1 %v4291_v22  ;;  %3765 = vmatpush1.bf16.xpose.msra.mxu0 %v4293_v37  ;;  %v4300_v37 = vcombine.high %v5720_v55, %v5720_v55 }
 0xcbc   :  { %3805 = vmatprep.subr.bf16.mxu1 %v4296_v51  ;;  %3846 = vmatprep.subr.bf16.mxu0 %v4298_v52 }
 0xd74   :  { %v3304_v10 = vpop.f32.mrb[36].mxu1  ;;  %v3347_v19 = vpop.f32.mrb[40].mxu0 }
 0xd75   :  { %v3305_v57 = vadd.f32 %v3304_v10, %v3102_v27  ;;  %v3348_v36 = vadd.f32 %v3347_v19, %v3110_v50  ;;  %v3306_v53 = vpop.f32.mrb[37].mxu1  ;;  %v3349_v16 = vpop.f32.mrb[41].mxu0  ;;  %v3138_v10 = vrot.slane %v5715_v6, %v5142_v63  ;;  %v5746_v63 = vld [vmem:[%s5815_s5 + $0x70] sm:$0xff] }
 0xd76   :  { %v3307_v5 = vadd.f32 %v3306_v53, %v3106_v28  ;;  %v3350_v20 = vadd.f32 %v3349_v16, %v3114_v44  ;;  %v3308_v43 = vpop.f32.mrb[38].mxu1  ;;  %v3351_v18 = vpop.f32.mrb[42].mxu0 }
 0xd77   :  { %v3309_v24 = vadd.f32 %v3308_v43, %v3102_v27  ;;  %v3352_v39 = vadd.f32 %v3351_v18, %v3110_v50  ;;  %v3310_v23 = vpop.f32.mrb[39].mxu1  ;;  %v3353_v49 = vpop.f32.mrb[43].mxu0  ;;  %v3614_v14 = vmax.f32 %v3305_v57, 0.0  ;;  %v3616_v58 = vmax.f32 %v3348_v36, 0.0 }
 0xd78   :  { %v3311_v8 = vadd.f32 %v3310_v23, %v3106_v28  ;;  %v3354_v46 = vadd.f32 %v3353_v49, %v3114_v44  ;;  %v3615_v42 = vmax.f32 %v3307_v5, 0.0  ;;  %v3617_v34 = vmax.f32 %v3350_v20, 0.0 }
 0xd79   :  { %v3630_v56 = vmax.f32 %v3309_v24, 0.0  ;;  %v3632_v30 = vmax.f32 %v3352_v39, 0.0  ;;  %v3146_v36 = vrot.slane %v5715_v6, %v5145_v35  ;;  %v5751_v39 = vld [vmem:[%s5815_s5 + $0x78] sm:$0xff]  ;;  %v4299_v49 = vcombine.low %v5720_v55, %v5720_v55 }
 0xd7a   :  { %v3631_v38 = vmax.f32 %v3311_v8, 0.0  ;;  %v3633_v54 = vmax.f32 %v3354_v46, 0.0 }
 0xd7b   :  { %v3646_v60 = vpack.c.bf16 %v3630_v56, %v3614_v14  ;;  %v3648_v33 = vpack.c.bf16 %v3632_v30, %v3616_v58 }
 0xd7c   :  { %v3647_v29 = vpack.c.bf16 %v3631_v38, %v3615_v42  ;;  %v3649_v12 = vpack.c.bf16 %v3633_v54, %v3617_v34  ;;  %v3390_v59 = vpop.f32.mrb[40].mxu1  ;;  %v3433_v48 = vpop.f32.mrb[44].mxu0  ;;  %v4304_v42 = vcombine.high %v5746_v63, %v5746_v63  ;;  %v4306_v34 = vcombine.high %v5751_v39, %v5751_v39 }
 0xd7d   :  { %v3391_v17 = vadd.f32 %v3390_v59, %v3118_v25  ;;  %v3434_v61 = vadd.f32 %v3433_v48, %v3126_v1  ;;  %v3392_v4 = vpop.f32.mrb[41].mxu1  ;;  %v3435_v22 = vpop.f32.mrb[45].mxu0 }
 0xd7e   :  { %v3393_v51 = vadd.f32 %v3392_v4, %v3122_v32  ;;  %v3436_v52 = vadd.f32 %v3435_v22, %v3130_v21  ;;  %v3394_v47 = vpop.f32.mrb[42].mxu1  ;;  %v3437_v27 = vpop.f32.mrb[46].mxu0  ;;  %3755 = vmatprep.mubr.bf16.mxu1 %v3647_v29  ;;  %3796 = vmatprep.mubr.bf16.mxu0 %v3649_v12  ;;  %v3154_v12 = vrot.slane %v5715_v6, %v5158_v3 }
 0xd7f   :  { %v3395_v26 = vadd.f32 %v3394_v47, %v3118_v25  ;;  %v3438_v50 = vadd.f32 %v3437_v27, %v3126_v1  ;;  %v3396_v28 = vpop.f32.mrb[43].mxu1  ;;  %v3439_v44 = vpop.f32.mrb[47].mxu0  ;;  %3756 = vmatmul.mubr.bf16.vlgmr.msra.gmra.mrb[52].mxu1 %v3646_v60  ;;  %3797 = vmatmul.mubr.bf16.vlgmr.msra.gmra.mrb[56].mxu0 %v3648_v33  ;;  %v3618_v53 = vmax.f32 %v3391_v17, 0.0  ;;  %v3620_v16 = vmax.f32 %v3434_v61, 0.0 }
 0xd80   :  { %v3397_v19 = vadd.f32 %v3396_v28, %v3122_v32  ;;  %v3440_v57 = vadd.f32 %v3439_v44, %v3130_v21  ;;  %3806 = vmatpush1.bf16.xpose.msra.mxu1 %v4295_v31  ;;  %3847 = vmatpush1.bf16.xpose.msra.mxu0 %v4297_v13  ;;  %v3619_v20 = vmax.f32 %v3393_v51, 0.0  ;;  %v3621_v43 = vmax.f32 %v3436_v52, 0.0 }
 0xd81   :  { %v3634_v5 = vmax.f32 %v3395_v26, 0.0  ;;  %v3636_v11 = vmax.f32 %v3438_v50, 0.0  ;;  %3887 = vmatprep.subr.bf16.mxu1 %v4300_v37  ;;  %3928 = vmatprep.subr.bf16.mxu0 %v4302_v2  ;;  %v4301_v32 = vcombine.low %v5725_v41, %v5725_v41  ;;  %v3150_v21 = vrot.slane %v5715_v6, %v5152_v0 }
 0xd82   :  { %v3635_v18 = vmax.f32 %v3397_v19, 0.0  ;;  %v3637_v24 = vmax.f32 %v3440_v57, 0.0  ;;  %v3158_v41 = vrot.slane %v5715_v6, %v5155_v9  ;;  %v3162_v13 = vrot.slane %v5715_v6, %v5161_v7 }
 0xd83   :  { %v3650_v35 = vpack.c.bf16 %v3634_v5, %v3618_v53  ;;  %v3652_v23 = vpack.c.bf16 %v3636_v11, %v3620_v16  ;;  %v4303_v26 = vcombine.low %v5746_v63, %v5746_v63  ;;  %v4305_v7 = vcombine.low %v5751_v39, %v5751_v39 }
 0xd84   :  { %v3651_v25 = vpack.c.bf16 %v3635_v18, %v3619_v20  ;;  %v3653_v1 = vpack.c.bf16 %v3637_v24, %v3621_v43  ;;  %v3476_v8 = vpop.f32.mrb[44].mxu1  ;;  %v3519_v46 = vpop.f32.mrb[48].mxu0 }
 0xd85   :  { %v3477_v14 = vadd.f32 %v3476_v8, %v3134_v15  ;;  %v3520_v58 = vadd.f32 %v3519_v46, %v3142_v45  ;;  %v3478_v56 = vpop.f32.mrb[45].mxu1  ;;  %v3521_v30 = vpop.f32.mrb[49].mxu0 }
 0xd86   :  { %v3479_v38 = vadd.f32 %v3478_v56, %v3138_v10  ;;  %v3522_v54 = vadd.f32 %v3521_v30, %v3146_v36  ;;  %v3480_v55 = vpop.f32.mrb[46].mxu1  ;;  %v3523_v60 = vpop.f32.mrb[50].mxu0  ;;  %3837 = vmatprep.mubr.bf16.mxu1 %v3651_v25  ;;  %3878 = vmatprep.mubr.bf16.mxu0 %v3653_v1 }
 0xd87   :  { %v3481_v0 = vadd.f32 %v3480_v55, %v3134_v15  ;;  %v3524_v33 = vadd.f32 %v3523_v60, %v3142_v45  ;;  %v3482_v31 = vpop.f32.mrb[47].mxu1  ;;  %v3525_v29 = vpop.f32.mrb[51].mxu0  ;;  %3838 = vmatmul.mubr.bf16.vlgmr.msra.gmra.mrb[56].mxu1 %v3650_v35  ;;  %3879 = vmatmul.mubr.bf16.vlgmr.msra.gmra.mrb[60].mxu0 %v3652_v23  ;;  %v3622_v17 = vmax.f32 %v3477_v14, 0.0  ;;  %v3624_v61 = vmax.f32 %v3520_v58, 0.0 }
 0xd88   :  { %v3483_v59 = vadd.f32 %v3482_v31, %v3138_v10  ;;  %v3526_v48 = vadd.f32 %v3525_v29, %v3146_v36  ;;  %3888 = vmatpush1.bf16.xpose.msra.mxu1 %v4299_v49  ;;  %3929 = vmatpush1.bf16.xpose.msra.mxu0 %v4301_v32  ;;  %v3623_v15 = vmax.f32 %v3479_v38, 0.0  ;;  %v3625_v22 = vmax.f32 %v3522_v54, 0.0 }
 0xd89   :  { %v3638_v4 = vmax.f32 %v3481_v0, 0.0  ;;  %v3640_v9 = vmax.f32 %v3524_v33, 0.0  ;;  %3969 = vmatprep.subr.bf16.mxu1 %v4304_v42  ;;  %4010 = vmatprep.subr.bf16.mxu0 %v4306_v34 }
 0xd8a   :  { %v3639_v37 = vmax.f32 %v3483_v59, 0.0  ;;  %v3641_v2 = vmax.f32 %v3526_v48, 0.0 }
 0xd8b   :  { %v3654_v51 = vpack.c.bf16 %v3638_v4, %v3622_v17  ;;  %v3656_v52 = vpack.c.bf16 %v3640_v9, %v3624_v61 }
 0xd8c   :  { %v3655_v3 = vpack.c.bf16 %v3639_v37, %v3623_v15  ;;  %v3657_v47 = vpack.c.bf16 %v3641_v2, %v3625_v22  ;;  %v3562_v27 = vpop.f32.mrb[48].mxu1  ;;  %v3605_v45 = vpop.f32.mrb[52].mxu0 }
 0xd8d   :  { %v3563_v6 = vadd.f32 %v3562_v27, %v3150_v21  ;;  %v3606_v50 = vadd.f32 %v3605_v45, %v3158_v41  ;;  %v3564_v28 = vpop.f32.mrb[49].mxu1  ;;  %v3607_v44 = vpop.f32.mrb[53].mxu0 }
 0xd8e   :  { %v3565_v10 = vadd.f32 %v3564_v28, %v3154_v12  ;;  %v3608_v19 = vadd.f32 %v3607_v44, %v3162_v13  ;;  %v3566_v57 = vpop.f32.mrb[50].mxu1  ;;  %v3609_v36 = vpop.f32.mrb[54].mxu0  ;;  %3919 = vmatprep.mubr.bf16.mxu1 %v3655_v3  ;;  %3960 = vmatprep.mubr.bf16.mxu0 %v3657_v47 }
 0xd8f   :  { %v3567_v53 = vadd.f32 %v3566_v57, %v3150_v21  ;;  %v3610_v16 = vadd.f32 %v3609_v36, %v3158_v41  ;;  %v3568_v5 = vpop.f32.mrb[51].mxu1  ;;  %v3611_v11 = vpop.f32.mrb[55].mxu0  ;;  %3920 = vmatmul.mubr.bf16.vlgmr.msra.gmra.mrb[60].mxu1 %v3654_v51  ;;  %3961 = vmatmul.mubr.bf16.vlgmr.msra.gmra.mrb[64].mxu0 %v3656_v52  ;;  %v3626_v18 = vmax.f32 %v3563_v6, 0.0  ;;  %v3628_v24 = vmax.f32 %v3606_v50, 0.0  ;;  %v4290_v21 = vld [vmem:[%s5812_s2 + $0x90] ss:$0 sm:$0xff] }
 0xd90   :  { %v3569_v20 = vadd.f32 %v3568_v5, %v3154_v12  ;;  %v3612_v43 = vadd.f32 %v3611_v11, %v3162_v13  ;;  %3970 = vmatpush1.bf16.xpose.msra.mxu1 %v4303_v26  ;;  %4011 = vmatpush1.bf16.xpose.msra.mxu0 %v4305_v7  ;;  %v3627_v35 = vmax.f32 %v3565_v10, 0.0  ;;  %v3629_v23 = vmax.f32 %v3608_v19, 0.0 }
 0xd91   :  { %v3642_v63 = vmax.f32 %v3567_v53, 0.0  ;;  %v3644_v39 = vmax.f32 %v3610_v16, 0.0 }
 0xd92   :  { %v3643_v49 = vmax.f32 %v3569_v20, 0.0  ;;  %v3645_v25 = vmax.f32 %v3612_v43, 0.0 }
 0xd93   :  { %v3658_v1 = vpack.c.bf16 %v3642_v63, %v3626_v18  ;;  %v3660_v8 = vpack.c.bf16 %v3644_v39, %v3628_v24 }
 0xd94   :  { %v3659_v46 = vpack.c.bf16 %v3643_v49, %v3627_v35  ;;  %v3661_v32 = vpack.c.bf16 %v3645_v25, %v3629_v23 }
 0xd96   :  { %4001 = vmatprep.mubr.bf16.mxu1 %v3659_v46  ;;  %4042 = vmatprep.mubr.bf16.mxu0 %v3661_v32 }
 0xd97   :  { %4002 = vmatmul.mubr.bf16.vlgmr.msra.gmra.mrb[64].mxu1 %v3658_v1  ;;  %4043 = vmatmul.mubr.bf16.vlgmr.msra.gmra.mrb[68].mxu0 %v3660_v8 }
 0xe52   :  { %v3757_v14 = vpop.f32.mrb[52].mxu1  ;;  %v3798_v58 = vpop.f32.mrb[56].mxu0 }
 0xe53   :  { %v3758_v56 = vadd.f32 %v4290_v21, %v3757_v14  ;;  %v3759_v30 = vpop.f32.mrb[53].mxu1  ;;  %v3800_v42 = vpop.f32.mrb[57].mxu0 }
 0xe54   :  { %v3760_v34 = vpop.f32.mrb[54].mxu1  ;;  %v3801_v38 = vpop.f32.mrb[58].mxu0 }
 0xe55   :  { %v3799_v54 = vadd.f32 %v3798_v58, %v3758_v56  ;;  %v3761_v55 = vadd.f32 %v4290_v21, %v3760_v34  ;;  %v3762_v60 = vpop.f32.mrb[55].mxu1  ;;  %v3803_v41 = vpop.f32.mrb[59].mxu0  ;;  %v4307_v34 = vld [vmem:[%s5812_s2 + $0xa8] ss:$0 sm:$0xff] }
 0xe57   :  { %v3802_v0 = vadd.f32 %v3801_v38, %v3761_v55  ;;  %v4308_v55 = vld [vmem:[%s5812_s2 + $0xb0] ss:$0 sm:$0xff] }
 0xe5a   :  { %v3839_v33 = vpop.f32.mrb[56].mxu1  ;;  %v3880_v31 = vpop.f32.mrb[60].mxu0 }
 0xe5b   :  { %v3840_v29 = vadd.f32 %v3839_v33, %v3799_v54  ;;  %v3841_v12 = vpop.f32.mrb[57].mxu1  ;;  %v3882_v59 = vpop.f32.mrb[61].mxu0 }
 0xe5c   :  { %v3842_v48 = vpop.f32.mrb[58].mxu1  ;;  %v3883_v13 = vpop.f32.mrb[62].mxu0 }
 0xe5d   :  { %v3881_v17 = vadd.f32 %v3880_v31, %v3840_v29  ;;  %v3843_v61 = vadd.f32 %v3842_v48, %v3802_v0  ;;  %v3844_v4 = vpop.f32.mrb[59].mxu1  ;;  %v3885_v9 = vpop.f32.mrb[63].mxu0  ;;  %v4309_v0 = vld [vmem:[%s5812_s2 + $0x10] ss:$0 sm:$0xff] }
 0xe5e   :  { %v4095_v4 = vld [vmem:[%s5811_s1] sm:$0x3]  ;;  %s4606_s1 = smov [#allocation2]  }
 0xe5f   :  { %v3884_v15 = vadd.f32 %v3883_v13, %v3843_v61 }
 0xe62   :  { %v3921_v22 = vpop.f32.mrb[60].mxu1  ;;  %v3962_v37 = vpop.f32.mrb[64].mxu0 }
 0xe63   :  { %v3922_v2 = vadd.f32 %v3921_v22, %v3881_v17  ;;  %v3923_v51 = vpop.f32.mrb[61].mxu1  ;;  %v3964_v52 = vpop.f32.mrb[65].mxu0 }
 0xe64   :  { %v3924_v3 = vpop.f32.mrb[62].mxu1  ;;  %v3965_v47 = vpop.f32.mrb[66].mxu0 }
 0xe65   :  { %v3963_v27 = vadd.f32 %v3962_v37, %v3922_v2  ;;  %v3925_v45 = vadd.f32 %v3924_v3, %v3884_v15  ;;  %v3926_v26 = vpop.f32.mrb[63].mxu1  ;;  %v3967_v7 = vpop.f32.mrb[67].mxu0  ;;  %v4310_v37 = vld [vmem:[%s5812_s2 + $0x18] ss:$0 sm:$0xff]  ;;  %s4161_s2 = sshll.u32 %s4606_s1, 4  ;;  %s4162_s2 = int_to_ptr.vmem [resolvable:$true] %s4161_s2 }
 0xe66   :  { %p4582_p1 = scmp.lt.s32.totalorder %s4162_s2, %s4162_s2 }
 0xe67   :  { %v3966_v6 = vadd.f32 %v3965_v47, %v3925_v45 }
 0xe6a   :  { %v4003_v50 = vpop.f32.mrb[64].mxu1  ;;  %v4044_v28 = vpop.f32.mrb[68].mxu0 }
 0xe6b   :  { %v4004_v44 = vadd.f32 %v4003_v50, %v3963_v27  ;;  %v4005_v10 = vpop.f32.mrb[65].mxu1  ;;  %v4046_v19 = vpop.f32.mrb[69].mxu0 }
 0xe6c   :  { %v4006_v57 = vpop.f32.mrb[66].mxu1  ;;  %v4047_v36 = vpop.f32.mrb[70].mxu0 }
 0xe6d   :  { %v4045_v53 = vadd.f32 %v4044_v28, %v4004_v44  ;;  %v4007_v16 = vadd.f32 %v4006_v57, %v3966_v6  ;;  %v4008_v5 = vpop.f32.mrb[67].mxu1  ;;  %v4049_v11 = vpop.f32.mrb[71].mxu0 }
 0xe6f   :  { %v4048_v20 = vadd.f32 %v4047_v36, %v4007_v16  ;;  %v4051_v43 = vadd.f32 %v4045_v53, %v5639_v62 }
 0xe71   :  { %v4055_v18 = vsel %vm128_vm2, %v4051_v43, 0.0  ;;  %v4052_v24 = vadd.f32 %v4048_v20, %v5641_v40 }
 0xe72   :  { %4056 = vadd.xlane.f32.xlu0 %v4055_v18 }
 0xe73   :  { %v4058_v63 = vsel %vm128_vm2, %v4052_v24, 0.0 }
 0xe74   :  { %4059 = vadd.xlane.f32.xlu1 %v4058_v63 }
 0xeff   :  { %v4057_v39 = vpop.xlane.xlu0 %4056 }
 0xf00   :  { %v4061_v35 = vmul.f32 0.125, %v4057_v39 }
 0xf01   :  { %v4060_v23 = vpop.xlane.xlu1 %4059 }
 0xf02   :  { %v4063_v49 = vsub.f32 %v4051_v43, %v4061_v35  ;;  %v4062_v25 = vmul.f32 0.125, %v4060_v23 }
 0xf04   :  { %v4064_v1 = vsub.f32 %v4052_v24, %v4062_v25  ;;  %v4065_v8 = vmul.f32 %v4063_v49, %v4063_v49 }
 0xf06   :  { %v4067_v46 = vsel %vm128_vm2, %v4065_v8, 0.0  ;;  %v4066_v32 = vmul.f32 %v4064_v1, %v4064_v1 }
 0xf07   :  { %4068 = vadd.xlane.f32.xlu0 %v4067_v46 }
 0xf08   :  { %v4070_v62 = vsel %vm128_vm2, %v4066_v32, 0.0 }
 0xf09   :  { %4071 = vadd.xlane.f32.xlu1 %v4070_v62 }
 0xf94   :  { %v4069_v21 = vpop.xlane.xlu0 %4068 }
 0xf95   :  { %v4073_v40 = vmul.f32 0.125, %v4069_v21 }
 0xf96   :  { %v4072_v14 = vpop.xlane.xlu1 %4071 }
 0xf97   :  { %v4075_v58 = vadd.f32 1e-05, %v4073_v40  ;;  %v4074_v56 = vmul.f32 0.125, %v4072_v14 }
 0xf99   :  { %4565 = vrsqrt.f32 %v4075_v58  ;;  %v4076_v30 = vadd.f32 1e-05, %v4074_v56 }
 0xf9b   :  { %4567 = vrsqrt.f32 %v4076_v30 }
 0xfa3   :  { %v4566_v42 = vpop.eup %4565 }
 0xfa4   :  { %v4079_v38 = vmul.f32 %v4566_v42, %v4063_v49 }
 0xfa5   :  { %v4568_v54 = vpop.eup %4567 }
 0xfa6   :  { %v4085_v60 = vmul.f32 %v4307_v34, %v4079_v38  ;;  %v4080_v41 = vmul.f32 %v4568_v54, %v4064_v1 }
 0xfa8   :  { %v4091_v33 = vadd.f32 %v4308_v55, %v4085_v60  ;;  %v4086_v31 = vmul.f32 %v4307_v34, %v4080_v41 }
 0xfaa   :  { %v4100_v29 = vmul.f32 %v4309_v0, %v4091_v33  ;;  %v4092_v12 = vadd.f32 %v4308_v55, %v4086_v31 }
 0xfac   :  { %v4108_v59 = vsel %vm4107_vm11, %v4100_v29, 0.0  ;;  %v4101_v48 = vmul.f32 %v4309_v0, %v4092_v12 }
 0xfad   :  { %4109 = vadd.xlane.f32.xlu1 %v4108_v59 }
 0xfae   :  { %v4104_v13 = vrot.slane %v4101_v48, 7 }
 0xfb0   :  { %v4112_v17 = vsel %vm4111_vm12, %v4104_v13, 0.0 }
 0xfb1   :  { %4113 = vadd.xlane.f32.xlu0 %v4112_v17 }
 0xfbe   :  { %4116 = vrot.lane.b32.xlu1 %v4309_v0, %s4601_s10  ;;  %s4577_s10 = scalar_lea.vmem %s4162_s2, 32 }
 0xfbf   :  { %p4578_p0 = scmp.ne.s32.totalorder %s4162_s2, %s4577_s10  ;;  %p4583_p2 = scmp.lt.s32.totalorder %s4577_s10, %s4577_s10 }
 0xfc1   :  { %p4584_p3 = por %p4583_p2, %p4582_p1 }
 0xfc3   :  { %p4585_p4 = pnand %p4584_p3, %p4578_p0 }
0x103a   :  { %v4110_v61 = vpop.xlane.xlu1 %4109 }
0x103e   :  { %v4117_v9 = vpop.permute.xlu1 %4116  ;;  %v4114_v2 = vpop.xlane.xlu0 %4113 }
0x103f   :  { %v4119_v15 = vmul.f32 %v4117_v9, %v4095_v4 }
0x1041   :  { %v4121_v22 = vrot.slane %v4119_v15, 1 }
0x1043   :  { %v4123_v51 = vadd.f32 %v4121_v22, %v4110_v61  ;;  %v4124_v52 = vadd.f32 %v4121_v22, %v4114_v2 }
0x1045   :  { %v4129_v3 = vadd.f32 %v4310_v37, %v4123_v51  ;;  %v4130_v47 = vadd.f32 %v4310_v37, %v4124_v52 }
0x1047   :  { %v4311_v27 = vmul.f32 -1.442695, %v4129_v3  ;;  %v4312_v45 = vmul.f32 -1.442695, %v4130_v47 }
0x1049   :  { %4569 = vpow2.f32 %v4311_v27 }
0x104a   :  { %4571 = vpow2.f32 %v4312_v45 }
0x1053   :  { %v4570_v26 = vpop.eup %4569 }
0x1054   :  { %v4572_v7 = vpop.eup %4571  ;;  %v4137_v6 = vadd.f32 1.0, %v4570_v26 }
0x1055   :  { %v4138_v50 = vadd.f32 1.0, %v4572_v7 }
0x1056   :  { %4573 = vrcp.f32 %v4137_v6 }
0x1057   :  { %4575 = vrcp.f32 %v4138_v50 }
0x1060   :  { %v4574_v28 = vpop.eup %4573 }
0x1061   :  { %v4576_v44 = vpop.eup %4575  ;;  %4145 = vperm.xlu0 %4359, %v4574_v28  }
0x1062   :  { %4150 = vperm.xlu1 %4360, %v4576_v44  }
0x10e0   :  { %v4146_v10 = vpop.permute.xlu0 %4145 }
0x10e1   :  { %v4151_v19 = vpop.permute.xlu1 %4150  ;;  %4153 = vst [vmem:[#allocation2 - $0x7] sm:$0x80] %v4146_v10 }
0x10e2   :  { %4154 = vst [vmem:[#allocation2 + $0x1] sm:$0x1] %v4151_v19 }
0x10e3   :  { %4588 = shalt.err (!%p4585_p4)
}
0x10e4   :  { %s4589_s27 = scalar_lea.hbm %s5816_s6, 32 }
0x10e5   :  { %p4590_p5 = scmp.ne.s32.totalorder %s5816_s6, %s4589_s27  ;;  %p4593_p6 = scmp.lt.u32.totalorder %s4589_s27, %s5816_s6 }
0x10e7   :  { %p4595_p7 = pnand %p4593_p6, %p4590_p5 }
0x10e9   :  { %4598 = shalt.err (!%p4595_p7)
}
0x10ea   :  { %4164 = dma.vmem_to_hbm [thread:$0]  %s4162_s2, 32, %s5816_s6, [#allocation3]  }
0x10eb   :  { %4599 = dma.done.wait [#allocation3], 32  }
0x10ec   :  { %4600 = vsyncadd [#allocation3], 4294967264 }
0x10ed   :  { %4168 = vsyncpa [#allocation3], 1 }

</bundles_post_ra>
